<compile_context>
chip_gen: v7x
topology: tpu7x:2x2x1
jax: 0.10.0
libtpu: 0.0.40
codegen_flags: <defaults>
</compile_context>

<pallas_src>
import jax
import jax.numpy as jnp
from jax import lax
from jax.experimental import pallas as pl
from jax.experimental.pallas import tpu as pltpu

LEAKY_SLOPE = 0.05
COUT = 3            # real output channels
COUT_SUB = 8        # output channels padded to 8 for the HBM store
COUT_MXU = 128      # layer-4 matmul N kept at a full lane group
K1 = 16             # layer-1 im2col K: 9 taps padded to the bf16 sublane tile


def _round_up(x, m):
    return ((x + m - 1) // m) * m


def _guard_rows(W):
    # Zero-guard rows above/below the flattened (H*W, C) activation so every
    # 3x3 tap is a plain row slice; >= W+1 rows, kept 8-aligned.
    return _round_up(W + 1, 8)


def _k_pad(cin):
    return _round_up(9 * cin, 128)


def _make_fused_kernel(H, W, MC, slope=LEAKY_SLOPE):
    HW = H * W
    PAD = _guard_rows(W)
    HALO = MC + 2 * PAD                 # chunk + top/bottom halo rows
    n_chunks = pl.cdiv(HW, MC)
    aligned = (HW % MC == 0)

    def hint(x, m):
        # Alignment hint, only asserted when it is actually true.
        if aligned and MC % m == 0:
            return pl.multiple_of(x, m)
        return x

    def chunk_start(i):
        # Last chunk overlaps the previous one when HW % MC != 0.
        return hint(jnp.minimum(i * MC, HW - MC), MC)

    def leaky(y):
        return jnp.maximum(y, slope * y)

    def kernel(p1_ref, w1_ref, b1_ref, w2_ref, b2_ref, w3_ref, b3_ref,
               w4_ref, b4_ref, out_ref,
               a1_ref, a2_ref, a3_ref, h_ref, p2_ref, p3_ref, p4_ref):

        # ---- init: zero guard rows + K-pad tails (cheap; done every grid
        # step because each megacore TensorCore has its own scratch). -------
        for ae in (a1_ref, a2_ref, a3_ref):
            c = ae.shape[1]
            ae[0:PAD, :] = jnp.zeros((PAD, c), ae.dtype)
            ae[PAD + HW:PAD + HW + PAD, :] = jnp.zeros((PAD, c), ae.dtype)
        for pb, cin in ((p2_ref, 64), (p3_ref, 128), (p4_ref, 64)):
            kp = pb.shape[1]
            if kp > 9 * cin:
                pb[:, 9 * cin:kp] = jnp.zeros((MC, kp - 9 * cin), pb.dtype)

        def write_act(ae_ref):
            def w(m0, y):
                ae_ref[pl.ds(hint(PAD + m0, 8), MC), :] = y.astype(ae_ref.dtype)
            return w

        def write_out(m0, y):
            out_ref[pl.ds(m0, MC), :] = y[:, 0:COUT_SUB].astype(out_ref.dtype)

        # ---- layer 1: conv(1->64) + BN1 (folded) + leaky_relu -------------
        # im2col (9 taps padded to K1=16, bf16) prebuilt in the wrapper.
        b1 = b1_ref[...]
        wr1 = write_act(a1_ref)

        def l1_body(i, carry):
            m0 = chunk_start(i)
            y = jnp.dot(p1_ref[pl.ds(m0, MC), :], w1_ref[...],
                        preferred_element_type=jnp.float32)
            wr1(m0, leaky(y + b1))
            return carry

        lax.fori_loop(0, n_chunks, l1_body, 0)
        # TODO(synk): dropout2d(p=0.001) treated as identity (inference).

        # ---- generic 3x3 SAME conv: halo-stage -> im2col -> one deep-K dot
        def conv3x3(ae_ref, p_ref, w_ref, b_ref, cin, act, write):
            b = b_ref[...]
            if MC % W == 0:
                # Every chunk starts at image column 0 -> masks are invariant.
                col = lax.broadcasted_iota(jnp.int32, (MC, 1), 0) % W
                ok_l, ok_r = col >= 1, col < (W - 1)
            else:
                ok_l = ok_r = None

            def body(i, carry):
                m0 = chunk_start(i)
                if ok_l is None:
                    c = (m0 + lax.broadcasted_iota(jnp.int32, (MC, 1), 0)) % W
                    okl, okr = c >= 1, c < (W - 1)
                else:
                    okl, okr = ok_l, ok_r
                # Stage chunk + halo at an aligned dynamic offset so the nine
                # tap reads below are static (unaligned-but-static) slices.
                h_ref[0:HALO, 0:cin] = ae_ref[pl.ds(m0, HALO), :]
                k = 0
                for dh in (-1, 0, 1):
                    for dw in (-1, 0, 1):
                        s = dh * W + dw
                        v = h_ref[PAD + s:PAD + s + MC, 0:cin]
                        if dw == -1:        # left neighbour missing at col 0
                            v = jnp.where(okl, v, 0.0)
                        elif dw == 1:       # right neighbour missing at W-1
                            v = jnp.where(okr, v, 0.0)
                        p_ref[:, k * cin:(k + 1) * cin] = v.astype(p_ref.dtype)
                        k += 1
                y = jnp.dot(p_ref[...], w_ref[...],
                            preferred_element_type=jnp.float32)
                y = y + b
                if act:
                    y = leaky(y)
                write(m0, y)
                return carry

            lax.fori_loop(0, n_chunks, body, 0)

        # layer 2: conv(64->128) + BN2 + leaky_relu
        conv3x3(a1_ref, p2_ref, w2_ref, b2_ref, 64, True, write_act(a2_ref))
        # layer 3: conv(128->64) + BN3 + leaky_relu
        conv3x3(a2_ref, p3_ref, w3_ref, b3_ref, 128, True, write_act(a3_ref))
        # layer 4: conv(64->3); Cout padded to 128 for the MXU, 8 stored
        conv3x3(a3_ref, p4_ref, w4_ref, b4_ref, 64, False, write_out)

    return kernel


def _fold_bn(w_hwio, b, scale, shift):
    """Fold eval-mode BN affine into the conv: (9*Cin,Cout) weight, (1,Cout) bias."""
    wf = (w_hwio * scale).reshape(-1, w_hwio.shape[-1])
    bf = (b * scale + shift).reshape(1, -1)
    return wf, bf


def _im2col_layer1(x_nhwc, H, W, k_pad):
    """(N,H,W,1) -> (N, H*W, k_pad) 3x3 SAME patches, K zero-padded."""
    N = x_nhwc.shape[0]
    xp = jnp.pad(x_nhwc, ((0, 0), (1, 1), (1, 1), (0, 0)))
    cols = [xp[:, kh:kh + H, kw:kw + W, :]
            for kh in range(3) for kw in range(3)]
    p = jnp.concatenate(cols, axis=-1).reshape(N, H * W, 9)
    return jnp.pad(p, ((0, 0), (0, 0), (0, k_pad - 9)))


def _vmem_limit_bytes(HW, PAD, MC, K2, K3, K4):
    AEXT = 2 * PAD + HW
    HALO = MC + 2 * PAD
    act = 4 * AEXT * (64 + 128 + 64)             # f32 resident activations
    halo = 4 * HALO * 128                        # f32 halo staging
    patch = 2 * MC * (K2 + K3 + K4)              # bf16 per-chunk patches
    wts = 2 * (K1 * 64 + K2 * 128 + K3 * 64 + K4 * 128) \
        + 4 * (64 + 128 + 64 + 128)              # bf16 weights + f32 biases
    io = 2 * HW * K1 + 4 * HW * COUT_SUB         # one input + one output block
    total = act + halo + patch + 2 * (wts + io)  # double-buffered in/out
    return max(min(2 * total + (4 << 20), 64 << 20), 32 << 20)


def image_input_forward_impl(x_nchw, params):
    N, _, H, W = x_nchw.shape
    HW = H * W
    PAD = _guard_rows(W)
    AEXT = 2 * PAD + HW
    MC = 128 if HW >= 128 else HW                # fixed row chunk
    HALO = MC + 2 * PAD
    K2, K3, K4 = _k_pad(64), _k_pad(128), _k_pad(64)   # 640, 1152, 640

    x = jnp.transpose(x_nchw, (0, 2, 3, 1))                  # NCHW -> NHWC
    p1 = _im2col_layer1(x, H, W, K1).astype(jnp.bfloat16)     # (N, HW, 16)

    (w1, b1, s1, t1), (w2, b2, s2, t2), (w3, b3, s3, t3), (w4, b4, s4, t4) = params
    w1f, b1f = _fold_bn(w1, b1, s1, t1)                                 # (9,64)
    w1f = jnp.pad(w1f, ((0, K1 - w1f.shape[0]), (0, 0))).astype(jnp.bfloat16)
    w2f, b2f = _fold_bn(w2, b2, s2, t2)                                 # (576,128)
    w2f = jnp.pad(w2f, ((0, K2 - w2f.shape[0]), (0, 0))).astype(jnp.bfloat16)
    w3f, b3f = _fold_bn(w3, b3, s3, t3)                                 # (1152,64)
    w3f = jnp.pad(w3f, ((0, K3 - w3f.shape[0]), (0, 0))).astype(jnp.bfloat16)
    w4f, b4f = _fold_bn(w4, b4, s4, t4)                                 # (576,3)
    w4f = jnp.pad(w4f, ((0, K4 - w4f.shape[0]),
                        (0, COUT_MXU - w4f.shape[1]))).astype(jnp.bfloat16)
    b4f = jnp.pad(b4f, ((0, 0), (0, COUT_MXU - b4f.shape[1])))          # (1,128)

    kernel = _make_fused_kernel(H, W, MC)

    def shared(shape):
        nd = len(shape)
        return pl.BlockSpec(shape, lambda n: (0,) * nd)

    out = pl.pallas_call(
        kernel,
        out_shape=jax.ShapeDtypeStruct((N, HW, COUT_SUB), jnp.float32),
        grid_spec=pltpu.PrefetchScalarGridSpec(
            num_scalar_prefetch=0,
            grid=(N,),
            in_specs=[
                pl.BlockSpec((pl.Squeezed(), HW, K1), lambda n: (n, 0, 0)),
                shared(w1f.shape), shared(b1f.shape),
                shared(w2f.shape), shared(b2f.shape),
                shared(w3f.shape), shared(b3f.shape),
                shared(w4f.shape), shared(b4f.shape),
            ],
            out_specs=pl.BlockSpec((pl.Squeezed(), HW, COUT_SUB),
                                   lambda n: (n, 0, 0)),
            scratch_shapes=[
                pltpu.VMEM((AEXT, 64), jnp.float32),     # act1 (zero-guarded)
                pltpu.VMEM((AEXT, 128), jnp.float32),    # act2
                pltpu.VMEM((AEXT, 64), jnp.float32),     # act3
                pltpu.VMEM((HALO, 128), jnp.float32),    # per-chunk halo stage
                pltpu.VMEM((MC, K2), jnp.bfloat16),      # im2col patches L2
                pltpu.VMEM((MC, K3), jnp.bfloat16),      # im2col patches L3
                pltpu.VMEM((MC, K4), jnp.bfloat16),      # im2col patches L4
            ]),
        compiler_params=pltpu.CompilerParams(
            dimension_semantics=("parallel",),
            vmem_limit_bytes=_vmem_limit_bytes(HW, PAD, MC, K2, K3, K4)),
    )(p1, w1f, b1f, w2f, b2f, w3f, b3f, w4f, b4f)

    y = out[:, :, :COUT].reshape(N, H, W, COUT)
    return jnp.transpose(y, (0, 3, 1, 2))                 # NHWC -> NCHW


image_input_forward = jax.jit(image_input_forward_impl)


def init_params(key):
    """Deterministic synthetic parameters (shapes from image_input.__init__)."""
    eps = 1e-5
    chans = [(1, 64), (64, 128), (128, 64), (64, 3)]
    params = []
    for li, (cin, cout) in enumerate(chans):
        key, kw, kb, kg, kbeta = jax.random.split(key, 5)
        w = jax.random.normal(kw, (3, 3, cin, cout), jnp.float32) * 0.1  # HWIO
        b = jax.random.normal(kb, (cout,), jnp.float32) * 0.1
        if li < 3:  # layers with BatchNorm (eval-mode running stats)
            gamma = 1.0 + 0.1 * jax.random.normal(kg, (cout,), jnp.float32)
            beta = 0.1 * jax.random.normal(kbeta, (cout,), jnp.float32)
            run_mean = jnp.zeros((cout,), jnp.float32)
            run_var = jnp.ones((cout,), jnp.float32)
            scale = gamma / jnp.sqrt(run_var + eps)
            shift = beta - run_mean * scale
        else:       # final conv: no BN -> identity affine
            scale = jnp.ones((cout,), jnp.float32)
            shift = jnp.zeros((cout,), jnp.float32)
        params.append((w, b, scale, shift))
    return params


def _reference_forward(x_nchw, params):
    """Pure-JAX f32 reference (lax.conv) for validation."""
    x = jnp.transpose(x_nchw, (0, 2, 3, 1))
    for li, (w, b, scale, shift) in enumerate(params):
        y = lax.conv_general_dilated(
            x, w, window_strides=(1, 1), padding="SAME",
            dimension_numbers=("NHWC", "HWIO", "NHWC"))
        y = (y + b) * scale + shift
        if li < 3:
            y = jnp.where(y >= 0, y, LEAKY_SLOPE * y)
        x = y
    return jnp.transpose(x, (0, 3, 1, 2))


if __name__ == "__main__":
    key = jax.random.PRNGKey(0)
    key, kx = jax.random.split(key)
    # Small shapes consistent with the module: N=2, Cin=1, H=W=16 (NCHW).
    x = jax.random.normal(kx, (2, 1, 16, 16), jnp.float32)
    params = init_params(key)

    out = image_input_forward(x, params)
    out = jax.block_until_ready(out)
    assert out.shape == (2, 3, 16, 16), out.shape

    ref = _reference_forward(x, params)
    max_err = float(jnp.max(jnp.abs(out - ref)))
    # bf16 MXU operands vs f32 reference -> relaxed tolerance.
    assert jnp.allclose(out, ref, rtol=5e-2, atol=5e-2), max_err

    print("KERNEL_OK")
</pallas_src>

<mosaic_0001>
module attributes {stable_mosaic.version = 11 : i64} {
  func.func @kernel(%arg0: i32, %arg1: memref<1x256x16xbf16, #tpu.memory_space<vmem>>, %arg2: memref<16x64xbf16, #tpu.memory_space<vmem>>, %arg3: memref<1x64xf32, #tpu.memory_space<vmem>>, %arg4: memref<640x128xbf16, #tpu.memory_space<vmem>>, %arg5: memref<1x128xf32, #tpu.memory_space<vmem>>, %arg6: memref<1152x64xbf16, #tpu.memory_space<vmem>>, %arg7: memref<1x64xf32, #tpu.memory_space<vmem>>, %arg8: memref<640x128xbf16, #tpu.memory_space<vmem>>, %arg9: memref<1x128xf32, #tpu.memory_space<vmem>>, %arg10: memref<1x256x8xf32, #tpu.memory_space<vmem>>, %arg11: memref<304x64xf32, #tpu.memory_space<vmem>>, %arg12: memref<304x128xf32, #tpu.memory_space<vmem>>, %arg13: memref<304x64xf32, #tpu.memory_space<vmem>>, %arg14: memref<176x128xf32, #tpu.memory_space<vmem>>, %arg15: memref<128x640xbf16, #tpu.memory_space<vmem>>, %arg16: memref<128x1152xbf16, #tpu.memory_space<vmem>>, %arg17: memref<128x640xbf16, #tpu.memory_space<vmem>>) attributes {dimension_semantics = [#tpu.dimension_semantics<parallel>], iteration_bounds = array<i64: 2>, scalar_prefetch = 0 : i64, scratch_operands = 7 : i64, tpu.core_type = #tpu.core_type<tc>, window_params = [{transform_indices = @transform_0, window_bounds = array<i64: 1, 256, 16>}, {pipeline_mode = #tpu.pipeline_mode<synchronous>, transform_indices = @transform_1, window_bounds = array<i64: 16, 64>}, {pipeline_mode = #tpu.pipeline_mode<synchronous>, transform_indices = @transform_2, window_bounds = array<i64: 1, 64>}, {pipeline_mode = #tpu.pipeline_mode<synchronous>, transform_indices = @transform_3, window_bounds = array<i64: 640, 128>}, {pipeline_mode = #tpu.pipeline_mode<synchronous>, transform_indices = @transform_4, window_bounds = array<i64: 1, 128>}, {pipeline_mode = #tpu.pipeline_mode<synchronous>, transform_indices = @transform_5, window_bounds = array<i64: 1152, 64>}, {pipeline_mode = #tpu.pipeline_mode<synchronous>, transform_indices = @transform_6, window_bounds = array<i64: 1, 64>}, {pipeline_mode = #tpu.pipeline_mode<synchronous>, transform_indices = @transform_7, window_bounds = array<i64: 640, 128>}, {pipeline_mode = #tpu.pipeline_mode<synchronous>, transform_indices = @transform_8, window_bounds = array<i64: 1, 128>}, {transform_indices = @transform_9, window_bounds = array<i64: 1, 256, 8>}]} {
    %cst = arith.constant 0.000000e+00 : f32
    %0 = vector.broadcast %cst : f32 to vector<24x64xf32>
    %c0 = arith.constant 0 : index
    %c0_0 = arith.constant 0 : index
    %1 = vector.load %arg11[%c0, %c0_0] : memref<304x64xf32, #tpu.memory_space<vmem>>, vector<24x64xf32>
    tpu.vector_store %arg11[%c0, %c0_0], %0 {strides = array<i32>} : memref<304x64xf32, #tpu.memory_space<vmem>>, vector<24x64xf32>,
    %cst_1 = arith.constant 0.000000e+00 : f32
    %2 = vector.broadcast %cst_1 : f32 to vector<24x64xf32>
    %c280 = arith.constant 280 : index
    %c0_2 = arith.constant 0 : index
    %3 = vector.load %arg11[%c280, %c0_2] : memref<304x64xf32, #tpu.memory_space<vmem>>, vector<24x64xf32>
    tpu.vector_store %arg11[%c280, %c0_2], %2 {strides = array<i32>} : memref<304x64xf32, #tpu.memory_space<vmem>>, vector<24x64xf32>,
    %cst_3 = arith.constant 0.000000e+00 : f32
    %4 = vector.broadcast %cst_3 : f32 to vector<24x128xf32>
    %c0_4 = arith.constant 0 : index
    %c0_5 = arith.constant 0 : index
    %5 = vector.load %arg12[%c0_4, %c0_5] : memref<304x128xf32, #tpu.memory_space<vmem>>, vector<24x128xf32>
    tpu.vector_store %arg12[%c0_4, %c0_5], %4 {strides = array<i32>} : memref<304x128xf32, #tpu.memory_space<vmem>>, vector<24x128xf32>,
    %cst_6 = arith.constant 0.000000e+00 : f32
    %6 = vector.broadcast %cst_6 : f32 to vector<24x128xf32>
    %c280_7 = arith.constant 280 : index
    %c0_8 = arith.constant 0 : index
    %7 = vector.load %arg12[%c280_7, %c0_8] : memref<304x128xf32, #tpu.memory_space<vmem>>, vector<24x128xf32>
    tpu.vector_store %arg12[%c280_7, %c0_8], %6 {strides = array<i32>} : memref<304x128xf32, #tpu.memory_space<vmem>>, vector<24x128xf32>,
    %cst_9 = arith.constant 0.000000e+00 : f32
    %8 = vector.broadcast %cst_9 : f32 to vector<24x64xf32>
    %c0_10 = arith.constant 0 : index
    %c0_11 = arith.constant 0 : index
    %9 = vector.load %arg13[%c0_10, %c0_11] : memref<304x64xf32, #tpu.memory_space<vmem>>, vector<24x64xf32>
    tpu.vector_store %arg13[%c0_10, %c0_11], %8 {strides = array<i32>} : memref<304x64xf32, #tpu.memory_space<vmem>>, vector<24x64xf32>,
    %cst_12 = arith.constant 0.000000e+00 : f32
    %10 = vector.broadcast %cst_12 : f32 to vector<24x64xf32>
    %c280_13 = arith.constant 280 : index
    %c0_14 = arith.constant 0 : index
    %11 = vector.load %arg13[%c280_13, %c0_14] : memref<304x64xf32, #tpu.memory_space<vmem>>, vector<24x64xf32>
    tpu.vector_store %arg13[%c280_13, %c0_14], %10 {strides = array<i32>} : memref<304x64xf32, #tpu.memory_space<vmem>>, vector<24x64xf32>,
    %cst_15 = arith.constant 0.000000e+00 : bf16
    %12 = vector.broadcast %cst_15 : bf16 to vector<128x64xbf16>
    %c0_16 = arith.constant 0 : index
    %c576 = arith.constant 576 : index
    %13 = vector.load %arg15[%c0_16, %c576] : memref<128x640xbf16, #tpu.memory_space<vmem>>, vector<128x64xbf16>
    tpu.vector_store %arg15[%c0_16, %c576], %12 {strides = array<i32>} : memref<128x640xbf16, #tpu.memory_space<vmem>>, vector<128x64xbf16>,
    %cst_17 = arith.constant 0.000000e+00 : bf16
    %14 = vector.broadcast %cst_17 : bf16 to vector<128x64xbf16>
    %c0_18 = arith.constant 0 : index
    %c576_19 = arith.constant 576 : index
    %15 = vector.load %arg17[%c0_18, %c576_19] : memref<128x640xbf16, #tpu.memory_space<vmem>>, vector<128x64xbf16>
    tpu.vector_store %arg17[%c0_18, %c576_19], %14 {strides = array<i32>} : memref<128x640xbf16, #tpu.memory_space<vmem>>, vector<128x64xbf16>,
    %c0_20 = arith.constant 0 : index
    %c0_21 = arith.constant 0 : index
    %16 = vector.load %arg3[%c0_20, %c0_21] : memref<1x64xf32, #tpu.memory_space<vmem>>, vector<1x64xf32>
    %c0_i32 = arith.constant 0 : i32
    %c2_i32 = arith.constant 2 : i32
    %17 = arith.addi %c0_i32, %c2_i32 : i32
    %c1_i32 = arith.constant 1 : i32
    scf.for %arg18 = %c0_i32 to %17 step %c1_i32  : i32 {
      %c128_i32 = arith.constant 128 : i32
      %87 = arith.muli %arg18, %c128_i32 : i32
      %c128_i32_63 = arith.constant 128 : i32
      %88 = arith.minsi %87, %c128_i32_63 : i32
      %89 = tpu.assume_multiple %88, 128 : i32
      %c0_64 = arith.constant 0 : index
      %90 = arith.index_cast %89 : i32 to index
      %c0_65 = arith.constant 0 : index
      %91 = vector.load %arg1[%c0_64, %90, %c0_65] : memref<1x256x16xbf16, #tpu.memory_space<vmem>>, vector<1x128x16xbf16>
      %92 = vector.shape_cast %91 : vector<1x128x16xbf16> to vector<128x16xbf16>
      %c0_66 = arith.constant 0 : index
      %c0_67 = arith.constant 0 : index
      %93 = vector.load %arg2[%c0_66, %c0_67] : memref<16x64xbf16, #tpu.memory_space<vmem>>, vector<16x64xbf16>
      %cst_68 = arith.constant dense<0.000000e+00> : vector<128x64xf32>
      %94 = tpu.matmul %92, %93, %cst_68 {dimension_numbers = #tpu.dot_dimension_numbers<[1], [0], [0], [1], [0, 0, 1, 1], [], []>} : vector<128x16xbf16>, vector<16x64xbf16>, vector<128x64xf32> -> vector<128x64xf32>
      %95 = vector.broadcast %16 : vector<1x64xf32> to vector<128x64xf32>
      %96 = arith.addf %94, %95 : vector<128x64xf32>
      %cst_69 = arith.constant 5.000000e-02 : f32
      %97 = vector.broadcast %cst_69 : f32 to vector<128x64xf32>
      %98 = arith.mulf %97, %96 : vector<128x64xf32>
      %99 = arith.maximumf %96, %98 : vector<128x64xf32>
      %c24_i32 = arith.constant 24 : i32
      %100 = arith.addi %c24_i32, %89 : i32
      %101 = tpu.assume_multiple %100, 8 : i32
      %102 = arith.index_cast %101 : i32 to index
      %c0_70 = arith.constant 0 : index
      %103 = vector.load %arg11[%102, %c0_70] : memref<304x64xf32, #tpu.memory_space<vmem>>, vector<128x64xf32>
      tpu.vector_store %arg11[%102, %c0_70], %99 {strides = array<i32>} : memref<304x64xf32, #tpu.memory_space<vmem>>, vector<128x64xf32>,
    }
    %c2_i32_22 = arith.constant 2 : i32
    %c0_23 = arith.constant 0 : index
    %c0_24 = arith.constant 0 : index
    %18 = vector.load %arg5[%c0_23, %c0_24] : memref<1x128xf32, #tpu.memory_space<vmem>>, vector<1x128xf32>
    %19 = tpu.iota {dimensions = array<i32: 0>} : vector<128x1xi32>
    %c16_i32 = arith.constant 16 : i32
    %c0_i32_25 = arith.constant 0 : i32
    %20 = arith.cmpi eq, %c16_i32, %c0_i32_25 : i32
    %c1_i32_26 = arith.constant 1 : i32
    %21 = arith.select %20, %c1_i32_26, %c16_i32 : i32
    %22 = vector.broadcast %21 : i32 to vector<128x1xi32>
    %23 = arith.remsi %19, %22 : vector<128x1xi32>
    %c0_i32_27 = arith.constant 0 : i32
    %24 = vector.broadcast %c0_i32_27 : i32 to vector<128x1xi32>
    %25 = arith.cmpi ne, %23, %24 : vector<128x1xi32>
    %c0_i32_28 = arith.constant 0 : i32
    %26 = vector.broadcast %c0_i32_28 : i32 to vector<128x1xi32>
    %27 = arith.cmpi slt, %23, %26 : vector<128x1xi32>
    %c0_i32_29 = arith.constant 0 : i32
    %28 = arith.cmpi slt, %21, %c0_i32_29 : i32
    %29 = vector.broadcast %28 : i1 to vector<128x1xi1>
    %30 = vector.broadcast %29 : vector<128x1xi1> to vector<128x1xi1>
    %31 = arith.xori %27, %30 : vector<128x1xi1>
    %32 = arith.andi %31, %25 : vector<128x1xi1>
    %33 = vector.broadcast %21 : i32 to vector<128x1xi32>
    %34 = arith.addi %23, %33 : vector<128x1xi32>
    %35 = arith.select %32, %34, %23 : vector<128x1xi1>, vector<128x1xi32>
    %c1_i32_30 = arith.constant 1 : i32
    %36 = vector.broadcast %c1_i32_30 : i32 to vector<128x1xi32>
    %37 = arith.cmpi sge, %35, %36 : vector<128x1xi32>
    %c15_i32 = arith.constant 15 : i32
    %38 = vector.broadcast %c15_i32 : i32 to vector<128x1xi32>
    %39 = arith.cmpi slt, %35, %38 : vector<128x1xi32>
    %c0_i32_31 = arith.constant 0 : i32
    %c2_i32_32 = arith.constant 2 : i32
    %40 = arith.addi %c0_i32_31, %c2_i32_32 : i32
    %c1_i32_33 = arith.constant 1 : i32
    scf.for %arg18 = %c0_i32_31 to %40 step %c1_i32_33  : i32 {
      %c128_i32 = arith.constant 128 : i32
      %87 = arith.muli %arg18, %c128_i32 : i32
      %c128_i32_63 = arith.constant 128 : i32
      %88 = arith.minsi %87, %c128_i32_63 : i32
      %89 = tpu.assume_multiple %88, 128 : i32
      %90 = arith.index_cast %89 : i32 to index
      %c0_64 = arith.constant 0 : index
      %91 = vector.load %arg11[%90, %c0_64] : memref<304x64xf32, #tpu.memory_space<vmem>>, vector<176x64xf32>
      %c0_65 = arith.constant 0 : index
      %c0_66 = arith.constant 0 : index
      %92 = vector.load %arg14[%c0_65, %c0_66] : memref<176x128xf32, #tpu.memory_space<vmem>>, vector<176x64xf32>
      tpu.vector_store %arg14[%c0_65, %c0_66], %91 {strides = array<i32>} : memref<176x128xf32, #tpu.memory_space<vmem>>, vector<176x64xf32>,
      %c7 = arith.constant 7 : index
      %c0_67 = arith.constant 0 : index
      %93 = vector.load %arg14[%c7, %c0_67] : memref<176x128xf32, #tpu.memory_space<vmem>>, vector<128x64xf32>
      %cst_68 = arith.constant 0.000000e+00 : f32
      %94 = vector.shape_cast %37 : vector<128x1xi1> to vector<128x1xi1>
      %95 = vector.broadcast %94 : vector<128x1xi1> to vector<128x64xi1>
      %96 = vector.broadcast %cst_68 : f32 to vector<128x64xf32>
      %97 = arith.select %95, %93, %96 : vector<128x64xi1>, vector<128x64xf32>
      %98 = arith.truncf %97 : vector<128x64xf32> to vector<128x64xbf16>
      %c0_69 = arith.constant 0 : index
      %c0_70 = arith.constant 0 : index
      %99 = vector.load %arg15[%c0_69, %c0_70] : memref<128x640xbf16, #tpu.memory_space<vmem>>, vector<128x64xbf16>
      tpu.vector_store %arg15[%c0_69, %c0_70], %98 {strides = array<i32>} : memref<128x640xbf16, #tpu.memory_space<vmem>>, vector<128x64xbf16>,
      %c8 = arith.constant 8 : index
      %c0_71 = arith.constant 0 : index
      %100 = vector.load %arg14[%c8, %c0_71] : memref<176x128xf32, #tpu.memory_space<vmem>>, vector<128x64xf32>
      %101 = arith.truncf %100 : vector<128x64xf32> to vector<128x64xbf16>
      %c0_72 = arith.constant 0 : index
      %c64 = arith.constant 64 : index
      %102 = vector.load %arg15[%c0_72, %c64] : memref<128x640xbf16, #tpu.memory_space<vmem>>, vector<128x64xbf16>
      tpu.vector_store %arg15[%c0_72, %c64], %101 {strides = array<i32>} : memref<128x640xbf16, #tpu.memory_space<vmem>>, vector<128x64xbf16>,
      %c9 = arith.constant 9 : index
      %c0_73 = arith.constant 0 : index
      %103 = vector.load %arg14[%c9, %c0_73] : memref<176x128xf32, #tpu.memory_space<vmem>>, vector<128x64xf32>
      %cst_74 = arith.constant 0.000000e+00 : f32
      %104 = vector.shape_cast %39 : vector<128x1xi1> to vector<128x1xi1>
      %105 = vector.broadcast %104 : vector<128x1xi1> to vector<128x64xi1>
      %106 = vector.broadcast %cst_74 : f32 to vector<128x64xf32>
      %107 = arith.select %105, %103, %106 : vector<128x64xi1>, vector<128x64xf32>
      %108 = arith.truncf %107 : vector<128x64xf32> to vector<128x64xbf16>
      %c0_75 = arith.constant 0 : index
      %c128 = arith.constant 128 : index
      %109 = vector.load %arg15[%c0_75, %c128] : memref<128x640xbf16, #tpu.memory_space<vmem>>, vector<128x64xbf16>
      tpu.vector_store %arg15[%c0_75, %c128], %108 {strides = array<i32>} : memref<128x640xbf16, #tpu.memory_space<vmem>>, vector<128x64xbf16>,
      %c23 = arith.constant 23 : index
      %c0_76 = arith.constant 0 : index
      %110 = vector.load %arg14[%c23, %c0_76] : memref<176x128xf32, #tpu.memory_space<vmem>>, vector<128x64xf32>
      %cst_77 = arith.constant 0.000000e+00 : f32
      %111 = vector.shape_cast %37 : vector<128x1xi1> to vector<128x1xi1>
      %112 = vector.broadcast %111 : vector<128x1xi1> to vector<128x64xi1>
      %113 = vector.broadcast %cst_77 : f32 to vector<128x64xf32>
      %114 = arith.select %112, %110, %113 : vector<128x64xi1>, vector<128x64xf32>
      %115 = arith.truncf %114 : vector<128x64xf32> to vector<128x64xbf16>
      %c0_78 = arith.constant 0 : index
      %c192 = arith.constant 192 : index
      %116 = vector.load %arg15[%c0_78, %c192] : memref<128x640xbf16, #tpu.memory_space<vmem>>, vector<128x64xbf16>
      tpu.vector_store %arg15[%c0_78, %c192], %115 {strides = array<i32>} : memref<128x640xbf16, #tpu.memory_space<vmem>>, vector<128x64xbf16>,
      %c24 = arith.constant 24 : index
      %c0_79 = arith.constant 0 : index
      %117 = vector.load %arg14[%c24, %c0_79] : memref<176x128xf32, #tpu.memory_space<vmem>>, vector<128x64xf32>
      %118 = arith.truncf %117 : vector<128x64xf32> to vector<128x64xbf16>
      %c0_80 = arith.constant 0 : index
      %c256 = arith.constant 256 : index
      %119 = vector.load %arg15[%c0_80, %c256] : memref<128x640xbf16, #tpu.memory_space<vmem>>, vector<128x64xbf16>
      tpu.vector_store %arg15[%c0_80, %c256], %118 {strides = array<i32>} : memref<128x640xbf16, #tpu.memory_space<vmem>>, vector<128x64xbf16>,
      %c25 = arith.constant 25 : index
      %c0_81 = arith.constant 0 : index
      %120 = vector.load %arg14[%c25, %c0_81] : memref<176x128xf32, #tpu.memory_space<vmem>>, vector<128x64xf32>
      %cst_82 = arith.constant 0.000000e+00 : f32
      %121 = vector.shape_cast %39 : vector<128x1xi1> to vector<128x1xi1>
      %122 = vector.broadcast %121 : vector<128x1xi1> to vector<128x64xi1>
      %123 = vector.broadcast %cst_82 : f32 to vector<128x64xf32>
      %124 = arith.select %122, %120, %123 : vector<128x64xi1>, vector<128x64xf32>
      %125 = arith.truncf %124 : vector<128x64xf32> to vector<128x64xbf16>
      %c0_83 = arith.constant 0 : index
      %c320 = arith.constant 320 : index
      %126 = vector.load %arg15[%c0_83, %c320] : memref<128x640xbf16, #tpu.memory_space<vmem>>, vector<128x64xbf16>
      tpu.vector_store %arg15[%c0_83, %c320], %125 {strides = array<i32>} : memref<128x640xbf16, #tpu.memory_space<vmem>>, vector<128x64xbf16>,
      %c39 = arith.constant 39 : index
      %c0_84 = arith.constant 0 : index
      %127 = vector.load %arg14[%c39, %c0_84] : memref<176x128xf32, #tpu.memory_space<vmem>>, vector<128x64xf32>
      %cst_85 = arith.constant 0.000000e+00 : f32
      %128 = vector.shape_cast %37 : vector<128x1xi1> to vector<128x1xi1>
      %129 = vector.broadcast %128 : vector<128x1xi1> to vector<128x64xi1>
      %130 = vector.broadcast %cst_85 : f32 to vector<128x64xf32>
      %131 = arith.select %129, %127, %130 : vector<128x64xi1>, vector<128x64xf32>
      %132 = arith.truncf %131 : vector<128x64xf32> to vector<128x64xbf16>
      %c0_86 = arith.constant 0 : index
      %c384 = arith.constant 384 : index
      %133 = vector.load %arg15[%c0_86, %c384] : memref<128x640xbf16, #tpu.memory_space<vmem>>, vector<128x64xbf16>
      tpu.vector_store %arg15[%c0_86, %c384], %132 {strides = array<i32>} : memref<128x640xbf16, #tpu.memory_space<vmem>>, vector<128x64xbf16>,
      %c40 = arith.constant 40 : index
      %c0_87 = arith.constant 0 : index
      %134 = vector.load %arg14[%c40, %c0_87] : memref<176x128xf32, #tpu.memory_space<vmem>>, vector<128x64xf32>
      %135 = arith.truncf %134 : vector<128x64xf32> to vector<128x64xbf16>
      %c0_88 = arith.constant 0 : index
      %c448 = arith.constant 448 : index
      %136 = vector.load %arg15[%c0_88, %c448] : memref<128x640xbf16, #tpu.memory_space<vmem>>, vector<128x64xbf16>
      tpu.vector_store %arg15[%c0_88, %c448], %135 {strides = array<i32>} : memref<128x640xbf16, #tpu.memory_space<vmem>>, vector<128x64xbf16>,
      %c41 = arith.constant 41 : index
      %c0_89 = arith.constant 0 : index
      %137 = vector.load %arg14[%c41, %c0_89] : memref<176x128xf32, #tpu.memory_space<vmem>>, vector<128x64xf32>
      %cst_90 = arith.constant 0.000000e+00 : f32
      %138 = vector.shape_cast %39 : vector<128x1xi1> to vector<128x1xi1>
      %139 = vector.broadcast %138 : vector<128x1xi1> to vector<128x64xi1>
      %140 = vector.broadcast %cst_90 : f32 to vector<128x64xf32>
      %141 = arith.select %139, %137, %140 : vector<128x64xi1>, vector<128x64xf32>
      %142 = arith.truncf %141 : vector<128x64xf32> to vector<128x64xbf16>
      %c0_91 = arith.constant 0 : index
      %c512 = arith.constant 512 : index
      %143 = vector.load %arg15[%c0_91, %c512] : memref<128x640xbf16, #tpu.memory_space<vmem>>, vector<128x64xbf16>
      tpu.vector_store %arg15[%c0_91, %c512], %142 {strides = array<i32>} : memref<128x640xbf16, #tpu.memory_space<vmem>>, vector<128x64xbf16>,
      %c0_92 = arith.constant 0 : index
      %c0_93 = arith.constant 0 : index
      %144 = vector.load %arg15[%c0_92, %c0_93] : memref<128x640xbf16, #tpu.memory_space<vmem>>, vector<128x640xbf16>
      %c0_94 = arith.constant 0 : index
      %c0_95 = arith.constant 0 : index
      %145 = vector.load %arg4[%c0_94, %c0_95] : memref<640x128xbf16, #tpu.memory_space<vmem>>, vector<640x128xbf16>
      %cst_96 = arith.constant dense<0.000000e+00> : vector<128x128xf32>
      %146 = tpu.matmul %144, %145, %cst_96 {dimension_numbers = #tpu.dot_dimension_numbers<[1], [0], [0], [1], [0, 0, 1, 1], [], []>} : vector<128x640xbf16>, vector<640x128xbf16>, vector<128x128xf32> -> vector<128x128xf32>
      %147 = vector.broadcast %18 : vector<1x128xf32> to vector<128x128xf32>
      %148 = arith.addf %146, %147 : vector<128x128xf32>
      %cst_97 = arith.constant 5.000000e-02 : f32
      %149 = vector.broadcast %cst_97 : f32 to vector<128x128xf32>
      %150 = arith.mulf %149, %148 : vector<128x128xf32>
      %151 = arith.maximumf %148, %150 : vector<128x128xf32>
      %c24_i32 = arith.constant 24 : i32
      %152 = arith.addi %c24_i32, %89 : i32
      %153 = tpu.assume_multiple %152, 8 : i32
      %154 = arith.index_cast %153 : i32 to index
      %c0_98 = arith.constant 0 : index
      %155 = vector.load %arg12[%154, %c0_98] : memref<304x128xf32, #tpu.memory_space<vmem>>, vector<128x128xf32>
      tpu.vector_store %arg12[%154, %c0_98], %151 {strides = array<i32>} : memref<304x128xf32, #tpu.memory_space<vmem>>, vector<128x128xf32>,
    }
    %c2_i32_34 = arith.constant 2 : i32
    %c0_35 = arith.constant 0 : index
    %c0_36 = arith.constant 0 : index
    %41 = vector.load %arg7[%c0_35, %c0_36] : memref<1x64xf32, #tpu.memory_space<vmem>>, vector<1x64xf32>
    %42 = tpu.iota {dimensions = array<i32: 0>} : vector<128x1xi32>
    %c16_i32_37 = arith.constant 16 : i32
    %c0_i32_38 = arith.constant 0 : i32
    %43 = arith.cmpi eq, %c16_i32_37, %c0_i32_38 : i32
    %c1_i32_39 = arith.constant 1 : i32
    %44 = arith.select %43, %c1_i32_39, %c16_i32_37 : i32
    %45 = vector.broadcast %44 : i32 to vector<128x1xi32>
    %46 = arith.remsi %42, %45 : vector<128x1xi32>
    %c0_i32_40 = arith.constant 0 : i32
    %47 = vector.broadcast %c0_i32_40 : i32 to vector<128x1xi32>
    %48 = arith.cmpi ne, %46, %47 : vector<128x1xi32>
    %c0_i32_41 = arith.constant 0 : i32
    %49 = vector.broadcast %c0_i32_41 : i32 to vector<128x1xi32>
    %50 = arith.cmpi slt, %46, %49 : vector<128x1xi32>
    %c0_i32_42 = arith.constant 0 : i32
    %51 = arith.cmpi slt, %44, %c0_i32_42 : i32
    %52 = vector.broadcast %51 : i1 to vector<128x1xi1>
    %53 = vector.broadcast %52 : vector<128x1xi1> to vector<128x1xi1>
    %54 = arith.xori %50, %53 : vector<128x1xi1>
    %55 = arith.andi %54, %48 : vector<128x1xi1>
    %56 = vector.broadcast %44 : i32 to vector<128x1xi32>
    %57 = arith.addi %46, %56 : vector<128x1xi32>
    %58 = arith.select %55, %57, %46 : vector<128x1xi1>, vector<128x1xi32>
    %c1_i32_43 = arith.constant 1 : i32
    %59 = vector.broadcast %c1_i32_43 : i32 to vector<128x1xi32>
    %60 = arith.cmpi sge, %58, %59 : vector<128x1xi32>
    %c15_i32_44 = arith.constant 15 : i32
    %61 = vector.broadcast %c15_i32_44 : i32 to vector<128x1xi32>
    %62 = arith.cmpi slt, %58, %61 : vector<128x1xi32>
    %c0_i32_45 = arith.constant 0 : i32
    %c2_i32_46 = arith.constant 2 : i32
    %63 = arith.addi %c0_i32_45, %c2_i32_46 : i32
    %c1_i32_47 = arith.constant 1 : i32
    scf.for %arg18 = %c0_i32_45 to %63 step %c1_i32_47  : i32 {
      %c128_i32 = arith.constant 128 : i32
      %87 = arith.muli %arg18, %c128_i32 : i32
      %c128_i32_63 = arith.constant 128 : i32
      %88 = arith.minsi %87, %c128_i32_63 : i32
      %89 = tpu.assume_multiple %88, 128 : i32
      %90 = arith.index_cast %89 : i32 to index
      %c0_64 = arith.constant 0 : index
      %91 = vector.load %arg12[%90, %c0_64] : memref<304x128xf32, #tpu.memory_space<vmem>>, vector<176x128xf32>
      %c0_65 = arith.constant 0 : index
      %c0_66 = arith.constant 0 : index
      %92 = vector.load %arg14[%c0_65, %c0_66] : memref<176x128xf32, #tpu.memory_space<vmem>>, vector<176x128xf32>
      tpu.vector_store %arg14[%c0_65, %c0_66], %91 {strides = array<i32>} : memref<176x128xf32, #tpu.memory_space<vmem>>, vector<176x128xf32>,
      %c7 = arith.constant 7 : index
      %c0_67 = arith.constant 0 : index
      %93 = vector.load %arg14[%c7, %c0_67] : memref<176x128xf32, #tpu.memory_space<vmem>>, vector<128x128xf32>
      %cst_68 = arith.constant 0.000000e+00 : f32
      %94 = vector.shape_cast %60 : vector<128x1xi1> to vector<128x1xi1>
      %95 = vector.broadcast %94 : vector<128x1xi1> to vector<128x128xi1>
      %96 = vector.broadcast %cst_68 : f32 to vector<128x128xf32>
      %97 = arith.select %95, %93, %96 : vector<128x128xi1>, vector<128x128xf32>
      %98 = arith.truncf %97 : vector<128x128xf32> to vector<128x128xbf16>
      %c0_69 = arith.constant 0 : index
      %c0_70 = arith.constant 0 : index
      %99 = vector.load %arg16[%c0_69, %c0_70] : memref<128x1152xbf16, #tpu.memory_space<vmem>>, vector<128x128xbf16>
      tpu.vector_store %arg16[%c0_69, %c0_70], %98 {strides = array<i32>} : memref<128x1152xbf16, #tpu.memory_space<vmem>>, vector<128x128xbf16>,
      %c8 = arith.constant 8 : index
      %c0_71 = arith.constant 0 : index
      %100 = vector.load %arg14[%c8, %c0_71] : memref<176x128xf32, #tpu.memory_space<vmem>>, vector<128x128xf32>
      %101 = arith.truncf %100 : vector<128x128xf32> to vector<128x128xbf16>
      %c0_72 = arith.constant 0 : index
      %c128 = arith.constant 128 : index
      %102 = vector.load %arg16[%c0_72, %c128] : memref<128x1152xbf16, #tpu.memory_space<vmem>>, vector<128x128xbf16>
      tpu.vector_store %arg16[%c0_72, %c128], %101 {strides = array<i32>} : memref<128x1152xbf16, #tpu.memory_space<vmem>>, vector<128x128xbf16>,
      %c9 = arith.constant 9 : index
      %c0_73 = arith.constant 0 : index
      %103 = vector.load %arg14[%c9, %c0_73] : memref<176x128xf32, #tpu.memory_space<vmem>>, vector<128x128xf32>
      %cst_74 = arith.constant 0.000000e+00 : f32
      %104 = vector.shape_cast %62 : vector<128x1xi1> to vector<128x1xi1>
      %105 = vector.broadcast %104 : vector<128x1xi1> to vector<128x128xi1>
      %106 = vector.broadcast %cst_74 : f32 to vector<128x128xf32>
      %107 = arith.select %105, %103, %106 : vector<128x128xi1>, vector<128x128xf32>
      %108 = arith.truncf %107 : vector<128x128xf32> to vector<128x128xbf16>
      %c0_75 = arith.constant 0 : index
      %c256 = arith.constant 256 : index
      %109 = vector.load %arg16[%c0_75, %c256] : memref<128x1152xbf16, #tpu.memory_space<vmem>>, vector<128x128xbf16>
      tpu.vector_store %arg16[%c0_75, %c256], %108 {strides = array<i32>} : memref<128x1152xbf16, #tpu.memory_space<vmem>>, vector<128x128xbf16>,
      %c23 = arith.constant 23 : index
      %c0_76 = arith.constant 0 : index
      %110 = vector.load %arg14[%c23, %c0_76] : memref<176x128xf32, #tpu.memory_space<vmem>>, vector<128x128xf32>
      %cst_77 = arith.constant 0.000000e+00 : f32
      %111 = vector.shape_cast %60 : vector<128x1xi1> to vector<128x1xi1>
      %112 = vector.broadcast %111 : vector<128x1xi1> to vector<128x128xi1>
      %113 = vector.broadcast %cst_77 : f32 to vector<128x128xf32>
      %114 = arith.select %112, %110, %113 : vector<128x128xi1>, vector<128x128xf32>
      %115 = arith.truncf %114 : vector<128x128xf32> to vector<128x128xbf16>
      %c0_78 = arith.constant 0 : index
      %c384 = arith.constant 384 : index
      %116 = vector.load %arg16[%c0_78, %c384] : memref<128x1152xbf16, #tpu.memory_space<vmem>>, vector<128x128xbf16>
      tpu.vector_store %arg16[%c0_78, %c384], %115 {strides = array<i32>} : memref<128x1152xbf16, #tpu.memory_space<vmem>>, vector<128x128xbf16>,
      %c24 = arith.constant 24 : index
      %c0_79 = arith.constant 0 : index
      %117 = vector.load %arg14[%c24, %c0_79] : memref<176x128xf32, #tpu.memory_space<vmem>>, vector<128x128xf32>
      %118 = arith.truncf %117 : vector<128x128xf32> to vector<128x128xbf16>
      %c0_80 = arith.constant 0 : index
      %c512 = arith.constant 512 : index
      %119 = vector.load %arg16[%c0_80, %c512] : memref<128x1152xbf16, #tpu.memory_space<vmem>>, vector<128x128xbf16>
      tpu.vector_store %arg16[%c0_80, %c512], %118 {strides = array<i32>} : memref<128x1152xbf16, #tpu.memory_space<vmem>>, vector<128x128xbf16>,
      %c25 = arith.constant 25 : index
      %c0_81 = arith.constant 0 : index
      %120 = vector.load %arg14[%c25, %c0_81] : memref<176x128xf32, #tpu.memory_space<vmem>>, vector<128x128xf32>
      %cst_82 = arith.constant 0.000000e+00 : f32
      %121 = vector.shape_cast %62 : vector<128x1xi1> to vector<128x1xi1>
      %122 = vector.broadcast %121 : vector<128x1xi1> to vector<128x128xi1>
      %123 = vector.broadcast %cst_82 : f32 to vector<128x128xf32>
      %124 = arith.select %122, %120, %123 : vector<128x128xi1>, vector<128x128xf32>
      %125 = arith.truncf %124 : vector<128x128xf32> to vector<128x128xbf16>
      %c0_83 = arith.constant 0 : index
      %c640 = arith.constant 640 : index
      %126 = vector.load %arg16[%c0_83, %c640] : memref<128x1152xbf16, #tpu.memory_space<vmem>>, vector<128x128xbf16>
      tpu.vector_store %arg16[%c0_83, %c640], %125 {strides = array<i32>} : memref<128x1152xbf16, #tpu.memory_space<vmem>>, vector<128x128xbf16>,
      %c39 = arith.constant 39 : index
      %c0_84 = arith.constant 0 : index
      %127 = vector.load %arg14[%c39, %c0_84] : memref<176x128xf32, #tpu.memory_space<vmem>>, vector<128x128xf32>
      %cst_85 = arith.constant 0.000000e+00 : f32
      %128 = vector.shape_cast %60 : vector<128x1xi1> to vector<128x1xi1>
      %129 = vector.broadcast %128 : vector<128x1xi1> to vector<128x128xi1>
      %130 = vector.broadcast %cst_85 : f32 to vector<128x128xf32>
      %131 = arith.select %129, %127, %130 : vector<128x128xi1>, vector<128x128xf32>
      %132 = arith.truncf %131 : vector<128x128xf32> to vector<128x128xbf16>
      %c0_86 = arith.constant 0 : index
      %c768 = arith.constant 768 : index
      %133 = vector.load %arg16[%c0_86, %c768] : memref<128x1152xbf16, #tpu.memory_space<vmem>>, vector<128x128xbf16>
      tpu.vector_store %arg16[%c0_86, %c768], %132 {strides = array<i32>} : memref<128x1152xbf16, #tpu.memory_space<vmem>>, vector<128x128xbf16>,
      %c40 = arith.constant 40 : index
      %c0_87 = arith.constant 0 : index
      %134 = vector.load %arg14[%c40, %c0_87] : memref<176x128xf32, #tpu.memory_space<vmem>>, vector<128x128xf32>
      %135 = arith.truncf %134 : vector<128x128xf32> to vector<128x128xbf16>
      %c0_88 = arith.constant 0 : index
      %c896 = arith.constant 896 : index
      %136 = vector.load %arg16[%c0_88, %c896] : memref<128x1152xbf16, #tpu.memory_space<vmem>>, vector<128x128xbf16>
      tpu.vector_store %arg16[%c0_88, %c896], %135 {strides = array<i32>} : memref<128x1152xbf16, #tpu.memory_space<vmem>>, vector<128x128xbf16>,
      %c41 = arith.constant 41 : index
      %c0_89 = arith.constant 0 : index
      %137 = vector.load %arg14[%c41, %c0_89] : memref<176x128xf32, #tpu.memory_space<vmem>>, vector<128x128xf32>
      %cst_90 = arith.constant 0.000000e+00 : f32
      %138 = vector.shape_cast %62 : vector<128x1xi1> to vector<128x1xi1>
      %139 = vector.broadcast %138 : vector<128x1xi1> to vector<128x128xi1>
      %140 = vector.broadcast %cst_90 : f32 to vector<128x128xf32>
      %141 = arith.select %139, %137, %140 : vector<128x128xi1>, vector<128x128xf32>
      %142 = arith.truncf %141 : vector<128x128xf32> to vector<128x128xbf16>
      %c0_91 = arith.constant 0 : index
      %c1024 = arith.constant 1024 : index
      %143 = vector.load %arg16[%c0_91, %c1024] : memref<128x1152xbf16, #tpu.memory_space<vmem>>, vector<128x128xbf16>
      tpu.vector_store %arg16[%c0_91, %c1024], %142 {strides = array<i32>} : memref<128x1152xbf16, #tpu.memory_space<vmem>>, vector<128x128xbf16>,
      %c0_92 = arith.constant 0 : index
      %c0_93 = arith.constant 0 : index
      %144 = vector.load %arg16[%c0_92, %c0_93] : memref<128x1152xbf16, #tpu.memory_space<vmem>>, vector<128x1152xbf16>
      %c0_94 = arith.constant 0 : index
      %c0_95 = arith.constant 0 : index
      %145 = vector.load %arg6[%c0_94, %c0_95] : memref<1152x64xbf16, #tpu.memory_space<vmem>>, vector<1152x64xbf16>
      %cst_96 = arith.constant dense<0.000000e+00> : vector<128x64xf32>
      %146 = tpu.matmul %144, %145, %cst_96 {dimension_numbers = #tpu.dot_dimension_numbers<[1], [0], [0], [1], [0, 0, 1, 1], [], []>} : vector<128x1152xbf16>, vector<1152x64xbf16>, vector<128x64xf32> -> vector<128x64xf32>
      %147 = vector.broadcast %41 : vector<1x64xf32> to vector<128x64xf32>
      %148 = arith.addf %146, %147 : vector<128x64xf32>
      %cst_97 = arith.constant 5.000000e-02 : f32
      %149 = vector.broadcast %cst_97 : f32 to vector<128x64xf32>
      %150 = arith.mulf %149, %148 : vector<128x64xf32>
      %151 = arith.maximumf %148, %150 : vector<128x64xf32>
      %c24_i32 = arith.constant 24 : i32
      %152 = arith.addi %c24_i32, %89 : i32
      %153 = tpu.assume_multiple %152, 8 : i32
      %154 = arith.index_cast %153 : i32 to index
      %c0_98 = arith.constant 0 : index
      %155 = vector.load %arg13[%154, %c0_98] : memref<304x64xf32, #tpu.memory_space<vmem>>, vector<128x64xf32>
      tpu.vector_store %arg13[%154, %c0_98], %151 {strides = array<i32>} : memref<304x64xf32, #tpu.memory_space<vmem>>, vector<128x64xf32>,
    }
    %c2_i32_48 = arith.constant 2 : i32
    %c0_49 = arith.constant 0 : index
    %c0_50 = arith.constant 0 : index
    %64 = vector.load %arg9[%c0_49, %c0_50] : memref<1x128xf32, #tpu.memory_space<vmem>>, vector<1x128xf32>
    %65 = tpu.iota {dimensions = array<i32: 0>} : vector<128x1xi32>
    %c16_i32_51 = arith.constant 16 : i32
    %c0_i32_52 = arith.constant 0 : i32
    %66 = arith.cmpi eq, %c16_i32_51, %c0_i32_52 : i32
    %c1_i32_53 = arith.constant 1 : i32
    %67 = arith.select %66, %c1_i32_53, %c16_i32_51 : i32
    %68 = vector.broadcast %67 : i32 to vector<128x1xi32>
    %69 = arith.remsi %65, %68 : vector<128x1xi32>
    %c0_i32_54 = arith.constant 0 : i32
    %70 = vector.broadcast %c0_i32_54 : i32 to vector<128x1xi32>
    %71 = arith.cmpi ne, %69, %70 : vector<128x1xi32>
    %c0_i32_55 = arith.constant 0 : i32
    %72 = vector.broadcast %c0_i32_55 : i32 to vector<128x1xi32>
    %73 = arith.cmpi slt, %69, %72 : vector<128x1xi32>
    %c0_i32_56 = arith.constant 0 : i32
    %74 = arith.cmpi slt, %67, %c0_i32_56 : i32
    %75 = vector.broadcast %74 : i1 to vector<128x1xi1>
    %76 = vector.broadcast %75 : vector<128x1xi1> to vector<128x1xi1>
    %77 = arith.xori %73, %76 : vector<128x1xi1>
    %78 = arith.andi %77, %71 : vector<128x1xi1>
    %79 = vector.broadcast %67 : i32 to vector<128x1xi32>
    %80 = arith.addi %69, %79 : vector<128x1xi32>
    %81 = arith.select %78, %80, %69 : vector<128x1xi1>, vector<128x1xi32>
    %c1_i32_57 = arith.constant 1 : i32
    %82 = vector.broadcast %c1_i32_57 : i32 to vector<128x1xi32>
    %83 = arith.cmpi sge, %81, %82 : vector<128x1xi32>
    %c15_i32_58 = arith.constant 15 : i32
    %84 = vector.broadcast %c15_i32_58 : i32 to vector<128x1xi32>
    %85 = arith.cmpi slt, %81, %84 : vector<128x1xi32>
    %c0_i32_59 = arith.constant 0 : i32
    %c2_i32_60 = arith.constant 2 : i32
    %86 = arith.addi %c0_i32_59, %c2_i32_60 : i32
    %c1_i32_61 = arith.constant 1 : i32
    scf.for %arg18 = %c0_i32_59 to %86 step %c1_i32_61  : i32 {
      %c128_i32 = arith.constant 128 : i32
      %87 = arith.muli %arg18, %c128_i32 : i32
      %c128_i32_63 = arith.constant 128 : i32
      %88 = arith.minsi %87, %c128_i32_63 : i32
      %89 = tpu.assume_multiple %88, 128 : i32
      %90 = arith.index_cast %89 : i32 to index
      %c0_64 = arith.constant 0 : index
      %91 = vector.load %arg13[%90, %c0_64] : memref<304x64xf32, #tpu.memory_space<vmem>>, vector<176x64xf32>
      %c0_65 = arith.constant 0 : index
      %c0_66 = arith.constant 0 : index
      %92 = vector.load %arg14[%c0_65, %c0_66] : memref<176x128xf32, #tpu.memory_space<vmem>>, vector<176x64xf32>
      tpu.vector_store %arg14[%c0_65, %c0_66], %91 {strides = array<i32>} : memref<176x128xf32, #tpu.memory_space<vmem>>, vector<176x64xf32>,
      %c7 = arith.constant 7 : index
      %c0_67 = arith.constant 0 : index
      %93 = vector.load %arg14[%c7, %c0_67] : memref<176x128xf32, #tpu.memory_space<vmem>>, vector<128x64xf32>
      %cst_68 = arith.constant 0.000000e+00 : f32
      %94 = vector.shape_cast %83 : vector<128x1xi1> to vector<128x1xi1>
      %95 = vector.broadcast %94 : vector<128x1xi1> to vector<128x64xi1>
      %96 = vector.broadcast %cst_68 : f32 to vector<128x64xf32>
      %97 = arith.select %95, %93, %96 : vector<128x64xi1>, vector<128x64xf32>
      %98 = arith.truncf %97 : vector<128x64xf32> to vector<128x64xbf16>
      %c0_69 = arith.constant 0 : index
      %c0_70 = arith.constant 0 : index
      %99 = vector.load %arg17[%c0_69, %c0_70] : memref<128x640xbf16, #tpu.memory_space<vmem>>, vector<128x64xbf16>
      tpu.vector_store %arg17[%c0_69, %c0_70], %98 {strides = array<i32>} : memref<128x640xbf16, #tpu.memory_space<vmem>>, vector<128x64xbf16>,
      %c8 = arith.constant 8 : index
      %c0_71 = arith.constant 0 : index
      %100 = vector.load %arg14[%c8, %c0_71] : memref<176x128xf32, #tpu.memory_space<vmem>>, vector<128x64xf32>
      %101 = arith.truncf %100 : vector<128x64xf32> to vector<128x64xbf16>
      %c0_72 = arith.constant 0 : index
      %c64 = arith.constant 64 : index
      %102 = vector.load %arg17[%c0_72, %c64] : memref<128x640xbf16, #tpu.memory_space<vmem>>, vector<128x64xbf16>
      tpu.vector_store %arg17[%c0_72, %c64], %101 {strides = array<i32>} : memref<128x640xbf16, #tpu.memory_space<vmem>>, vector<128x64xbf16>,
      %c9 = arith.constant 9 : index
      %c0_73 = arith.constant 0 : index
      %103 = vector.load %arg14[%c9, %c0_73] : memref<176x128xf32, #tpu.memory_space<vmem>>, vector<128x64xf32>
      %cst_74 = arith.constant 0.000000e+00 : f32
      %104 = vector.shape_cast %85 : vector<128x1xi1> to vector<128x1xi1>
      %105 = vector.broadcast %104 : vector<128x1xi1> to vector<128x64xi1>
      %106 = vector.broadcast %cst_74 : f32 to vector<128x64xf32>
      %107 = arith.select %105, %103, %106 : vector<128x64xi1>, vector<128x64xf32>
      %108 = arith.truncf %107 : vector<128x64xf32> to vector<128x64xbf16>
      %c0_75 = arith.constant 0 : index
      %c128 = arith.constant 128 : index
      %109 = vector.load %arg17[%c0_75, %c128] : memref<128x640xbf16, #tpu.memory_space<vmem>>, vector<128x64xbf16>
      tpu.vector_store %arg17[%c0_75, %c128], %108 {strides = array<i32>} : memref<128x640xbf16, #tpu.memory_space<vmem>>, vector<128x64xbf16>,
      %c23 = arith.constant 23 : index
      %c0_76 = arith.constant 0 : index
      %110 = vector.load %arg14[%c23, %c0_76] : memref<176x128xf32, #tpu.memory_space<vmem>>, vector<128x64xf32>
      %cst_77 = arith.constant 0.000000e+00 : f32
      %111 = vector.shape_cast %83 : vector<128x1xi1> to vector<128x1xi1>
      %112 = vector.broadcast %111 : vector<128x1xi1> to vector<128x64xi1>
      %113 = vector.broadcast %cst_77 : f32 to vector<128x64xf32>
      %114 = arith.select %112, %110, %113 : vector<128x64xi1>, vector<128x64xf32>
      %115 = arith.truncf %114 : vector<128x64xf32> to vector<128x64xbf16>
      %c0_78 = arith.constant 0 : index
      %c192 = arith.constant 192 : index
      %116 = vector.load %arg17[%c0_78, %c192] : memref<128x640xbf16, #tpu.memory_space<vmem>>, vector<128x64xbf16>
      tpu.vector_store %arg17[%c0_78, %c192], %115 {strides = array<i32>} : memref<128x640xbf16, #tpu.memory_space<vmem>>, vector<128x64xbf16>,
      %c24 = arith.constant 24 : index
      %c0_79 = arith.constant 0 : index
      %117 = vector.load %arg14[%c24, %c0_79] : memref<176x128xf32, #tpu.memory_space<vmem>>, vector<128x64xf32>
      %118 = arith.truncf %117 : vector<128x64xf32> to vector<128x64xbf16>
      %c0_80 = arith.constant 0 : index
      %c256 = arith.constant 256 : index
      %119 = vector.load %arg17[%c0_80, %c256] : memref<128x640xbf16, #tpu.memory_space<vmem>>, vector<128x64xbf16>
      tpu.vector_store %arg17[%c0_80, %c256], %118 {strides = array<i32>} : memref<128x640xbf16, #tpu.memory_space<vmem>>, vector<128x64xbf16>,
      %c25 = arith.constant 25 : index
      %c0_81 = arith.constant 0 : index
      %120 = vector.load %arg14[%c25, %c0_81] : memref<176x128xf32, #tpu.memory_space<vmem>>, vector<128x64xf32>
      %cst_82 = arith.constant 0.000000e+00 : f32
      %121 = vector.shape_cast %85 : vector<128x1xi1> to vector<128x1xi1>
      %122 = vector.broadcast %121 : vector<128x1xi1> to vector<128x64xi1>
      %123 = vector.broadcast %cst_82 : f32 to vector<128x64xf32>
      %124 = arith.select %122, %120, %123 : vector<128x64xi1>, vector<128x64xf32>
      %125 = arith.truncf %124 : vector<128x64xf32> to vector<128x64xbf16>
      %c0_83 = arith.constant 0 : index
      %c320 = arith.constant 320 : index
      %126 = vector.load %arg17[%c0_83, %c320] : memref<128x640xbf16, #tpu.memory_space<vmem>>, vector<128x64xbf16>
      tpu.vector_store %arg17[%c0_83, %c320], %125 {strides = array<i32>} : memref<128x640xbf16, #tpu.memory_space<vmem>>, vector<128x64xbf16>,
      %c39 = arith.constant 39 : index
      %c0_84 = arith.constant 0 : index
      %127 = vector.load %arg14[%c39, %c0_84] : memref<176x128xf32, #tpu.memory_space<vmem>>, vector<128x64xf32>
      %cst_85 = arith.constant 0.000000e+00 : f32
      %128 = vector.shape_cast %83 : vector<128x1xi1> to vector<128x1xi1>
      %129 = vector.broadcast %128 : vector<128x1xi1> to vector<128x64xi1>
      %130 = vector.broadcast %cst_85 : f32 to vector<128x64xf32>
      %131 = arith.select %129, %127, %130 : vector<128x64xi1>, vector<128x64xf32>
      %132 = arith.truncf %131 : vector<128x64xf32> to vector<128x64xbf16>
      %c0_86 = arith.constant 0 : index
      %c384 = arith.constant 384 : index
      %133 = vector.load %arg17[%c0_86, %c384] : memref<128x640xbf16, #tpu.memory_space<vmem>>, vector<128x64xbf16>
      tpu.vector_store %arg17[%c0_86, %c384], %132 {strides = array<i32>} : memref<128x640xbf16, #tpu.memory_space<vmem>>, vector<128x64xbf16>,
      %c40 = arith.constant 40 : index
      %c0_87 = arith.constant 0 : index
      %134 = vector.load %arg14[%c40, %c0_87] : memref<176x128xf32, #tpu.memory_space<vmem>>, vector<128x64xf32>
      %135 = arith.truncf %134 : vector<128x64xf32> to vector<128x64xbf16>
      %c0_88 = arith.constant 0 : index
      %c448 = arith.constant 448 : index
      %136 = vector.load %arg17[%c0_88, %c448] : memref<128x640xbf16, #tpu.memory_space<vmem>>, vector<128x64xbf16>
      tpu.vector_store %arg17[%c0_88, %c448], %135 {strides = array<i32>} : memref<128x640xbf16, #tpu.memory_space<vmem>>, vector<128x64xbf16>,
      %c41 = arith.constant 41 : index
      %c0_89 = arith.constant 0 : index
      %137 = vector.load %arg14[%c41, %c0_89] : memref<176x128xf32, #tpu.memory_space<vmem>>, vector<128x64xf32>
      %cst_90 = arith.constant 0.000000e+00 : f32
      %138 = vector.shape_cast %85 : vector<128x1xi1> to vector<128x1xi1>
      %139 = vector.broadcast %138 : vector<128x1xi1> to vector<128x64xi1>
      %140 = vector.broadcast %cst_90 : f32 to vector<128x64xf32>
      %141 = arith.select %139, %137, %140 : vector<128x64xi1>, vector<128x64xf32>
      %142 = arith.truncf %141 : vector<128x64xf32> to vector<128x64xbf16>
      %c0_91 = arith.constant 0 : index
      %c512 = arith.constant 512 : index
      %143 = vector.load %arg17[%c0_91, %c512] : memref<128x640xbf16, #tpu.memory_space<vmem>>, vector<128x64xbf16>
      tpu.vector_store %arg17[%c0_91, %c512], %142 {strides = array<i32>} : memref<128x640xbf16, #tpu.memory_space<vmem>>, vector<128x64xbf16>,
      %c0_92 = arith.constant 0 : index
      %c0_93 = arith.constant 0 : index
      %144 = vector.load %arg17[%c0_92, %c0_93] : memref<128x640xbf16, #tpu.memory_space<vmem>>, vector<128x640xbf16>
      %c0_94 = arith.constant 0 : index
      %c0_95 = arith.constant 0 : index
      %145 = vector.load %arg8[%c0_94, %c0_95] : memref<640x128xbf16, #tpu.memory_space<vmem>>, vector<640x128xbf16>
      %cst_96 = arith.constant dense<0.000000e+00> : vector<128x128xf32>
      %146 = tpu.matmul %144, %145, %cst_96 {dimension_numbers = #tpu.dot_dimension_numbers<[1], [0], [0], [1], [0, 0, 1, 1], [], []>} : vector<128x640xbf16>, vector<640x128xbf16>, vector<128x128xf32> -> vector<128x128xf32>
      %147 = vector.broadcast %64 : vector<1x128xf32> to vector<128x128xf32>
      %148 = arith.addf %146, %147 : vector<128x128xf32>
      %149 = vector.extract_strided_slice %148 {offsets = [0, 0], sizes = [128, 8], strides = [1, 1]} : vector<128x128xf32> to vector<128x8xf32>
      %c0_97 = arith.constant 0 : index
      %150 = arith.index_cast %89 : i32 to index
      %c0_98 = arith.constant 0 : index
      %151 = vector.load %arg10[%c0_97, %150, %c0_98] : memref<1x256x8xf32, #tpu.memory_space<vmem>>, vector<1x128x8xf32>
      %152 = vector.shape_cast %151 : vector<1x128x8xf32> to vector<128x8xf32>
      %153 = vector.shape_cast %149 : vector<128x8xf32> to vector<1x128x8xf32>
      tpu.vector_store %arg10[%c0_97, %150, %c0_98], %153 {strides = array<i32>} : memref<1x256x8xf32, #tpu.memory_space<vmem>>, vector<1x128x8xf32>,
    }
    %c2_i32_62 = arith.constant 2 : i32
    return
  }
  func.func @transform_0(%arg0: i32) -> (i32, i32, i32) {
    %c0_i32 = arith.constant 0 : i32
    %c0_i32_0 = arith.constant 0 : i32
    %c0_i32_1 = arith.constant 0 : i32
    return %arg0, %c0_i32, %c0_i32_0 : i32, i32, i32
  }
  func.func @transform_1(%arg0: i32) -> (i32, i32) {
    %c0_i32 = arith.constant 0 : i32
    %c0_i32_0 = arith.constant 0 : i32
    %c0_i32_1 = arith.constant 0 : i32
    return %c0_i32, %c0_i32_0 : i32, i32
  }
  func.func @transform_2(%arg0: i32) -> (i32, i32) {
    %c0_i32 = arith.constant 0 : i32
    %c0_i32_0 = arith.constant 0 : i32
    %c0_i32_1 = arith.constant 0 : i32
    return %c0_i32, %c0_i32_0 : i32, i32
  }
  func.func @transform_3(%arg0: i32) -> (i32, i32) {
    %c0_i32 = arith.constant 0 : i32
    %c0_i32_0 = arith.constant 0 : i32
    %c0_i32_1 = arith.constant 0 : i32
    return %c0_i32, %c0_i32_0 : i32, i32
  }
  func.func @transform_4(%arg0: i32) -> (i32, i32) {
    %c0_i32 = arith.constant 0 : i32
    %c0_i32_0 = arith.constant 0 : i32
    %c0_i32_1 = arith.constant 0 : i32
    return %c0_i32, %c0_i32_0 : i32, i32
  }
  func.func @transform_5(%arg0: i32) -> (i32, i32) {
    %c0_i32 = arith.constant 0 : i32
    %c0_i32_0 = arith.constant 0 : i32
    %c0_i32_1 = arith.constant 0 : i32
    return %c0_i32, %c0_i32_0 : i32, i32
  }
  func.func @transform_6(%arg0: i32) -> (i32, i32) {
    %c0_i32 = arith.constant 0 : i32
    %c0_i32_0 = arith.constant 0 : i32
    %c0_i32_1 = arith.constant 0 : i32
    return %c0_i32, %c0_i32_0 : i32, i32
  }
  func.func @transform_7(%arg0: i32) -> (i32, i32) {
    %c0_i32 = arith.constant 0 : i32
    %c0_i32_0 = arith.constant 0 : i32
    %c0_i32_1 = arith.constant 0 : i32
    return %c0_i32, %c0_i32_0 : i32, i32
  }
  func.func @transform_8(%arg0: i32) -> (i32, i32) {
    %c0_i32 = arith.constant 0 : i32
    %c0_i32_0 = arith.constant 0 : i32
    %c0_i32_1 = arith.constant 0 : i32
    return %c0_i32, %c0_i32_0 : i32, i32
  }
  func.func @transform_9(%arg0: i32) -> (i32, i32, i32) {
    %c0_i32 = arith.constant 0 : i32
    %c0_i32_0 = arith.constant 0 : i32
    %c0_i32_1 = arith.constant 0 : i32
    return %arg0, %c0_i32, %c0_i32_0 : i32, i32, i32
  }
}

</mosaic_0001>

<bundles_post_ra>
// kernel: image_input_forward_impl.1
= control target key start
LH: loop header
LB: loop body
LE: loop exit
PB: predicated region body
PF: predicated region fallthrough
CT: control target
= control target key end

     0   :  { %s6707_s30 = smov 0   ;;  %s8736_s0 = inlined_call_operand.vmem [shape: bf16[2,256,16], index: 0, kind: input, shape index: {}]   ;;  %s8737_s1 = inlined_call_operand.vmem [shape: bf16[16,64], index: 1, kind: input, shape index: {}]   ;;  %s8738_s2 = inlined_call_operand.vmem [shape: f32[1,64], index: 2, kind: input, shape index: {}]   ;;  %s8739_s3 = inlined_call_operand.vmem [shape: bf16[640,128], index: 3, kind: input, shape index: {}]   ;;  %s8740_s4 = inlined_call_operand.vmem [shape: f32[1,128], index: 4, kind: input, shape index: {}]   ;;  %s8741_s5 = inlined_call_operand.vmem [shape: bf16[1152,64], index: 5, kind: input, shape index: {}]   ;;  %s8742_s6 = inlined_call_operand.vmem [shape: f32[1,64], index: 6, kind: input, shape index: {}]   ;;  %s8743_s7 = inlined_call_operand.vmem [shape: bf16[640,128], index: 7, kind: input, shape index: {}]   ;;  %s8744_s8 = inlined_call_operand.vmem [shape: f32[1,128], index: 8, kind: input, shape index: {}]   ;;  %s8745_s9 = inlined_call_operand.vmem [shape: f32[2,256,8], index: 9, kind: output, shape index: {}]  }
   0x1 LB: > { %s5290_s10 = sadd.s32 4294967295, %s6634_s30   ;;  %p5294_p0 = scmp.ge.s32.totalorder %s6634_s30, 1  ;;  %s6634_s30 = sphi %s6707_s30, %s19_s30  }
   0x2   : > { %p287_p1 = scmp.lt.s32.totalorder %s6634_s30, 3 }
   0x4   : > { %p288_p2 = pnand %p5294_p0, %p287_p1 }
   0x5   : > { %p6715_p3 = scmp.lt.s32.totalorder (!%p288_p2), %s5290_s10, 1  ;;  %vm8747_vm0 = vcmask (!%p288_p2), 523264   ;;  %v6722_v0 = vld [vmem:[%s8738_s2] ss:$0 sm:$0xff] (!%p288_p2)  ;;  %vm8746_vm1 = vcmask (!%p288_p2), 1048064   ;;  %v6652_v1 = vmov (!%p288_p2), 0.0  }
   0x6   : > { %291 = sbr.rel (%p288_p2) target bundleno = 1552 (0x610), region = 56  ;;  %335 = vst.msk [vmem:[#allocation2] sm:$0xff] (!%p288_p2), %vm8747_vm0, %v6652_v1  ;;  %336 = vst.msk [vmem:[#allocation2 + $0x8] sm:$0xff] (!%p288_p2), %vm8747_vm0, %v6652_v1  ;;  %v6653_v2 = vmov (!%p288_p2), 0   ;;  %s6764_s22 = smov (!%p288_p2), 0  }
   0x7   : > { %337 = vst.msk [vmem:[#allocation2 + $0x10] sm:$0xff] (!%p288_p2), %vm8747_vm0, %v6652_v1  ;;  %338 = vst.msk [vmem:[#allocation2 + $0x118] sm:$0xff] (!%p288_p2), %vm8747_vm0, %v6652_v1 }
   0x8   : > { %339 = vst.msk [vmem:[#allocation2 + $0x120] sm:$0xff] (!%p288_p2), %vm8747_vm0, %v6652_v1  ;;  %340 = vst.msk [vmem:[#allocation2 + $0x128] sm:$0xff] (!%p288_p2), %vm8747_vm0, %v6652_v1 }
   0x9   : > { %341 = vst [vmem:[#allocation3] sm:$0xff] (!%p288_p2), %v6652_v1  ;;  %342 = vst [vmem:[#allocation3 + $0x8] sm:$0xff] (!%p288_p2), %v6652_v1 }
   0xa   : > { %343 = vst [vmem:[#allocation3 + $0x10] sm:$0xff] (!%p288_p2), %v6652_v1  ;;  %344 = vst [vmem:[#allocation3 + $0x118] sm:$0xff] (!%p288_p2), %v6652_v1 }
   0xb   : > { %345 = vst [vmem:[#allocation3 + $0x120] sm:$0xff] (!%p288_p2), %v6652_v1  ;;  %346 = vst [vmem:[#allocation3 + $0x128] sm:$0xff] (!%p288_p2), %v6652_v1 }
   0xc   : > { %347 = vst.msk [vmem:[#allocation4] sm:$0xff] (!%p288_p2), %vm8747_vm0, %v6652_v1  ;;  %348 = vst.msk [vmem:[#allocation4 + $0x8] sm:$0xff] (!%p288_p2), %vm8747_vm0, %v6652_v1 }
   0xd   : > { %349 = vst.msk [vmem:[#allocation4 + $0x10] sm:$0xff] %vm8747_vm0, %v6652_v1  ;;  %350 = vst.msk [vmem:[#allocation4 + $0x118] sm:$0xff] %vm8747_vm0, %v6652_v1  ;;  %s9080_s10 = smov (!%p6715_p3, %s5290_s10), 1 }
   0xe   : > { %351 = vst.msk [vmem:[#allocation4 + $0x120] sm:$0xff] %vm8747_vm0, %v6652_v1  ;;  %352 = vst.msk [vmem:[#allocation4 + $0x128] sm:$0xff] %vm8747_vm0, %v6652_v1  ;;  %s5527_s14 = sshll.u32 %s9080_s10, 7  ;;  %s5528_s15 = sshll.u32 %s9080_s10, 8 }
   0xf   : > { %354 = vst.msk [vmem:[#allocation6 + $0x20] sm:$0xff] %vm8746_vm1, %v6653_v2  ;;  %355 = vst.msk [vmem:[#allocation6 + $0x48] sm:$0xff] %vm8746_vm1, %v6653_v2  ;;  %s6757_s18 = scalar_lea.vmem %s8736_s0, %s5527_s14  ;;  %s6762_s21 = scalar_lea.vmem %s8745_s9, %s5528_s15 }
  0x10   : > { %356 = vst.msk [vmem:[#allocation6 + $0x70] sm:$0xff] %vm8746_vm1, %v6653_v2  ;;  %357 = vst.msk [vmem:[#allocation6 + $0x98] sm:$0xff] %vm8746_vm1, %v6653_v2 }
  0x11   : > { %358 = vst.msk [vmem:[#allocation6 + $0xc0] sm:$0xff] %vm8746_vm1, %v6653_v2  ;;  %359 = vst.msk [vmem:[#allocation6 + $0xe8] sm:$0xff] %vm8746_vm1, %v6653_v2 }
  0x12   : > { %360 = vst.msk [vmem:[#allocation6 + $0x110] sm:$0xff] %vm8746_vm1, %v6653_v2  ;;  %361 = vst.msk [vmem:[#allocation6 + $0x138] sm:$0xff] %vm8746_vm1, %v6653_v2 }
  0x13   : > { %362 = vst.msk [vmem:[#allocation8 + $0x20] sm:$0xff] %vm8746_vm1, %v6653_v2  ;;  %363 = vst.msk [vmem:[#allocation8 + $0x48] sm:$0xff] %vm8746_vm1, %v6653_v2 }
  0x14   : > { %364 = vst.msk [vmem:[#allocation8 + $0x70] sm:$0xff] %vm8746_vm1, %v6653_v2  ;;  %365 = vst.msk [vmem:[#allocation8 + $0x98] sm:$0xff] %vm8746_vm1, %v6653_v2 }
  0x15   : > { %366 = vst.msk [vmem:[#allocation8 + $0xc0] sm:$0xff] %vm8746_vm1, %v6653_v2  ;;  %367 = vst.msk [vmem:[#allocation8 + $0xe8] sm:$0xff] %vm8746_vm1, %v6653_v2 }
  0x16   : > { %368 = vst.msk [vmem:[#allocation8 + $0x110] sm:$0xff] %vm8746_vm1, %v6653_v2  ;;  %369 = vst.msk [vmem:[#allocation8 + $0x138] sm:$0xff] %vm8746_vm1, %v6653_v2 }
  0x17 LB: >> { %v6451_v3 = vld [vmem:[%s8737_s1] sm:$0xff]   ;;  %s5299_s25 = sshll.u32 %s6638_s22, 7  ;;  %vm454_vm2 = vcmask 130048   ;;  %s376_s22 = sadd.s32 1, %s6638_s22   ;;  %s6638_s22 = sphi %s6764_s22, %s376_s22  }
  0x18   : >> { %6242 = vmatprep.subr.bf16.mxu0 %v6451_v3  ;;  %6356 = vmatprep.subr.bf16.mxu1 %v6451_v3  ;;  %p378_p4 = scmp.lt.s32.totalorder %s5299_s25, 128  ;;  %p373_p5 = scmp.ge.s32.totalorder %s376_s22, 2  }
  0x19   : >> { %6243 = vmatpush3.bf16.msra.mxu0 %v6451_v3  ;;  %6357 = vmatpush3.bf16.msra.mxu1 %v6451_v3  ;;  %s6908_s12 = smov (%p373_p5), 0  }
  0x1a   : >> { %s9082_s25 = smov (!%p378_p4, %s5299_s25), 128 }
  0x1b   : >> { %s380_s26 = sshra.s32 %s9082_s25, 3  ;;  %s6794_s29 = scalar_lea.vmem [#allocation2], %s9082_s25 }
  0x1c   : >> { %s5300_s27 = sshll.u32 %s380_s26, 2 }
  0x1d   : >> { %s383_s28 = scalar_lea.vmem %s6757_s18, %s5300_s27 }
  0x1e   : >> { %v6452_v4 = vld [vmem:[%s383_s28] sm:$0xff]   ;;  %v6454_v6 = vld [vmem:[%s383_s28 + $0x8] sm:$0xff]   ;;  %v6456_v8 = vld [vmem:[%s383_s28 + $0x10] sm:$0xff]  }
  0x1f   : >> { %v6453_v5 = vld [vmem:[%s383_s28 + $0x20] sm:$0xff]   ;;  %6244 = vmatprep.mubr.msk.bf16.mxu0 %vm454_vm2, %v6452_v4  ;;  %v6455_v7 = vld [vmem:[%s383_s28 + $0x28] sm:$0xff]   ;;  %v6457_v9 = vld [vmem:[%s383_s28 + $0x30] sm:$0xff]  }
  0x20   : >> { %6252 = vmatprep.mubr.msk.bf16.mxu1 %vm454_vm2, %v6453_v5  ;;  %6245 = vmatmul.mubr.msk.bf16.vlgmr.msra.gmra.mrb[0].mxu0 %vm454_vm2, %v6454_v6  ;;  %v6458_v10 = vld [vmem:[%s383_s28 + $0x18] sm:$0xff]  }
  0x21   : >> { %6253 = vmatmul.mubr.msk.bf16.vlgmr.msra.gmra.mrb[0].mxu1 %vm454_vm2, %v6455_v7  ;;  %6248 = vmatprep.mubr.msk.bf16.mxu0 %vm454_vm2, %v6456_v8  ;;  %v6459_v11 = vld [vmem:[%s383_s28 + $0x38] sm:$0xff]  }
  0x22   : >> { %6256 = vmatprep.mubr.msk.bf16.mxu1 %vm454_vm2, %v6457_v9 }
  0x28   : >> { %6249 = vmatmul.mubr.msk.bf16.gmra.mrb[4].mxu0 %vm454_vm2, %v6458_v10 }
  0x29   : >> { %6257 = vmatmul.mubr.msk.bf16.gmra.mrb[4].mxu1 %vm454_vm2, %v6459_v11 }
  0xf3   : >> { %v6246_v12 = vpop.f32.mrb[0].mxu0 }
  0xf4   : >> { %v522_v13 = vadd.f32 %v6246_v12, %v6722_v0  ;;  %v6254_v14 = vpop.f32.mrb[0].mxu1  ;;  %v513_v15 = vpop.f32.mrb[1].mxu0 }
  0xf5   : >> { %v554_v16 = vadd.f32 %v6254_v14, %v6722_v0  ;;  %v514_v17 = vadd.f32 %v6722_v0, %v513_v15  ;;  %v545_v18 = vpop.f32.mrb[1].mxu1  ;;  %v6247_v19 = vpop.f32.mrb[2].mxu0  ;;  %v627_v14 = vlaneseq (%p373_p5) }
  0xf6   : >> { %v578_v20 = vmul.f32 0.05, %v522_v13  ;;  %v546_v21 = vadd.f32 %v6722_v0, %v545_v18  ;;  %v525_v22 = vadd.f32 %v6247_v19, %v6722_v0  ;;  %v6255_v23 = vpop.f32.mrb[2].mxu1  ;;  %v516_v24 = vpop.f32.mrb[3].mxu0 }
  0xf7   : >> { %v586_v25 = vmul.f32 0.05, %v554_v16  ;;  %v576_v26 = vmul.f32 0.05, %v514_v17  ;;  %v557_v27 = vadd.f32 %v6255_v23, %v6722_v0  ;;  %v517_v28 = vadd.f32 %v6722_v0, %v516_v24  ;;  %v548_v29 = vpop.f32.mrb[3].mxu1 }
  0xf8   : >> { %v594_v30 = vmax.f32 %v522_v13, %v578_v20  ;;  %v584_v31 = vmul.f32 0.05, %v546_v21  ;;  %v579_v32 = vmul.f32 0.05, %v525_v22  ;;  %v549_v33 = vadd.f32 %v6722_v0, %v548_v29  ;;  %v6842_v13 = vld [vmem:[%s8740_s4] ss:$0 sm:$0xff] (%p373_p5) }
  0xf9   : >> { %v602_v34 = vmax.f32 %v554_v16, %v586_v25  ;;  %v592_v35 = vmax.f32 %v514_v17, %v576_v26  ;;  %v587_v36 = vmul.f32 0.05, %v557_v27  ;;  %v577_v37 = vmul.f32 0.05, %v517_v28 }
  0xfa   : >> { %5321 = vst.msk [vmem:[%s6794_s29 + $0x28] sm:$0xff] %vm8747_vm0, %v594_v30  ;;  %v600_v38 = vmax.f32 %v546_v21, %v584_v31  ;;  %v595_v39 = vmax.f32 %v525_v22, %v579_v32  ;;  %v585_v40 = vmul.f32 0.05, %v549_v33  ;;  %v628_v15 = vshrl.u32 (%p373_p5), %v627_v14, 7 }
  0xfb   : >> { %5329 = vst.msk [vmem:[%s6794_s29 + $0x68] sm:$0xff] %vm8747_vm0, %v602_v34  ;;  %5319 = vst.msk [vmem:[%s6794_s29 + $0x18] sm:$0xff] %vm8747_vm0, %v592_v35  ;;  %v603_v41 = vmax.f32 %v557_v27, %v587_v36  ;;  %v593_v42 = vmax.f32 %v517_v28, %v577_v37  ;;  %v6250_v43 = vpop.f32.mrb[4].mxu0 }
  0xfc   : >> { %5327 = vst.msk [vmem:[%s6794_s29 + $0x58] sm:$0xff] %vm8747_vm0, %v600_v38  ;;  %5322 = vst.msk [vmem:[%s6794_s29 + $0x30] sm:$0xff] %vm8747_vm0, %v595_v39  ;;  %v601_v44 = vmax.f32 %v549_v33, %v585_v40  ;;  %v538_v45 = vadd.f32 %v6250_v43, %v6722_v0  ;;  %v6258_v46 = vpop.f32.mrb[4].mxu1  ;;  %v529_v47 = vpop.f32.mrb[5].mxu0  ;;  %v629_v16 = vadd.s32 (%p373_p5), 8, %v628_v15  ;;  %v630_v17 = vadd.s32 (%p373_p5), 16, %v628_v15 }
  0xfd   : >> { %5330 = vst.msk [vmem:[%s6794_s29 + $0x70] sm:$0xff] %vm8747_vm0, %v603_v41  ;;  %5320 = vst.msk [vmem:[%s6794_s29 + $0x20] sm:$0xff] %vm8747_vm0, %v593_v42  ;;  %v570_v48 = vadd.f32 %v6258_v46, %v6722_v0  ;;  %v530_v49 = vadd.f32 %v6722_v0, %v529_v47  ;;  %v561_v50 = vpop.f32.mrb[5].mxu1  ;;  %v6251_v51 = vpop.f32.mrb[6].mxu0  ;;  %v631_v18 = vadd.s32 (%p373_p5), 24, %v628_v15  ;;  %v632_v19 = vadd.s32 (%p373_p5), 32, %v628_v15 }
  0xfe   : >> { %5328 = vst.msk [vmem:[%s6794_s29 + $0x60] sm:$0xff] %vm8747_vm0, %v601_v44  ;;  %v582_v52 = vmul.f32 0.05, %v538_v45  ;;  %v562_v53 = vadd.f32 %v6722_v0, %v561_v50  ;;  %v541_v54 = vadd.f32 %v6251_v51, %v6722_v0  ;;  %v6259_v55 = vpop.f32.mrb[6].mxu1  ;;  %v532_v56 = vpop.f32.mrb[7].mxu0  ;;  %v633_v20 = vadd.s32 (%p373_p5), 40, %v628_v15 }
  0xff   : >> { %v590_v57 = vmul.f32 0.05, %v570_v48  ;;  %v580_v58 = vmul.f32 0.05, %v530_v49  ;;  %v573_v59 = vadd.f32 %v6259_v55, %v6722_v0  ;;  %v533_v60 = vadd.f32 %v6722_v0, %v532_v56  ;;  %v564_v61 = vpop.f32.mrb[7].mxu1 }
 0x100   : >> { %v598_v62 = vmax.f32 %v538_v45, %v582_v52  ;;  %v588_v63 = vmul.f32 0.05, %v562_v53  ;;  %v583_v1 = vmul.f32 0.05, %v541_v54  ;;  %v565_v2 = vadd.f32 %v6722_v0, %v564_v61  ;;  %375 = sbr.rel (!%p373_p5) target bundleno = 23 (0x17), region = 122 }
 0x101   : >> { %v606_v3 = vmax.f32 %v570_v48, %v590_v57  ;;  %v596_v4 = vmax.f32 %v530_v49, %v580_v58  ;;  %v591_v5 = vmul.f32 0.05, %v573_v59  ;;  %v581_v6 = vmul.f32 0.05, %v533_v60 }
 0x102   : >> { %5325 = vst.msk [vmem:[%s6794_s29 + $0x48] sm:$0xff] %vm8747_vm0, %v598_v62  ;;  %v604_v7 = vmax.f32 %v562_v53, %v588_v63  ;;  %v599_v8 = vmax.f32 %v541_v54, %v583_v1  ;;  %v589_v9 = vmul.f32 0.05, %v565_v2  ;;  %v634_v21 = vadd.s32 (%p373_p5), 48, %v628_v15 }
 0x103   : >> { %5333 = vst.msk [vmem:[%s6794_s29 + $0x88] sm:$0xff] %vm8747_vm0, %v606_v3  ;;  %5323 = vst.msk [vmem:[%s6794_s29 + $0x38] sm:$0xff] %vm8747_vm0, %v596_v4  ;;  %v607_v10 = vmax.f32 %v573_v59, %v591_v5  ;;  %v597_v11 = vmax.f32 %v533_v60, %v581_v6  ;;  %v635_v22 = vadd.s32 (%p373_p5), 56, %v628_v15  ;;  %v636_v23 = vadd.s32 (%p373_p5), 64, %v628_v15 }
 0x104   : >> { %5331 = vst.msk [vmem:[%s6794_s29 + $0x78] sm:$0xff] %vm8747_vm0, %v604_v7  ;;  %5326 = vst.msk [vmem:[%s6794_s29 + $0x50] sm:$0xff] %vm8747_vm0, %v599_v8  ;;  %v605_v12 = vmax.f32 %v565_v2, %v589_v9  ;;  %v637_v24 = vadd.s32 (%p373_p5), 72, %v628_v15  ;;  %v638_v25 = vadd.s32 (%p373_p5), 80, %v628_v15  ;;  %v639_v26 = vadd.s32 (%p373_p5), 88, %v628_v15 }
 0x105   : >> { %5334 = vst.msk [vmem:[%s6794_s29 + $0x90] sm:$0xff] %vm8747_vm0, %v607_v10  ;;  %5324 = vst.msk [vmem:[%s6794_s29 + $0x40] sm:$0xff] %vm8747_vm0, %v597_v11  ;;  %v640_v27 = vadd.s32 (%p373_p5), 96, %v628_v15  ;;  %v641_v28 = vadd.s32 (%p373_p5), 104, %v628_v15  ;;  %v642_v0 = vadd.s32 (%p373_p5), 112, %v628_v15  ;;  %v643_v29 = vadd.s32 (%p373_p5), 120, %v628_v15 }
 0x106   : >> { %5332 = vst.msk [vmem:[%s6794_s29 + $0x80] sm:$0xff] %vm8747_vm0, %v605_v12  ;;  %v648_v30 = vand.u32 (%p373_p5), 15, %v628_v15  ;;  %v655_v31 = vand.u32 (%p373_p5), 15, %v629_v16  ;;  %v662_v32 = vand.u32 (%p373_p5), 15, %v630_v17  ;;  %v669_v33 = vand.u32 (%p373_p5), 15, %v631_v18 }
 0x107   : > { %v676_v34 = vand.u32 15, %v632_v19  ;;  %v683_v35 = vand.u32 15, %v633_v20  ;;  %v690_v36 = vand.u32 15, %v634_v21  ;;  %v697_v37 = vand.u32 15, %v635_v22 }
 0x108   : > { %v704_v38 = vand.u32 15, %v636_v23  ;;  %v711_v39 = vand.u32 15, %v637_v24  ;;  %v718_v40 = vand.u32 15, %v638_v25  ;;  %v725_v41 = vand.u32 15, %v639_v26 }
 0x109   : > { %v732_v42 = vand.u32 15, %v640_v27  ;;  %v739_v43 = vand.u32 15, %v641_v28  ;;  %v746_v44 = vand.u32 15, %v642_v0  ;;  %v753_v45 = vand.u32 15, %v643_v29 }
 0x10a   : > { %vm6844_vm3 = vcmp.ge.s32.totalorder %v648_v30, 1  ;;  %v8784_v46 = vmov 0  ;;  %vm6848_vm4 = vcmp.ge.s32.totalorder %v662_v32, 1  ;;  %v8786_v47 = vmov 0 }
 0x10b   : > { %v8785_v46 = vsel %vm6844_vm3, 4294967295, %v8784_v46  ;;  %v8787_v47 = vsel %vm6848_vm4, 4294967295, %v8786_v47  ;;  %vm6852_vm5 = vcmp.ge.s32.totalorder %v676_v34, 1  ;;  %v8788_v48 = vmov 0 }
 0x10c   : > { %v8789_v48 = vsel %vm6852_vm5, 4294967295, %v8788_v48  ;;  %vm6856_vm6 = vcmp.ge.s32.totalorder %v690_v36, 1  ;;  %v8790_v49 = vmov 0  ;;  %vm6860_vm7 = vcmp.ge.s32.totalorder %v704_v38, 1 }
 0x10d   : > { %v8791_v49 = vsel %vm6856_vm6, 4294967295, %v8790_v49  ;;  %v8792_v50 = vmov 0  ;;  %vm6864_vm8 = vcmp.ge.s32.totalorder %v718_v40, 1  ;;  %v8794_v51 = vmov 0 }
 0x10e   : > { %v8793_v50 = vsel %vm6860_vm7, 4294967295, %v8792_v50  ;;  %v8795_v51 = vsel %vm6864_vm8, 4294967295, %v8794_v51  ;;  %vm6868_vm9 = vcmp.ge.s32.totalorder %v732_v42, 1  ;;  %v8796_v52 = vmov 0 }
 0x10f   : > { %v8797_v52 = vsel %vm6868_vm9, 4294967295, %v8796_v52  ;;  %vm6872_vm10 = vcmp.ge.s32.totalorder %v746_v44, 1  ;;  %v8798_v53 = vmov 0  ;;  %vm6876_vm11 = vcmp.lt.s32.totalorder %v655_v31, 15 }
 0x110   : > { %v8799_v53 = vsel %vm6872_vm10, 4294967295, %v8798_v53  ;;  %v8800_v54 = vmov 0  ;;  %vm6880_vm12 = vcmp.lt.s32.totalorder %v669_v33, 15  ;;  %v8802_v55 = vmov 0 }
 0x111   : > { %v8801_v54 = vsel %vm6876_vm11, 4294967295, %v8800_v54  ;;  %v8803_v55 = vsel %vm6880_vm12, 4294967295, %v8802_v55  ;;  %vm6884_vm13 = vcmp.lt.s32.totalorder %v683_v35, 15  ;;  %v8804_v56 = vmov 0 }
 0x112   : > { %v8805_v56 = vsel %vm6884_vm13, 4294967295, %v8804_v56  ;;  %vm6888_vm14 = vcmp.lt.s32.totalorder %v697_v37, 15  ;;  %v8806_v57 = vmov 0  ;;  %vm6892_vm15 = vcmp.lt.s32.totalorder %v711_v39, 15 }
 0x113   : > { %v8807_v57 = vsel %vm6888_vm14, 4294967295, %v8806_v57  ;;  %v8808_v58 = vmov 0  ;;  %vm6896_vm2 = vcmp.lt.s32.totalorder %v725_v41, 15  ;;  %v8810_v59 = vmov 0 }
 0x114   : > { %v8809_v58 = vsel %vm6892_vm15, 4294967295, %v8808_v58  ;;  %v8811_v59 = vsel %vm6896_vm2, 4294967295, %v8810_v59  ;;  %vm6900_vm1 = vcmp.lt.s32.totalorder %v739_v43, 15  ;;  %v8812_v60 = vmov 0 }
 0x115   : > { %v8813_v60 = vsel %vm6900_vm1, 4294967295, %v8812_v60  ;;  %vm6904_vm0 = vcmp.lt.s32.totalorder %v753_v45, 15  ;;  %v8814_v61 = vmov 0 }
 0x116   : > { %v8815_v61 = vsel %vm6904_vm0, 4294967295, %v8814_v61 }
 0x117 LB: >> { %v6460_v62 = vld [vmem:[%s8739_s3 + $0x40] sm:$0xff]   ;;  %s5335_s17 = sshll.u32 %s6642_s12, 7  ;;  %v6463_v2 = vld [vmem:[%s8739_s3 + $0x48] sm:$0xff]   ;;  %v6467_v6 = vld [vmem:[%s8739_s3 + $0x50] sm:$0xff]   ;;  %vm8816_vm10 = vcmask 523264   ;;  %s6654_s15 = smov 64   ;;  %s6642_s12 = sphi %s6908_s12, %s873_s12  }
 0x118   : >> { %v6461_v63 = vld [vmem:[%s8739_s3] sm:$0xff]   ;;  %5682 = vmatprep.subr.bf16.mxu0 %v6460_v62  ;;  %p875_p6 = scmp.lt.s32.totalorder %s5335_s17, 128  ;;  %v6465_v4 = vld [vmem:[%s8739_s3 + $0x8] sm:$0xff]   ;;  %vm8817_vm0 = vmmov %vm8816_vm10  ;;  %s873_s12 = sadd.s32 1, %s6642_s12  }
 0x119   : >> { %v6462_v1 = vld [vmem:[%s8739_s3 + $0xc0] sm:$0xff]   ;;  %5683 = vmatpush3.bf16.msra.mxu0 %v6461_v63  ;;  %v6466_v5 = vld [vmem:[%s8739_s3 + $0xc8] sm:$0xff]   ;;  %vm8818_vm9 = vmmov %vm8817_vm0  ;;  %p870_p7 = scmp.ge.s32.totalorder %s873_s12, 2  }
 0x11a   : >> { %5746 = vmatprep.subr.bf16.mxu1 %v6462_v1  ;;  %v6464_v3 = vld [vmem:[%s8739_s3 + $0x80] sm:$0xff]   ;;  %s9084_s17 = smov (!%p875_p6, %s5335_s17), 128  ;;  %5684 = vmatprep.subr.bf16.mxu0 %v6463_v2  ;;  %vm8819_vm1 = vmmov %vm8817_vm0  ;;  %v6468_v28 = vld [vmem:[%s8739_s3 + $0x88] sm:$0xff]   ;;  %s7462_s19 = smov (%p870_p7), 0  }
 0x11b   : >> { %5747 = vmatpush3.bf16.msra.mxu1 %v6464_v3  ;;  %s6941_s11 = scalar_lea.vmem [#allocation2], %s9084_s17  ;;  %vm8820_vm8 = vmmov %vm8817_vm0  ;;  %s7430_s16 = scalar_lea.vmem [#allocation3], %s9084_s17 }
 0x11c   : >> { %v880_v7 = vld [vmem:[%s6941_s11 + $0x10] sm:$0xff]  ;;  %v881_v8 = vld [vmem:[%s6941_s11 + $0x18] sm:$0xff]  ;;  %v882_v9 = vld [vmem:[%s6941_s11 + $0x20] sm:$0xff]  ;;  %5748 = vmatprep.subr.bf16.mxu1 %v6466_v5 }
 0x11d   : >> { %5685 = vmatpush3.bf16.msra.mxu0 %v6465_v4  ;;  %902 = vst.msk [vmem:[#allocation5 + $0x10] sm:$0xff] %vm8816_vm10, %v880_v7  ;;  %v879_v10 = vld [vmem:[%s6941_s11 + $0x8] sm:$0xff]  ;;  %v884_v12 = vld [vmem:[%s6941_s11 + $0x30] sm:$0xff]  ;;  %vm8821_vm2 = vmmov %vm8817_vm0 }
 0x11e   : >> { %903 = vst.msk [vmem:[#allocation5 + $0x18] sm:$0xff] %vm8817_vm0, %v881_v8  ;;  %v883_v11 = vld [vmem:[%s6941_s11 + $0x28] sm:$0xff]  ;;  %5686 = vmatprep.subr.bf16.mxu0 %v6467_v6  ;;  %v885_v14 = vld [vmem:[%s6941_s11 + $0x38] sm:$0xff]  ;;  %v886_v15 = vld [vmem:[%s6941_s11 + $0x40] sm:$0xff] }
 0x11f   : >> { %904 = vst.msk [vmem:[#allocation5 + $0x20] sm:$0xff] %vm8818_vm9, %v882_v9  ;;  %v887_v16 = vld [vmem:[%s6941_s11 + $0x48] sm:$0xff]  ;;  %vm8822_vm9 = vmmov %vm8817_vm0  ;;  %v888_v17 = vld [vmem:[%s6941_s11 + $0x50] sm:$0xff]  ;;  %5749 = vmatpush3.bf16.msra.mxu1 %v6468_v28 }
 0x120   : >> { %901 = vst.msk [vmem:[#allocation5 + $0x8] sm:$0xff] %vm8819_vm1, %v879_v10  ;;  %vm8823_vm10 = vmmov %vm8817_vm0  ;;  %v889_v18 = vld [vmem:[%s6941_s11 + $0x58] sm:$0xff]  ;;  %v890_v19 = vld [vmem:[%s6941_s11 + $0x60] sm:$0xff] }
 0x121   : >> { %905 = vst.msk [vmem:[#allocation5 + $0x28] sm:$0xff] %vm8820_vm8, %v883_v11  ;;  %vm8824_vm1 = vmmov %vm8817_vm0  ;;  %v891_v20 = vld [vmem:[%s6941_s11 + $0x68] sm:$0xff]  ;;  %v892_v21 = vld [vmem:[%s6941_s11 + $0x70] sm:$0xff] }
 0x122   : >> { %906 = vst.msk [vmem:[#allocation5 + $0x30] sm:$0xff] %vm8821_vm2, %v884_v12  ;;  %vm8825_vm8 = vmmov %vm8817_vm0  ;;  %v893_v22 = vld [vmem:[%s6941_s11 + $0x78] sm:$0xff]  ;;  %v894_v23 = vld [vmem:[%s6941_s11 + $0x80] sm:$0xff] }
 0x123   : >> { %907 = vst.msk [vmem:[#allocation5 + $0x38] sm:$0xff] %vm8817_vm0, %v885_v14  ;;  %vm8826_vm2 = vmmov %vm8817_vm0  ;;  %v895_v24 = vld [vmem:[%s6941_s11 + $0x88] sm:$0xff]  ;;  %v896_v25 = vld [vmem:[%s6941_s11 + $0x90] sm:$0xff] }
 0x124   : >> { %908 = vst.msk [vmem:[#allocation5 + $0x40] sm:$0xff] %vm8822_vm9, %v886_v15  ;;  %vm8827_vm9 = vmmov %vm8817_vm0  ;;  %v897_v26 = vld [vmem:[%s6941_s11 + $0x98] sm:$0xff]  ;;  %v898_v27 = vld [vmem:[%s6941_s11 + $0xa0] sm:$0xff] }
 0x125   : >> { %909 = vst.msk [vmem:[#allocation5 + $0x48] sm:$0xff] %vm8823_vm10, %v887_v16  ;;  %vm8828_vm7 = vmmov %vm8817_vm0  ;;  %v1146_v0 = vld [vmem:[#allocation5 + $0x17] sm:$0xff] }
 0x126   : >> { %910 = vst.msk [vmem:[#allocation5 + $0x50] sm:$0xff] %vm8824_vm1, %v888_v17  ;;  %vm8829_vm10 = vmmov %vm8817_vm0  ;;  %v1147_v29 = vld [vmem:[#allocation5 + $0x1f] sm:$0xff]  ;;  %v1003_v30 = vld [vmem:[#allocation5 + $0x10] sm:$0xff]  ;;  %v1162_v31 = vsel %vm6844_vm3, %v1146_v0, 0.0  ;;  %v972_v35 = vsel %vm6848_vm4, %v1146_v0, 0.0 }
 0x127   : >> { %911 = vst.msk [vmem:[#allocation5 + $0x58] sm:$0xff] %vm8825_vm8, %v889_v18  ;;  %vm8830_vm1 = vmmov %vm8817_vm0  ;;  %v1002_v32 = vld [vmem:[#allocation5 + $0x8] sm:$0xff]  ;;  %v1178_v36 = vpack.c.bf16 %v1147_v29, %v1162_v31  ;;  %v1258_v39 = vld [vmem:[#allocation5 + $0x19] sm:$0xff]  ;;  %v987_v42 = vpack.c.bf16 %v1147_v29, %v972_v35 }
 0x128   : >> { %912 = vst.msk [vmem:[#allocation5 + $0x60] sm:$0xff] %vm8826_vm2, %v890_v19  ;;  %vm8831_vm15 = vmmov %vm8817_vm0  ;;  %v1386_v33 = vld [vmem:[#allocation5 + $0x28] sm:$0xff]  ;;  %v1018_v37 = vpack.c.bf16 %v1003_v30, %v1002_v32  ;;  %v1004_v3 = vld [vmem:[#allocation5 + $0x18] sm:$0xff] }
 0x129   : >> { %913 = vst.msk [vmem:[#allocation5 + $0x68] sm:$0xff] %vm8817_vm0, %v891_v20  ;;  %vm8832_vm8 = vmmov %vm8817_vm0  ;;  %v1387_v34 = vld [vmem:[#allocation5 + $0x30] sm:$0xff]  ;;  %v1259_v40 = vld [vmem:[#allocation5 + $0x21] sm:$0xff]  ;;  %1194 = vrot.lane.b32.xlu0 %v1178_v36, %s6654_s15 }
 0x12a   : >> { %914 = vst.msk [vmem:[#allocation5 + $0x70] sm:$0xff] %vm8827_vm9, %v892_v21  ;;  %vm8833_vm2 = vmmov %vm8817_vm0  ;;  %v6990_v38 = vpack.c.bf16 %v1387_v34, %v1386_v33  ;;  %v6992_v41 = vld [vmem:[#allocation5 + $0x27] sm:$0xff]  ;;  %v1275_v43 = vsel %vm6876_vm11, %v1259_v40, 0.0  ;;  %v1388_v44 = vld [vmem:[#allocation5 + $0x38] sm:$0xff]  ;;  %1034 = vrot.lane.b32.xlu1 %v1018_v37, %s6654_s15  ;;  %v1117_v5 = vsel %vm6880_vm12, %v1259_v40, 0.0 }
 0x12b   : >> { %915 = vst.msk [vmem:[#allocation5 + $0x78] sm:$0xff] %vm8828_vm7, %v893_v22  ;;  %v1389_v45 = vld [vmem:[#allocation5 + $0x40] sm:$0xff]  ;;  %v1354_v62 = vsel %vm6844_vm3, %v6992_v41, 0.0  ;;  %v1290_v63 = vpack.c.bf16 %v1275_v43, %v1258_v39  ;;  %v1149_v1 = vld [vmem:[#allocation5 + $0x2f] sm:$0xff]  ;;  %vm8834_vm7 = vmmov %vm8817_vm0  ;;  %v1164_v6 = vsel %vm6848_vm4, %v6992_v41, 0.0  ;;  %v1131_v11 = vpack.c.bf16 %v1117_v5, %v1258_v39 }
 0x12c   : >> { %916 = vst.msk [vmem:[#allocation5 + $0x80] sm:$0xff] %vm8829_vm10, %v894_v23  ;;  %v7001_v2 = vpack.c.bf16 %v1389_v45, %v1388_v44  ;;  %v1005_v4 = vld [vmem:[#allocation5 + $0x20] sm:$0xff]  ;;  %v1261_v8 = vld [vmem:[#allocation5 + $0x31] sm:$0xff]  ;;  %v1370_v10 = vpack.c.bf16 %v1149_v1, %v1354_v62  ;;  %v1390_v14 = vld [vmem:[#allocation5 + $0x48] sm:$0xff]  ;;  %v1179_v19 = vpack.c.bf16 %v1149_v1, %v1164_v6  ;;  %v974_v36 = vsel %vm6852_vm5, %v6992_v41, 0.0 }
 0x12d   : >> { %917 = vst.msk [vmem:[#allocation5 + $0x88] sm:$0xff] %vm8830_vm1, %v895_v24  ;;  %v1019_v7 = vpack.c.bf16 %v1005_v4, %v1004_v3  ;;  %v7011_v9 = vld [vmem:[#allocation5 + $0x37] sm:$0xff]  ;;  %v7013_v12 = vld [vmem:[#allocation5 + $0x3f] sm:$0xff]  ;;  %vm8836_vm9 = vmmov %vm8817_vm0  ;;  %1418 = vrot.lane.b32.xlu0 %v6990_v38, %s6654_s15  ;;  %v1119_v23 = vsel %vm6884_vm13, %v1261_v8, 0.0  ;;  %v1277_v24 = vsel %vm6880_vm12, %v1261_v8, 0.0 }
 0x12e   : >> { %918 = vst.msk [vmem:[#allocation5 + $0x90] sm:$0xff] %vm8831_vm15, %v896_v25  ;;  %vm8835_vm15 = vmmov %vm8817_vm0  ;;  %v1391_v15 = vld [vmem:[#allocation5 + $0x50] sm:$0xff]  ;;  %v1356_v16 = vsel %vm6848_vm4, %v7011_v9, 0.0  ;;  %1306 = vrot.lane.b32.xlu1 %v1290_v63, %s6654_s15  ;;  %v1392_v21 = vld [vmem:[#allocation5 + $0x58] sm:$0xff]  ;;  %v1166_v37 = vsel %vm6852_vm5, %v7011_v9, 0.0 }
 0x12f   : >> { %919 = vst.msk [vmem:[#allocation5 + $0x98] sm:$0xff] %vm8832_vm8, %v897_v26  ;;  %v7020_v17 = vpack.c.bf16 %v1391_v15, %v1390_v14  ;;  %vm8837_vm10 = vmmov %vm8817_vm0  ;;  %v1371_v18 = vpack.c.bf16 %v7013_v12, %v1356_v16  ;;  %v1260_v20 = vld [vmem:[#allocation5 + $0x29] sm:$0xff]  ;;  %v1393_v22 = vld [vmem:[#allocation5 + $0x60] sm:$0xff] }
 0x130   : >> { %920 = vst.msk [vmem:[#allocation5 + $0xa0] sm:$0xff] %vm8833_vm2, %v898_v27  ;;  %vm8838_vm1 = vmmov %vm8817_vm0  ;;  %v7033_v25 = vld [vmem:[#allocation5 + $0x47] sm:$0xff]  ;;  %v7035_v26 = vpack.c.bf16 %v1393_v22, %v1392_v21  ;;  %v1132_v27 = vpack.c.bf16 %v1119_v23, %v1260_v20  ;;  %v7040_v28 = vld [vmem:[#allocation5 + $0x4f] sm:$0xff]  ;;  %v1291_v33 = vpack.c.bf16 %v1277_v24, %v1260_v20 }
 0x131   : >> { %995 = vst.msk [vmem:[#allocation6 + $0x28] sm:$0xff] %vm8834_vm7, %v987_v42  ;;  %vm8839_vm8 = vmmov %vm8817_vm0  ;;  %v1394_v0 = vld [vmem:[#allocation5 + $0x68] sm:$0xff]  ;;  %v1395_v29 = vld [vmem:[#allocation5 + $0x70] sm:$0xff]  ;;  %v1358_v30 = vsel %vm6852_vm5, %v7033_v25, 0.0  ;;  %1196 = vrot.lane.b32.xlu0 %v1179_v19, %s6654_s15  ;;  %v988_v42 = vpack.c.bf16 %v1149_v1, %v974_v36  ;;  %v1180_v1 = vpack.c.bf16 %v7013_v12, %v1166_v37  ;;  %v976_v19 = vsel %vm6856_vm6, %v7011_v9, 0.0 }
 0x132   : >> { %1251 = vst.msk [vmem:[#allocation6 + $0x38] sm:$0xff] %vm8835_vm15, %v6990_v38  ;;  %vm8840_vm2 = vmmov %vm8817_vm0  ;;  %v7045_v31 = vpack.c.bf16 %v1395_v29, %v1394_v0  ;;  %v1372_v32 = vpack.c.bf16 %v7040_v28, %v1358_v30  ;;  %1420 = vrot.lane.b32.xlu1 %v7001_v2, %s6654_s15  ;;  %v1396_v34 = vld [vmem:[#allocation5 + $0x78] sm:$0xff]  ;;  %v1263_v39 = vld [vmem:[#allocation5 + $0x41] sm:$0xff]  ;;  %v989_v22 = vpack.c.bf16 %v7013_v12, %v976_v19 }
 0x133   : >> { %1252 = vst.msk [vmem:[#allocation6 + $0x60] sm:$0xff] %vm8817_vm0, %v7001_v2  ;;  %vm8841_vm7 = vmmov %vm8817_vm0  ;;  %v1397_v35 = vld [vmem:[#allocation5 + $0x80] sm:$0xff]  ;;  %v1121_v62 = vsel %vm6888_vm14, %v1263_v39, 0.0  ;;  %v7067_v41 = vld [vmem:[#allocation5 + $0x57] sm:$0xff]  ;;  %v1279_v6 = vsel %vm6884_vm13, %v1263_v39, 0.0 }
 0x134   : >> { %1378 = vst.msk [vmem:[#allocation6 + $0x18] sm:$0xff] %vm8836_vm9, %v1370_v10  ;;  %vm8842_vm15 = vmmov %vm8817_vm0  ;;  %v7060_v40 = vpack.c.bf16 %v1397_v35, %v1396_v34  ;;  %v1262_v43 = vld [vmem:[#allocation5 + $0x39] sm:$0xff]  ;;  %v1398_v44 = vld [vmem:[#allocation5 + $0x88] sm:$0xff]  ;;  %v1360_v5 = vsel %vm6856_vm6, %v7067_v41, 0.0 }
 0x135   : >> { %1250 = vst.msk [vmem:[#allocation6 + $0x10] sm:$0xff] %vm8837_vm10, %v1019_v7  ;;  %vm8843_vm9 = vmmov %vm8817_vm0  ;;  %v1399_v45 = vld [vmem:[#allocation5 + $0x90] sm:$0xff]  ;;  %v1133_v3 = vpack.c.bf16 %v1121_v62, %v1262_v43  ;;  %1036 = vrot.lane.b32.xlu0 %v1019_v7, %s6654_s15  ;;  %v7077_v4 = vld [vmem:[#allocation5 + $0x5f] sm:$0xff]  ;;  %v1292_v20 = vpack.c.bf16 %v1279_v6, %v1262_v43 }
 0x136   : >> { %1139 = vst.msk [vmem:[#allocation6 + $0x30] sm:$0xff] %vm8838_vm1, %v1131_v11  ;;  %v7069_v63 = vpack.c.bf16 %v1399_v45, %v1398_v44  ;;  %vm8844_vm10 = vmmov %vm8817_vm0  ;;  %1308 = vrot.lane.b32.xlu1 %v1291_v33, %s6654_s15  ;;  %v1265_v8 = vld [vmem:[#allocation5 + $0x51] sm:$0xff]  ;;  %v6469_v10 = vld [vmem:[%s8739_s3 + $0x10] sm:$0xff]   ;;  %v1373_v7 = vpack.c.bf16 %v7077_v4, %v1360_v5  ;;  %v1168_v11 = vsel %vm6856_vm6, %v7033_v25, 0.0 }
 0x137   : >> { %1379 = vst.msk [vmem:[#allocation6 + $0x40] sm:$0xff] %vm8839_vm8, %v1371_v18  ;;  %vm8845_vm1 = vmmov %vm8817_vm0  ;;  %v1264_v14 = vld [vmem:[#allocation5 + $0x49] sm:$0xff]  ;;  %v6470_v16 = vld [vmem:[%s8739_s3 + $0xd0] sm:$0xff]   ;;  %5687 = vmatpush3.bf16.msra.mxu0 %v6469_v10  ;;  %v1181_v33 = vpack.c.bf16 %v7040_v28, %v1168_v11  ;;  %v1281_v34 = vsel %vm6888_vm14, %v1265_v8, 0.0 }
 0x138   : >> { %1253 = vst.msk [vmem:[#allocation6 + $0x88] sm:$0xff] %vm8840_vm2, %v7020_v17  ;;  %vm8846_vm8 = vmmov %vm8817_vm0  ;;  %v7094_v15 = vld [vmem:[#allocation5 + $0x67] sm:$0xff]  ;;  %v7109_v21 = vld [vmem:[#allocation5 + $0x6f] sm:$0xff]  ;;  %5750 = vmatprep.subr.bf16.mxu1 %v6470_v16  ;;  %v1293_v62 = vpack.c.bf16 %v1281_v34, %v1264_v14 }
 0x139   : >> { %1140 = vst.msk [vmem:[#allocation6 + $0x58] sm:$0xff] %vm8841_vm7, %v1132_v27  ;;  %vm8847_vm2 = vmmov %vm8817_vm0  ;;  %v6471_v18 = vld [vmem:[%s8739_s3 + $0x58] sm:$0xff]   ;;  %1198 = vrot.lane.b32.xlu0 %v1180_v1, %s6654_s15  ;;  %v6472_v24 = vld [vmem:[%s8739_s3 + $0x90] sm:$0xff]  }
 0x13a   : >> { %1254 = vst.msk [vmem:[#allocation6 + $0xb0] sm:$0xff] %vm8842_vm15, %v7035_v26  ;;  %vm8848_vm7 = vmmov %vm8817_vm0  ;;  %1422 = vrot.lane.b32.xlu1 %v7020_v17, %s6654_s15  ;;  %vm8849_vm15 = vnez %v8809_v58  ;;  %5688 = vmatprep.subr.bf16.mxu0 %v6471_v18  ;;  %v1066_v9 = vld [vmem:[#allocation5 + $0x9] sm:$0xff]  ;;  %v1067_v36 = vld [vmem:[#allocation5 + $0x11] sm:$0xff] }
 0x13b   : >> { %1380 = vst.msk [vmem:[#allocation6 + $0x68] sm:$0xff] %vm8817_vm0, %v1372_v32  ;;  %v1123_v23 = vsel %vm8849_vm15, %v1265_v8, 0.0  ;;  %vm8850_vm0 = vnez %v8793_v50  ;;  %v6473_v29 = vld [vmem:[%s8739_s3 + $0x18] sm:$0xff]   ;;  %5751 = vmatpush3.bf16.msra.mxu1 %v6472_v24  ;;  %v6475_v35 = vld [vmem:[%s8739_s3 + $0x60] sm:$0xff]   ;;  %v1266_v43 = vld [vmem:[#allocation5 + $0x59] sm:$0xff] }
 0x13c   : >> { %1255 = vst.msk [vmem:[#allocation6 + $0xd8] sm:$0xff] %vm8843_vm9, %v7045_v31  ;;  %v1134_v27 = vpack.c.bf16 %v1123_v23, %v1264_v14  ;;  %v1362_v0 = vsel %vm8850_vm0, %v7094_v15, 0.0  ;;  %vm8851_vm9 = vmmov %vm8845_vm1  ;;  %v6474_v30 = vld [vmem:[%s8739_s3 + $0xd8] sm:$0xff]   ;;  %v978_v32 = vsel %vm8850_vm0, %v7033_v25, 0.0  ;;  %v7143_v39 = vld [vmem:[#allocation5 + $0x77] sm:$0xff]  ;;  %5689 = vmatpush3.bf16.msra.mxu0 %v6473_v29  ;;  %v1170_v8 = vsel %vm8850_vm0, %v7067_v41, 0.0 }
 0x13d   : >> { %996 = vst.msk [vmem:[#allocation6 + $0x50] sm:$0xff] %vm8844_vm10, %v988_v42  ;;  %v1374_v12 = vpack.c.bf16 %v7109_v21, %v1362_v0  ;;  %vm8852_vm10 = vmmov %vm8845_vm1  ;;  %1038 = vrot.lane.b32.xlu0 %v6990_v38, %s6654_s15  ;;  %v990_v37 = vpack.c.bf16 %v7040_v28, %v978_v32  ;;  %v1267_v25 = vld [vmem:[#allocation5 + $0x61] sm:$0xff]  ;;  %5752 = vmatprep.subr.bf16.mxu1 %v6474_v30  ;;  %v1115_v42 = vsel %vm6876_vm11, %v1067_v36, 0.0  ;;  %v6477_v44 = vld [vmem:[%s8739_s3 + $0x20] sm:$0xff]  }
 0x13e   : >> { %1256 = vst.msk [vmem:[#allocation6 + $0x100] sm:$0xff] %vm8845_vm1, %v7060_v40  ;;  %1310 = vrot.lane.b32.xlu1 %v1292_v20, %s6654_s15  ;;  %v6476_v38 = vld [vmem:[%s8739_s3 + $0x98] sm:$0xff]   ;;  %5690 = vmatprep.subr.bf16.mxu0 %v6475_v35  ;;  %v1130_v45 = vpack.c.bf16 %v1115_v42, %v1066_v9  ;;  %v6478_v28 = vld [vmem:[%s8739_s3 + $0xe0] sm:$0xff]   ;;  %v6479_v1 = vld [vmem:[%s8739_s3 + $0x68] sm:$0xff]   ;;  %v1182_v19 = vpack.c.bf16 %v7077_v4, %v1170_v8  ;;  %v1283_v23 = vsel %vm8849_vm15, %v1267_v25, 0.0 }
 0x13f   : >> { %1141 = vst.msk [vmem:[#allocation6 + $0x80] sm:$0xff] %vm8846_vm8, %v1133_v3  ;;  %vm8853_vm8 = vmmov %vm8845_vm1  ;;  %5753 = vmatpush3.bf16.msra.mxu1 %v6476_v38  ;;  %v7160_v3 = vld [vmem:[#allocation5 + $0x7f] sm:$0xff]  ;;  %v6480_v10 = vld [vmem:[%s8739_s3 + $0xa0] sm:$0xff]   ;;  %v1294_v0 = vpack.c.bf16 %v1283_v23, %v1266_v43 }
 0x140   : >> { %1257 = vst.msk [vmem:[#allocation6 + $0x128] sm:$0xff] %vm8847_vm2, %v7069_v63  ;;  %vm8854_vm2 = vmmov %vm8845_vm1  ;;  %5691 = vmatpush3.bf16.msra.mxu0 %v6477_v44  ;;  %5754 = vmatprep.subr.bf16.mxu1 %v6478_v28  ;;  %v6481_v14 = vld [vmem:[%s8739_s3 + $0x28] sm:$0xff]   ;;  %v878_v20 = vld [vmem:[%s6941_s11] sm:$0xff] }
 0x141   : >> { %1381 = vst.msk [vmem:[#allocation6 + $0x90] sm:$0xff] %vm8848_vm7, %v1373_v7  ;;  %1200 = vrot.lane.b32.xlu0 %v1181_v33, %s6654_s15  ;;  %vm8855_vm7 = vnez %v8811_v59  ;;  %5692 = vmatprep.subr.bf16.mxu0 %v6479_v1  ;;  %v6482_v16 = vld [vmem:[%s8739_s3 + $0xe8] sm:$0xff]   ;;  %vm8857_vm0 = vmmov %vm8845_vm1  ;;  %v7197_v9 = vld [vmem:[#allocation5 + $0x87] sm:$0xff] }
 0x142   : >> { %997 = vst.msk [vmem:[#allocation6 + $0x78] sm:$0xff] %vm8851_vm9, %v989_v22  ;;  %1424 = vrot.lane.b32.xlu1 %v7035_v26, %s6654_s15  ;;  %v1125_v5 = vsel %vm8855_vm7, %v1267_v25, 0.0  ;;  %vm8856_vm9 = vnez %v8795_v51  ;;  %v1269_v24 = vld [vmem:[#allocation5 + $0x71] sm:$0xff]  ;;  %v6487_v35 = vld [vmem:[%s8739_s3 + $0x78] sm:$0xff]   ;;  %v6488_v25 = vld [vmem:[%s8739_s3 + $0xb0] sm:$0xff]  }
 0x143   : >> { %1142 = vst.msk [vmem:[#allocation6 + $0xa8] sm:$0xff] %vm8852_vm10, %v1134_v27  ;;  %v1364_v6 = vsel %vm8856_vm9, %v7143_v39, 0.0  ;;  %v1135_v7 = vpack.c.bf16 %v1125_v5, %v1266_v43  ;;  %5755 = vmatpush3.bf16.msra.mxu1 %v6480_v10  ;;  %vm8858_vm10 = vmmov %vm8857_vm0  ;;  %v980_v18 = vsel %vm8856_vm9, %v7067_v41, 0.0  ;;  %v1268_v41 = vld [vmem:[#allocation5 + $0x69] sm:$0xff]  ;;  %v6484_v27 = vld [vmem:[%s8739_s3 + $0xa8] sm:$0xff]   ;;  %v1172_v33 = vsel %vm8856_vm9, %v7094_v15, 0.0 }
 0x144   : >> { %1382 = vst.msk [vmem:[#allocation6 + $0xb8] sm:$0xff] %vm8845_vm1, %v1374_v12  ;;  %v1375_v11 = vpack.c.bf16 %v7160_v3, %v1364_v6  ;;  %v991_v22 = vpack.c.bf16 %v7077_v4, %v980_v18  ;;  %5693 = vmatpush3.bf16.msra.mxu0 %v6481_v14  ;;  %5756 = vmatprep.subr.bf16.mxu1 %v6482_v16  ;;  %vm8859_vm1 = vmmov %vm8857_vm0  ;;  %v6485_v4 = vld [vmem:[%s8739_s3 + $0x30] sm:$0xff]   ;;  %v7213_v29 = vld [vmem:[#allocation5 + $0x8f] sm:$0xff]  ;;  %v1285_v44 = vsel %vm8855_vm7, %v1269_v24, 0.0 }
 0x145   : >> { %998 = vst.msk [vmem:[#allocation6 + $0xa0] sm:$0xff] %vm8853_vm8, %v990_v37  ;;  %1040 = vrot.lane.b32.xlu0 %v7001_v2, %s6654_s15  ;;  %v6483_v2 = vld [vmem:[%s8739_s3 + $0x70] sm:$0xff]   ;;  %vm8860_vm8 = vmmov %vm8857_vm0  ;;  %v923_v34 = vld [vmem:[#allocation5 + $0xf] sm:$0xff]  ;;  %v1183_v43 = vpack.c.bf16 %v7109_v21, %v1172_v33  ;;  %v1295_v6 = vpack.c.bf16 %v1285_v44, %v1268_v41 }
 0x146   : >> { %1138 = vst.msk [vmem:[#allocation6 + $0x8] sm:$0xff] %vm8854_vm2, %v1130_v45  ;;  %1312 = vrot.lane.b32.xlu1 %v1293_v62, %s6654_s15  ;;  %5694 = vmatprep.subr.bf16.mxu0 %v6483_v2  ;;  %v6486_v12 = vld [vmem:[%s8739_s3 + $0xf0] sm:$0xff]   ;;  %vm8861_vm2 = vnez %v8813_v60  ;;  %v6489_v38 = vld [vmem:[%s8739_s3 + $0x38] sm:$0xff]   ;;  %vm8863_vm9 = vmmov %vm8859_vm1 }
 0x147   : >> { %1143 = vst.msk [vmem:[#allocation6 + $0xd0] sm:$0xff] %vm8857_vm0, %v1135_v7  ;;  %v1127_v30 = vsel %vm8861_vm2, %v1269_v24, 0.0  ;;  %vm8862_vm0 = vnez %v8797_v52  ;;  %5757 = vmatpush3.bf16.msra.mxu1 %v6484_v27  ;;  %v1271_v62 = vld [vmem:[#allocation5 + $0x81] sm:$0xff]  ;;  %v1270_v8 = vld [vmem:[#allocation5 + $0x79] sm:$0xff]  ;;  %v1273_v27 = vld [vmem:[#allocation5 + $0x91] sm:$0xff] }
 0x148   : >> { %1383 = vst.msk [vmem:[#allocation6 + $0xe0] sm:$0xff] %vm8858_vm10, %v1375_v11  ;;  %v1366_v32 = vsel %vm8862_vm0, %v7197_v9, 0.0  ;;  %5695 = vmatpush3.bf16.msra.mxu0 %v6485_v4  ;;  %v1136_v36 = vpack.c.bf16 %v1127_v30, %v1268_v41  ;;  %5758 = vmatprep.subr.bf16.mxu1 %v6486_v12  ;;  %vm8864_vm10 = vmmov %vm8859_vm1  ;;  %v982_v42 = vsel %vm8862_vm0, %v7094_v15, 0.0  ;;  %v6491_v5 = vld [vmem:[%s8739_s3 + $0xb8] sm:$0xff]   ;;  %v1352_v7 = vld [vmem:[#allocation5 + $0x97] sm:$0xff]  ;;  %v1174_v11 = vsel %vm8862_vm0, %v7143_v39, 0.0 }
 0x149   : >> { %900 = vst.msk [vmem:[#allocation5] sm:$0xff] %vm8859_vm1, %v878_v20  ;;  %1202 = vrot.lane.b32.xlu0 %v1182_v19, %s6654_s15  ;;  %v1376_v37 = vpack.c.bf16 %v7213_v29, %v1366_v32  ;;  %5696 = vmatprep.subr.bf16.mxu0 %v6487_v35  ;;  %v992_v28 = vpack.c.bf16 %v7109_v21, %v982_v42  ;;  %v7260_v21 = vld [vmem:[%s8739_s3 + $0x100] sm:$0xff]   ;;  %v1287_v20 = vsel %vm8861_vm2, %v1271_v62, 0.0  ;;  %vm8868_vm0 = vmmov %vm8859_vm1  ;;  %v1400_v2 = vld [vmem:[#allocation5 + $0x98] sm:$0xff] }
 0x14a   : >> { %999 = vst.msk [vmem:[#allocation6 + $0xc8] sm:$0xff] %vm8860_vm8, %v991_v22  ;;  %1426 = vrot.lane.b32.xlu1 %v7045_v31, %s6654_s15  ;;  %vm8865_vm8 = vmmov %vm8859_vm1  ;;  %v1184_v19 = vpack.c.bf16 %v7160_v3, %v1174_v11  ;;  %v1353_v22 = vld [vmem:[#allocation5 + $0x9f] sm:$0xff]  ;;  %v1451_v4 = vld [vmem:[#allocation5 + $0x31] sm:$0xff] }
 0x14b   : >> { %1144 = vst.msk [vmem:[#allocation6 + $0xf8] sm:$0xff] %vm8863_vm9, %v1136_v36  ;;  %5759 = vmatpush3.bf16.msra.mxu1 %v6488_v25  ;;  %vm8866_vm9 = vnez %v8815_v61  ;;  %v1401_v41 = vld [vmem:[#allocation5 + $0xa0] sm:$0xff]  ;;  %v1467_v12 = vsel %vm6876_vm11, %v1451_v4, 0.0  ;;  %v1459_v32 = vld [vmem:[#allocation5 + $0x71] sm:$0xff]  ;;  %v1458_v35 = vld [vmem:[#allocation5 + $0x69] sm:$0xff] }
 0x14c   : >> { %1384 = vst.msk [vmem:[#allocation6 + $0x108] sm:$0xff] %vm8864_vm10, %v1376_v37  ;;  %5697 = vmatpush3.bf16.msra.mxu0 %v6489_v38  ;;  %v1129_v10 = vsel %vm8866_vm9, %v1271_v62, 0.0  ;;  %vm8867_vm10 = vnez %v8799_v53  ;;  %v1453_v30 = vld [vmem:[#allocation5 + $0x41] sm:$0xff]  ;;  %v1452_v33 = vld [vmem:[#allocation5 + $0x39] sm:$0xff]  ;;  %v1272_v37 = vld [vmem:[#allocation5 + $0x89] sm:$0xff]  ;;  %v1289_v25 = vsel %vm8866_vm9, %v1273_v27, 0.0 }
 0x14d   : >> { %1042 = vrot.lane.b32.xlu0 %v7020_v17, %s6654_s15  ;;  %v6490_v17 = vld [vmem:[%s8739_s3 + $0xf8] sm:$0xff]   ;;  %1000 = vst.msk [vmem:[#allocation6 + $0xf0] sm:$0xff] %vm8859_vm1, %v992_v28  ;;  %6260 = vmatprep.subr.bf16.mxu0 %v7260_v21  ;;  %v1137_v14 = vpack.c.bf16 %v1129_v10, %v1270_v8  ;;  %v1368_v16 = vsel %vm8867_vm10, %v1352_v7, 0.0  ;;  %v984_v18 = vsel %vm8867_vm10, %v7143_v39, 0.0  ;;  %v1176_v39 = vsel %vm8867_vm10, %v7197_v9, 0.0  ;;  %v899_v44 = vld [vmem:[%s6941_s11 + $0xa8] sm:$0xff]  ;;  %vm8870_vm10 = vmmov %vm8868_vm0 }
 0x14e   : >> { %1314 = vrot.lane.b32.xlu1 %v1294_v0, %s6654_s15  ;;  %5760 = vmatprep.subr.bf16.mxu1 %v6490_v17  ;;  %v993_v23 = vpack.c.bf16 %v7160_v3, %v984_v18  ;;  %v1377_v24 = vpack.c.bf16 %v1353_v22, %v1368_v16  ;;  %v1185_v3 = vpack.c.bf16 %v7213_v29, %v1176_v39  ;;  %v1450_v0 = vld [vmem:[#allocation5 + $0x29] sm:$0xff]  ;;  %v1475_v29 = vsel %vm8849_vm15, %v1459_v32, 0.0  ;;  %v1461_v36 = vld [vmem:[#allocation5 + $0x81] sm:$0xff]  ;;  %vm8872_vm15 = vmmov %vm8868_vm0 }
 0x14f   : >> { %5761 = vmatpush3.bf16.msra.mxu1 %v6491_v5  ;;  %1145 = vst.msk [vmem:[#allocation6 + $0x120] sm:$0xff] %vm8859_vm1, %v1137_v14  ;;  %v1482_v9 = vpack.c.bf16 %v1467_v12, %v1450_v0  ;;  %v1486_v42 = vpack.c.bf16 %v1475_v29, %v1458_v35  ;;  %vm8871_vm1 = vmmov %vm8868_vm0  ;;  %v1297_v28 = vpack.c.bf16 %v1289_v25, %v1272_v37  ;;  %v1455_v62 = vld [vmem:[#allocation5 + $0x51] sm:$0xff]  ;;  %v1462_v7 = vld [vmem:[#allocation5 + $0x89] sm:$0xff] }
 0x150   : >> { %v922_v45 = vld [vmem:[#allocation5 + $0x7] sm:$0xff]  ;;  %6358 = vmatprep.subr.bf16.mxu1 %v7260_v21  ;;  %1001 = vst.msk [vmem:[#allocation6 + $0x118] sm:$0xff] %vm8868_vm0, %v993_v23  ;;  %v1471_v17 = vsel %vm6884_vm13, %v1455_v62, 0.0  ;;  %v1463_v5 = vld [vmem:[#allocation5 + $0x91] sm:$0xff]  ;;  %v1464_v18 = vld [vmem:[#allocation5 + $0x99] sm:$0xff] }
 0x151   : >> { %v970_v1 = vsel %vm6844_vm3, %v922_v45, 0.0  ;;  %1204 = vrot.lane.b32.xlu0 %v1183_v43, %s6654_s15  ;;  %v1477_v43 = vsel %vm8855_vm7, %v1461_v36, 0.0  ;;  %1490 = vst.msk [vmem:[#allocation6 + $0x20] sm:$0xff] %vm8870_vm10, %v1482_v9  ;;  %v1479_v11 = vsel %vm8861_vm2, %v1463_v5, 0.0  ;;  %vm8874_vm7 = vmmov %vm8868_vm0  ;;  %v6493_v4 = vld [vmem:[%s8739_s3 + $0x108] sm:$0xff]   ;;  %v6494_v32 = vld [vmem:[%s8739_s3 + $0x110] sm:$0xff]  }
 0x152   : >> { %v986_v15 = vpack.c.bf16 %v923_v34, %v970_v1  ;;  %1428 = vrot.lane.b32.xlu1 %v7060_v40, %s6654_s15  ;;  %v1469_v34 = vsel %vm6880_vm12, %v1453_v30, 0.0  ;;  %921 = vst.msk [vmem:[#allocation5 + $0xa8] sm:$0xff] %vm8871_vm1, %v899_v44  ;;  %v1454_v1 = vld [vmem:[#allocation5 + $0x49] sm:$0xff]  ;;  %v1488_v16 = vpack.c.bf16 %v1479_v11, %v1462_v7  ;;  %vm8875_vm10 = vmmov %vm8868_vm0  ;;  %v6497_v44 = vld [vmem:[%s8739_s3 + $0x128] sm:$0xff]  }
 0x153   : >> { %v1483_v38 = vpack.c.bf16 %v1469_v34, %v1452_v33  ;;  %1494 = vst.msk [vmem:[#allocation6 + $0xc0] sm:$0xff] %vm8872_vm15, %v1486_v42  ;;  %vm8876_vm1 = vmmov %vm8868_vm0  ;;  %vm8877_vm15 = vcmask 1048064   ;;  %v6495_v35 = vld [vmem:[%s8739_s3 + $0x118] sm:$0xff]   ;;  %v6496_v25 = vld [vmem:[%s8739_s3 + $0x120] sm:$0xff]  }
 0x154   : >> { %994 = vst.msk [vmem:[#allocation6] sm:$0xff] %vm8865_vm8, %v986_v15  ;;  %vm8869_vm8 = vmmov %vm8868_vm0  ;;  %v1457_v15 = vld [vmem:[#allocation5 + $0x61] sm:$0xff] }
 0x155   : >> { %1044 = vrot.lane.b32.xlu0 %v7035_v26, %s6654_s15  ;;  %1385 = vst.msk [vmem:[#allocation6 + $0x130] sm:$0xff] %vm8869_vm8, %v1377_v24  ;;  %v1296_v26 = vpack.c.bf16 %v1287_v20, %v1270_v8  ;;  %vm8873_vm8 = vmmov %vm8868_vm0  ;;  %v1456_v8 = vld [vmem:[#allocation5 + $0x59] sm:$0xff]  ;;  %v1473_v10 = vsel %vm6888_vm14, %v1457_v15, 0.0 }
 0x156   : >> { %1316 = vrot.lane.b32.xlu1 %v1295_v6, %s6654_s15  ;;  %1491 = vst.msk [vmem:[#allocation6 + $0x48] sm:$0xff] %vm8868_vm0, %v1483_v38  ;;  %v1484_v6 = vpack.c.bf16 %v1471_v17, %v1454_v1  ;;  %v1485_v14 = vpack.c.bf16 %v1473_v10, %v1456_v8  ;;  %vm8878_vm2 = vmmov %vm8877_vm15  ;;  %v6498_v17 = vld [vmem:[%s8739_s3 + $0x130] sm:$0xff]   ;;  %v6499_v10 = vld [vmem:[%s8739_s3 + $0x138] sm:$0xff]  }
 0x157   : >> { %1496 = vst.msk [vmem:[#allocation6 + $0x110] sm:$0xff] %vm8876_vm1, %v1488_v16  ;;  %vm8883_vm1 = vmmov %vm8878_vm2 }
 0x158   : >> { %1492 = vst.msk [vmem:[#allocation6 + $0x70] sm:$0xff] %vm8874_vm7, %v1484_v6  ;;  %vm8880_vm7 = vmmov %vm8878_vm2 }
 0x159   : >> { %1206 = vrot.lane.b32.xlu0 %v1184_v19, %s6654_s15  ;;  %v1465_v19 = vld [vmem:[#allocation5 + $0xa1] sm:$0xff]  ;;  %1493 = vst.msk [vmem:[#allocation6 + $0x98] sm:$0xff] %vm8875_vm10, %v1485_v14  ;;  %vm8882_vm10 = vmmov %vm8878_vm2 }
 0x15a   : >> { %1430 = vrot.lane.b32.xlu1 %v7069_v63, %s6654_s15  ;;  %v1409_v63 = vpack.c.bf16 %v1401_v41, %v1400_v2 }
 0x15d   : >> { %1046 = vrot.lane.b32.xlu0 %v7045_v31, %s6654_s15  ;;  %v1460_v31 = vld [vmem:[#allocation5 + $0x79] sm:$0xff] }
 0x15e   : >> { %1318 = vrot.lane.b32.xlu1 %v1296_v26, %s6654_s15  ;;  %v1487_v45 = vpack.c.bf16 %v1477_v43, %v1460_v31 }
 0x160   : >> { %1495 = vst.msk [vmem:[#allocation6 + $0xe8] sm:$0xff] %vm8873_vm8, %v1487_v45  ;;  %vm8879_vm8 = vmmov %vm8878_vm2 }
 0x161   : >> { %1208 = vrot.lane.b32.xlu0 %v1185_v3, %s6654_s15 }
 0x162   : >> { %1432 = vrot.lane.b32.xlu1 %v1409_v63, %s6654_s15 }
 0x165   : >> { %1048 = vrot.lane.b32.xlu0 %v7060_v40, %s6654_s15  ;;  %v1481_v40 = vsel %vm8866_vm9, %v1465_v19, 0.0  ;;  %vm8881_vm9 = vmmov %vm8878_vm2 }
 0x166   : >> { %1320 = vrot.lane.b32.xlu1 %v1297_v28, %s6654_s15  ;;  %v1489_v20 = vpack.c.bf16 %v1481_v40, %v1464_v18 }
 0x168   : >> { %1497 = vst.msk [vmem:[#allocation6 + $0x138] sm:$0xff] %vm8868_vm0, %v1489_v20  ;;  %vm8884_vm0 = vmmov %vm8883_vm1 }
 0x19b   : >> { %v1195_v22 = vpop.permute.xlu0 %1194 }
 0x19c   : >> { %v1035_v23 = vpop.permute.xlu1 %1034  ;;  %1218 = vst.msk [vmem:[#allocation6 + $0x8] sm:$0xff] %vm8877_vm15, %v1195_v22  ;;  %vm8885_vm15 = vmmov %vm8884_vm0 }
 0x19d   : >> { %1058 = vst.msk [vmem:[#allocation6] sm:$0xff] %vm8878_vm2, %v1035_v23  ;;  %vm8886_vm2 = vmmov %vm8884_vm0 }
 0x19f   : >> { %v1419_v24 = vpop.permute.xlu0 %1418 }
 0x1a0   : >> { %v1307_v26 = vpop.permute.xlu1 %1306  ;;  %1442 = vst.msk [vmem:[#allocation6 + $0x18] sm:$0xff] %vm8879_vm8, %v1419_v24  ;;  %vm8887_vm8 = vmmov %vm8884_vm0 }
 0x1a1   : >> { %1330 = vst.msk [vmem:[#allocation6 + $0x10] sm:$0xff] %vm8880_vm7, %v1307_v26  ;;  %vm8888_vm7 = vmmov %vm8884_vm0 }
 0x1a3   : >> { %v1197_v39 = vpop.permute.xlu0 %1196  ;;  %v1499_v2 = vld [vmem:[#allocation6 + $0x8] sm:$0xff] }
 0x1a4   : >> { %v1421_v41 = vpop.permute.xlu1 %1420  ;;  %v1498_v27 = vld [vmem:[#allocation6] sm:$0xff]  ;;  %1219 = vst.msk [vmem:[#allocation6 + $0x30] sm:$0xff] %vm8881_vm9, %v1197_v39  ;;  %1896 = vmatprep.mubr.bf16.mxu0 %v1499_v2  ;;  %vm8889_vm9 = vmmov %vm8884_vm0 }
 0x1a5   : >> { %1443 = vst.msk [vmem:[#allocation6 + $0x40] sm:$0xff] %vm8882_vm10, %v1421_v41  ;;  %1897 = vmatmul.mubr.bf16.vlgmr.msra.gmra.mrb[0].mxu0 %v1498_v27  ;;  %vm8890_vm10 = vmmov %vm8884_vm0 }
 0x1a6   : >> { %6261 = vmatpush3.bf16.msra.mxu0 %v7260_v21 }
 0x1a7   : >> { %v1037_v3 = vpop.permute.xlu0 %1036  ;;  %v1501_v0 = vld [vmem:[#allocation6 + $0x18] sm:$0xff]  ;;  %6262 = vmatprep.subr.bf16.mxu0 %v6493_v4 }
 0x1a8   : >> { %v1309_v12 = vpop.permute.xlu1 %1308  ;;  %v1500_v30 = vld [vmem:[#allocation6 + $0x10] sm:$0xff]  ;;  %1059 = vst.msk [vmem:[#allocation6 + $0x28] sm:$0xff] %vm8883_vm1, %v1037_v3  ;;  %1993 = vmatprep.mubr.bf16.mxu1 %v1501_v0  ;;  %vm8891_vm1 = vmmov %vm8884_vm0 }
 0x1a9   : >> { %1331 = vst.msk [vmem:[#allocation6 + $0x38] sm:$0xff] %vm8884_vm0, %v1309_v12  ;;  %1994 = vmatmul.mubr.bf16.vlgmr.msra.gmra.mrb[0].mxu1 %v1500_v30 }
 0x1aa   : >> { %6366 = vmatpush3.bf16.msra.mxu1 %v7260_v21  ;;  %6263 = vmatpush3.bf16.msra.mxu0 %v6493_v4 }
 0x1ab   : >> { %v1199_v63 = vpop.permute.xlu0 %1198  ;;  %v1504_v33 = vld [vmem:[#allocation6 + $0x30] sm:$0xff]  ;;  %6359 = vmatprep.subr.bf16.mxu1 %v6493_v4  ;;  %6264 = vmatprep.subr.bf16.mxu0 %v6494_v32 }
 0x1ac   : >> { %v1423_v9 = vpop.permute.xlu1 %1422  ;;  %v1506_v34 = vld [vmem:[#allocation6 + $0x40] sm:$0xff]  ;;  %1220 = vst.msk [vmem:[#allocation6 + $0x58] sm:$0xff] %vm8885_vm15, %v1199_v63  ;;  %1904 = vmatprep.mubr.bf16.mxu0 %v1504_v33  ;;  %vm8892_vm15 = vmmov %vm8884_vm0 }
 0x1ad   : >> { %1444 = vst.msk [vmem:[#allocation6 + $0x68] sm:$0xff] %vm8886_vm2, %v1423_v9  ;;  %2001 = vmatprep.mubr.bf16.mxu1 %v1506_v34  ;;  %vm8893_vm2 = vmmov %vm8884_vm0 }
 0x1ae   : >> { %6367 = vmatpush3.bf16.msra.mxu1 %v6493_v4  ;;  %6265 = vmatpush3.bf16.msra.mxu0 %v6494_v32 }
 0x1af   : >> { %v1039_v21 = vpop.permute.xlu0 %1038  ;;  %v1503_v36 = vld [vmem:[#allocation6 + $0x28] sm:$0xff]  ;;  %6360 = vmatprep.subr.bf16.mxu1 %v6494_v32  ;;  %6266 = vmatprep.subr.bf16.mxu0 %v6495_v35 }
 0x1b0   : >> { %v1311_v29 = vpop.permute.xlu1 %1310  ;;  %v1505_v37 = vld [vmem:[#allocation6 + $0x38] sm:$0xff]  ;;  %1060 = vst.msk [vmem:[#allocation6 + $0x50] sm:$0xff] %vm8887_vm8, %v1039_v21  ;;  %1905 = vmatmul.mubr.bf16.gmra.mrb[4].mxu0 %v1503_v36  ;;  %vm8894_vm8 = vmmov %vm8884_vm0 }
 0x1b1   : >> { %1332 = vst.msk [vmem:[#allocation6 + $0x60] sm:$0xff] %vm8888_vm7, %v1311_v29  ;;  %2002 = vmatmul.mubr.bf16.gmra.mrb[4].mxu1 %v1505_v37  ;;  %vm8895_vm7 = vmmov %vm8884_vm0  ;;  %v1502_v37 = vld [vmem:[#allocation6 + $0x20] sm:$0xff] }
 0x1b2   : >> { %6368 = vmatpush3.bf16.msra.mxu1 %v6494_v32  ;;  %6267 = vmatpush3.bf16.msra.mxu0 %v6495_v35 }
 0x1b3   : >> { %v1201_v38 = vpop.permute.xlu0 %1200  ;;  %v1509_v31 = vld [vmem:[#allocation6 + $0x58] sm:$0xff]  ;;  %6361 = vmatprep.subr.bf16.mxu1 %v6495_v35  ;;  %6268 = vmatprep.subr.bf16.mxu0 %v6496_v25 }
 0x1b4   : >> { %v1425_v42 = vpop.permute.xlu1 %1424  ;;  %v1511_v43 = vld [vmem:[#allocation6 + $0x68] sm:$0xff]  ;;  %1221 = vst.msk [vmem:[#allocation6 + $0x80] sm:$0xff] %vm8889_vm9, %v1201_v38  ;;  %1912 = vmatprep.mubr.bf16.mxu0 %v1509_v31  ;;  %vm8896_vm9 = vmmov %vm8884_vm0 }
 0x1b5   : >> { %1445 = vst.msk [vmem:[#allocation6 + $0x90] sm:$0xff] %vm8890_vm10, %v1425_v42  ;;  %2009 = vmatprep.mubr.bf16.mxu1 %v1511_v43  ;;  %vm8897_vm10 = vmmov %vm8884_vm0  ;;  %v1522_v42 = vld [vmem:[#allocation6 + $0xc0] sm:$0xff]  ;;  %v1507_v31 = vld [vmem:[#allocation6 + $0x48] sm:$0xff] }
 0x1b6   : >> { %6369 = vmatpush3.bf16.msra.mxu1 %v6495_v35  ;;  %6269 = vmatpush3.bf16.msra.mxu0 %v6496_v25  ;;  %v1527_v43 = vld [vmem:[#allocation6 + $0xe8] sm:$0xff] }
 0x1b7   : >> { %v1041_v45 = vpop.permute.xlu0 %1040  ;;  %v1508_v62 = vld [vmem:[#allocation6 + $0x50] sm:$0xff]  ;;  %6362 = vmatprep.subr.bf16.mxu1 %v6496_v25  ;;  %6270 = vmatprep.subr.bf16.mxu0 %v6497_v44 }
 0x1b8   : >> { %v1313_v28 = vpop.permute.xlu1 %1312  ;;  %v1510_v1 = vld [vmem:[#allocation6 + $0x60] sm:$0xff]  ;;  %1061 = vst.msk [vmem:[#allocation6 + $0x78] sm:$0xff] %vm8891_vm1, %v1041_v45  ;;  %1913 = vmatmul.mubr.bf16.gmra.mrb[8].mxu0 %v1508_v62  ;;  %vm8898_vm1 = vmmov %vm8884_vm0  ;;  %v1532_v45 = vld [vmem:[#allocation6 + $0x110] sm:$0xff] }
 0x1b9   : >> { %1333 = vst.msk [vmem:[#allocation6 + $0x88] sm:$0xff] %vm8884_vm0, %v1313_v28  ;;  %2010 = vmatmul.mubr.bf16.gmra.mrb[8].mxu1 %v1510_v1  ;;  %v1517_v28 = vld [vmem:[#allocation6 + $0x98] sm:$0xff] }
 0x1ba   : >> { %6370 = vmatpush3.bf16.msra.mxu1 %v6496_v25  ;;  %6271 = vmatpush3.bf16.msra.mxu0 %v6497_v44  ;;  %v1537_v62 = vld [vmem:[#allocation6 + $0x138] sm:$0xff] }
 0x1bb   : >> { %v1203_v15 = vpop.permute.xlu0 %1202  ;;  %v1514_v6 = vld [vmem:[#allocation6 + $0x80] sm:$0xff]  ;;  %6363 = vmatprep.subr.bf16.mxu1 %v6497_v44  ;;  %6272 = vmatprep.subr.bf16.mxu0 %v6498_v17 }
 0x1bc   : >> { %v1427_v5 = vpop.permute.xlu1 %1426  ;;  %v1516_v8 = vld [vmem:[#allocation6 + $0x90] sm:$0xff]  ;;  %1222 = vst.msk [vmem:[#allocation6 + $0xa8] sm:$0xff] %vm8892_vm15, %v1203_v15  ;;  %1920 = vmatprep.mubr.bf16.mxu0 %v1514_v6  ;;  %vm8899_vm15 = vmmov %vm8884_vm0 }
 0x1bd   : >> { %1446 = vst.msk [vmem:[#allocation6 + $0xb8] sm:$0xff] %vm8893_vm2, %v1427_v5  ;;  %2017 = vmatprep.mubr.bf16.mxu1 %v1516_v8  ;;  %vm8900_vm2 = vmmov %vm8884_vm0 }
 0x1be   : >> { %6371 = vmatpush3.bf16.msra.mxu1 %v6497_v44  ;;  %6273 = vmatpush3.bf16.msra.mxu0 %v6498_v17  ;;  %v1512_v44 = vld [vmem:[#allocation6 + $0x70] sm:$0xff] }
 0x1bf   : >> { %v1043_v7 = vpop.permute.xlu0 %1042  ;;  %v1513_v14 = vld [vmem:[#allocation6 + $0x78] sm:$0xff]  ;;  %6364 = vmatprep.subr.bf16.mxu1 %v6498_v17  ;;  %6274 = vmatprep.subr.bf16.mxu0 %v6499_v10 }
 0x1c0   : >> { %v1315_v11 = vpop.permute.xlu1 %1314  ;;  %v1515_v16 = vld [vmem:[#allocation6 + $0x88] sm:$0xff]  ;;  %1062 = vst.msk [vmem:[#allocation6 + $0xa0] sm:$0xff] %vm8894_vm8, %v1043_v7  ;;  %1921 = vmatmul.mubr.bf16.gmra.mrb[12].mxu0 %v1513_v14  ;;  %vm8901_vm8 = vmmov %vm8884_vm0 }
 0x1c1   : >> { %1334 = vst.msk [vmem:[#allocation6 + $0xb0] sm:$0xff] %vm8895_vm7, %v1315_v11  ;;  %2018 = vmatmul.mubr.bf16.gmra.mrb[12].mxu1 %v1515_v16  ;;  %vm8902_vm7 = vmmov %vm8884_vm0 }
 0x1c2   : >> { %6372 = vmatpush3.bf16.msra.mxu1 %v6498_v17  ;;  %6275 = vmatpush3.bf16.msra.mxu0 %v6499_v10 }
 0x1c3   : >> { %v1205_v18 = vpop.permute.xlu0 %1204  ;;  %v1519_v40 = vld [vmem:[#allocation6 + $0xa8] sm:$0xff]  ;;  %6365 = vmatprep.subr.bf16.mxu1 %v6499_v10 }
 0x1c4   : >> { %v1429_v19 = vpop.permute.xlu1 %1428  ;;  %v1521_v20 = vld [vmem:[#allocation6 + $0xb8] sm:$0xff]  ;;  %1223 = vst.msk [vmem:[#allocation6 + $0xd0] sm:$0xff] %vm8896_vm9, %v1205_v18  ;;  %1928 = vmatprep.mubr.bf16.mxu0 %v1519_v40  ;;  %vm8903_vm9 = vmmov %vm8884_vm0 }
 0x1c5   : >> { %1447 = vst.msk [vmem:[#allocation6 + $0xe0] sm:$0xff] %vm8897_vm10, %v1429_v19  ;;  %2025 = vmatprep.mubr.bf16.mxu1 %v1521_v20  ;;  %vm8904_vm10 = vmmov %vm8884_vm0 }
 0x1c6   : >> { %6373 = vmatpush3.bf16.msra.mxu1 %v6499_v10 }
 0x1c7   : >> { %v1045_v22 = vpop.permute.xlu0 %1044  ;;  %v1518_v24 = vld [vmem:[#allocation6 + $0xa0] sm:$0xff] }
 0x1c8   : >> { %v1317_v23 = vpop.permute.xlu1 %1316  ;;  %v1520_v26 = vld [vmem:[#allocation6 + $0xb0] sm:$0xff]  ;;  %1063 = vst.msk [vmem:[#allocation6 + $0xc8] sm:$0xff] %vm8898_vm1, %v1045_v22  ;;  %1929 = vmatmul.mubr.bf16.gmra.mrb[16].mxu0 %v1518_v24  ;;  %vm8905_vm1 = vmmov %vm8884_vm0 }
 0x1c9   : >> { %1335 = vst.msk [vmem:[#allocation6 + $0xd8] sm:$0xff] %vm8884_vm0, %v1317_v23  ;;  %2026 = vmatmul.mubr.bf16.gmra.mrb[16].mxu1 %v1520_v26 }
 0x1cb   : >> { %v1207_v39 = vpop.permute.xlu0 %1206  ;;  %v1524_v41 = vld [vmem:[#allocation6 + $0xd0] sm:$0xff] }
 0x1cc   : >> { %v1431_v2 = vpop.permute.xlu1 %1430  ;;  %v1526_v27 = vld [vmem:[#allocation6 + $0xe0] sm:$0xff]  ;;  %1224 = vst.msk [vmem:[#allocation6 + $0xf8] sm:$0xff] %vm8899_vm15, %v1207_v39  ;;  %1936 = vmatprep.mubr.bf16.mxu0 %v1524_v41 }
 0x1cd   : >> { %1448 = vst.msk [vmem:[#allocation6 + $0x108] sm:$0xff] %vm8900_vm2, %v1431_v2  ;;  %2033 = vmatprep.mubr.bf16.mxu1 %v1526_v27 }
 0x1cf   : >> { %v1047_v4 = vpop.permute.xlu0 %1046  ;;  %v1523_v0 = vld [vmem:[#allocation6 + $0xc8] sm:$0xff] }
 0x1d0   : >> { %v1319_v3 = vpop.permute.xlu1 %1318  ;;  %v1525_v12 = vld [vmem:[#allocation6 + $0xd8] sm:$0xff]  ;;  %1064 = vst.msk [vmem:[#allocation6 + $0xf0] sm:$0xff] %vm8901_vm8, %v1047_v4  ;;  %1937 = vmatmul.mubr.bf16.gmra.mrb[20].mxu0 %v1523_v0 }
 0x1d1   : >> { %1336 = vst.msk [vmem:[#allocation6 + $0x100] sm:$0xff] %vm8902_vm7, %v1319_v3  ;;  %2034 = vmatmul.mubr.bf16.gmra.mrb[20].mxu1 %v1525_v12 }
 0x1d3   : >> { %v1209_v30 = vpop.permute.xlu0 %1208  ;;  %v1529_v63 = vld [vmem:[#allocation6 + $0xf8] sm:$0xff] }
 0x1d4   : >> { %v1433_v32 = vpop.permute.xlu1 %1432  ;;  %v1531_v9 = vld [vmem:[#allocation6 + $0x108] sm:$0xff]  ;;  %1225 = vst.msk [vmem:[#allocation6 + $0x120] sm:$0xff] %vm8903_vm9, %v1209_v30  ;;  %1944 = vmatprep.mubr.bf16.mxu0 %v1529_v63 }
 0x1d5   : >> { %1449 = vst.msk [vmem:[#allocation6 + $0x130] sm:$0xff] %vm8904_vm10, %v1433_v32  ;;  %2041 = vmatprep.mubr.bf16.mxu1 %v1531_v9 }
 0x1d7   : >> { %v1049_v33 = vpop.permute.xlu0 %1048  ;;  %v1528_v35 = vld [vmem:[#allocation6 + $0xf0] sm:$0xff] }
 0x1d8   : >> { %v1321_v34 = vpop.permute.xlu1 %1320  ;;  %v1530_v21 = vld [vmem:[#allocation6 + $0x100] sm:$0xff]  ;;  %1065 = vst.msk [vmem:[#allocation6 + $0x118] sm:$0xff] %vm8905_vm1, %v1049_v33  ;;  %1945 = vmatmul.mubr.bf16.gmra.mrb[24].mxu0 %v1528_v35 }
 0x1d9   : >> { %1337 = vst.msk [vmem:[#allocation6 + $0x128] sm:$0xff] %vm8884_vm0, %v1321_v34  ;;  %2042 = vmatmul.mubr.bf16.gmra.mrb[24].mxu1 %v1530_v21 }
 0x1db   : >> { %v1534_v29 = vld [vmem:[#allocation6 + $0x120] sm:$0xff] }
 0x1dc   : >> { %v1536_v36 = vld [vmem:[#allocation6 + $0x130] sm:$0xff]  ;;  %1952 = vmatprep.mubr.bf16.mxu0 %v1534_v29 }
 0x1dd   : >> { %2049 = vmatprep.mubr.bf16.mxu1 %v1536_v36 }
 0x1df   : >> { %v1533_v25 = vld [vmem:[#allocation6 + $0x118] sm:$0xff] }
 0x1e0   : >> { %v1535_v38 = vld [vmem:[#allocation6 + $0x128] sm:$0xff]  ;;  %1953 = vmatmul.mubr.bf16.gmra.mrb[28].mxu0 %v1533_v25 }
 0x1e1   : >> { %2050 = vmatmul.mubr.bf16.gmra.mrb[28].mxu1 %v1535_v38  ;;  %6276 = vmatprep.mubr.bf16.mxu0 %v1502_v37 }
 0x1e2   : >> { %6284 = vmatprep.mubr.bf16.mxu1 %v1522_v42 }
 0x1e8   : >> { %6277 = vmatmul.mubr.bf16.vlgmr.msra.gmra.mrb[32].mxu0 %v1507_v31 }
 0x1e9   : >> { %6285 = vmatmul.mubr.bf16.vlgmr.msra.gmra.mrb[32].mxu1 %v1527_v43  ;;  %6280 = vmatprep.mubr.bf16.mxu0 %v1512_v44 }
 0x1ea   : >> { %6288 = vmatprep.mubr.bf16.mxu1 %v1532_v45 }
 0x1f0   : >> { %6281 = vmatmul.mubr.bf16.gmra.mrb[36].mxu0 %v1517_v28 }
 0x1f1   : >> { %6289 = vmatmul.mubr.bf16.gmra.mrb[36].mxu1 %v1537_v62 }
 0x278   : >> { %v5698_v1 = vpop.f32.mrb[0].mxu0 }
 0x279   : >> { %v5699_v17 = vpop.f32.mrb[1].mxu0 }
 0x27a   : >> { %v5700_v15 = vadd.f32 %v5699_v17, %v5698_v1  ;;  %v5701_v5 = vpop.f32.mrb[2].mxu0 }
 0x27b   : >> { %v5702_v6 = vpop.f32.mrb[3].mxu0 }
 0x27c   : >> { %v5703_v8 = vadd.f32 %v5702_v6, %v5701_v5  ;;  %v5762_v10 = vpop.f32.mrb[0].mxu1  ;;  %v1899_v11 = vadd.f32 %v5700_v15, %v6842_v13 }
 0x27d   : >> { %v5763_v7 = vpop.f32.mrb[1].mxu1 }
 0x27e   : >> { %v5764_v14 = vadd.f32 %v5763_v7, %v5762_v10  ;;  %v5765_v16 = vpop.f32.mrb[2].mxu1  ;;  %v1902_v19 = vadd.f32 %v5703_v8, %v6842_v13 }
 0x27f   : >> { %v5766_v18 = vpop.f32.mrb[3].mxu1 }
 0x280   : >> { %v5767_v40 = vadd.f32 %v5766_v18, %v5765_v16  ;;  %v7388_v20 = vadd.f32 %v5764_v14, %v1899_v11 }
 0x282   : >> { %v7390_v22 = vadd.f32 %v5767_v40, %v1902_v19 }
 0x283   : >> { %v5704_v23 = vpop.f32.mrb[4].mxu0 }
 0x284   : >> { %v5705_v24 = vpop.f32.mrb[5].mxu0  ;;  %v5768_v26 = vpop.f32.mrb[4].mxu1 }
 0x285   : >> { %v5706_v39 = vadd.f32 %v5705_v24, %v5704_v23  ;;  %v5707_v2 = vpop.f32.mrb[6].mxu0  ;;  %v5769_v41 = vpop.f32.mrb[5].mxu1 }
 0x286   : >> { %v5770_v27 = vadd.f32 %v5769_v41, %v5768_v26  ;;  %v5708_v4 = vpop.f32.mrb[7].mxu0  ;;  %v5771_v3 = vpop.f32.mrb[6].mxu1 }
 0x287   : >> { %v1907_v0 = vadd.f32 %v5706_v39, %v6842_v13  ;;  %v5709_v12 = vadd.f32 %v5708_v4, %v5707_v2  ;;  %v5772_v30 = vpop.f32.mrb[7].mxu1 }
 0x288   : >> { %v5773_v32 = vadd.f32 %v5772_v30, %v5771_v3 }
 0x289   : >> { %v1910_v63 = vadd.f32 %v5709_v12, %v6842_v13  ;;  %v7394_v9 = vadd.f32 %v5770_v27, %v1907_v0 }
 0x28b   : >> { %v5710_v33 = vpop.f32.mrb[8].mxu0  ;;  %v7396_v34 = vadd.f32 %v5773_v32, %v1910_v63 }
 0x28c   : >> { %v5711_v35 = vpop.f32.mrb[9].mxu0  ;;  %v5774_v21 = vpop.f32.mrb[8].mxu1 }
 0x28d   : >> { %v5712_v29 = vadd.f32 %v5711_v35, %v5710_v33  ;;  %v5713_v36 = vpop.f32.mrb[10].mxu0  ;;  %v5775_v37 = vpop.f32.mrb[9].mxu1 }
 0x28e   : >> { %v5776_v25 = vadd.f32 %v5775_v37, %v5774_v21  ;;  %v5714_v38 = vpop.f32.mrb[11].mxu0  ;;  %v5777_v42 = vpop.f32.mrb[10].mxu1 }
 0x28f   : >> { %v1915_v31 = vadd.f32 %v5712_v29, %v6842_v13  ;;  %v5715_v43 = vadd.f32 %v5714_v38, %v5713_v36  ;;  %v5778_v44 = vpop.f32.mrb[11].mxu1 }
 0x290   : >> { %v5779_v45 = vadd.f32 %v5778_v44, %v5777_v42 }
 0x291   : >> { %v1918_v28 = vadd.f32 %v5715_v43, %v6842_v13  ;;  %v7400_v62 = vadd.f32 %v5776_v25, %v1915_v31 }
 0x293   : >> { %v5716_v1 = vpop.f32.mrb[12].mxu0  ;;  %v7402_v17 = vadd.f32 %v5779_v45, %v1918_v28 }
 0x294   : >> { %v5717_v15 = vpop.f32.mrb[13].mxu0  ;;  %v5780_v5 = vpop.f32.mrb[12].mxu1 }
 0x295   : >> { %v5718_v6 = vadd.f32 %v5717_v15, %v5716_v1  ;;  %v5719_v8 = vpop.f32.mrb[14].mxu0  ;;  %v5781_v10 = vpop.f32.mrb[13].mxu1 }
 0x296   : >> { %v5782_v7 = vadd.f32 %v5781_v10, %v5780_v5  ;;  %v5720_v11 = vpop.f32.mrb[15].mxu0  ;;  %v5783_v14 = vpop.f32.mrb[14].mxu1 }
 0x297   : >> { %v1923_v16 = vadd.f32 %v5718_v6, %v6842_v13  ;;  %v5721_v18 = vadd.f32 %v5720_v11, %v5719_v8  ;;  %v5784_v19 = vpop.f32.mrb[15].mxu1 }
 0x298   : >> { %v5785_v40 = vadd.f32 %v5784_v19, %v5783_v14 }
 0x299   : >> { %v1926_v23 = vadd.f32 %v5721_v18, %v6842_v13  ;;  %v7406_v24 = vadd.f32 %v5782_v7, %v1923_v16 }
 0x29b   : >> { %v5722_v26 = vpop.f32.mrb[16].mxu0  ;;  %v7408_v39 = vadd.f32 %v5785_v40, %v1926_v23 }
 0x29c   : >> { %v5723_v2 = vpop.f32.mrb[17].mxu0  ;;  %v5786_v41 = vpop.f32.mrb[16].mxu1 }
 0x29d   : >> { %v5724_v27 = vadd.f32 %v5723_v2, %v5722_v26  ;;  %v5725_v4 = vpop.f32.mrb[18].mxu0  ;;  %v5787_v3 = vpop.f32.mrb[17].mxu1 }
 0x29e   : >> { %v5788_v0 = vadd.f32 %v5787_v3, %v5786_v41  ;;  %v5726_v12 = vpop.f32.mrb[19].mxu0  ;;  %v5789_v30 = vpop.f32.mrb[18].mxu1 }
 0x29f   : >> { %v1931_v32 = vadd.f32 %v5724_v27, %v6842_v13  ;;  %v5727_v63 = vadd.f32 %v5726_v12, %v5725_v4  ;;  %v5790_v33 = vpop.f32.mrb[19].mxu1 }
 0x2a0   : >> { %v5791_v35 = vadd.f32 %v5790_v33, %v5789_v30 }
 0x2a1   : >> { %v1934_v21 = vadd.f32 %v5727_v63, %v6842_v13  ;;  %v2028_v29 = vadd.f32 %v5788_v0, %v1931_v32 }
 0x2a3   : >> { %v5728_v36 = vpop.f32.mrb[20].mxu0  ;;  %v7412_v37 = vadd.f32 %v5791_v35, %v1934_v21 }
 0x2a4   : >> { %v5729_v25 = vpop.f32.mrb[21].mxu0  ;;  %v5792_v38 = vpop.f32.mrb[20].mxu1 }
 0x2a5   : >> { %v5730_v42 = vadd.f32 %v5729_v25, %v5728_v36  ;;  %v5731_v31 = vpop.f32.mrb[22].mxu0  ;;  %v5793_v43 = vpop.f32.mrb[21].mxu1 }
 0x2a6   : >> { %v5794_v44 = vadd.f32 %v5793_v43, %v5792_v38  ;;  %v5732_v45 = vpop.f32.mrb[23].mxu0  ;;  %v5795_v28 = vpop.f32.mrb[22].mxu1 }
 0x2a7   : >> { %v1939_v1 = vadd.f32 %v5730_v42, %v6842_v13  ;;  %v5733_v15 = vadd.f32 %v5732_v45, %v5731_v31  ;;  %v5796_v5 = vpop.f32.mrb[23].mxu1 }
 0x2a8   : >> { %v5797_v6 = vadd.f32 %v5796_v5, %v5795_v28 }
 0x2a9   : >> { %v1942_v8 = vadd.f32 %v5733_v15, %v6842_v13  ;;  %v2036_v10 = vadd.f32 %v5794_v44, %v1939_v1 }
 0x2ab   : >> { %v5734_v7 = vpop.f32.mrb[24].mxu0  ;;  %v2039_v11 = vadd.f32 %v5797_v6, %v1942_v8 }
 0x2ac   : >> { %v5735_v14 = vpop.f32.mrb[25].mxu0  ;;  %v5798_v16 = vpop.f32.mrb[24].mxu1 }
 0x2ad   : >> { %v5736_v18 = vadd.f32 %v5735_v14, %v5734_v7  ;;  %v5737_v19 = vpop.f32.mrb[26].mxu0  ;;  %v5799_v40 = vpop.f32.mrb[25].mxu1 }
 0x2ae   : >> { %v5800_v23 = vadd.f32 %v5799_v40, %v5798_v16  ;;  %v5738_v26 = vpop.f32.mrb[27].mxu0  ;;  %v5801_v2 = vpop.f32.mrb[26].mxu1 }
 0x2af   : >> { %v1947_v41 = vadd.f32 %v5736_v18, %v6842_v13  ;;  %v5739_v27 = vadd.f32 %v5738_v26, %v5737_v19  ;;  %v5802_v4 = vpop.f32.mrb[27].mxu1 }
 0x2b0   : >> { %v5803_v3 = vadd.f32 %v5802_v4, %v5801_v2 }
 0x2b1   : >> { %v1950_v0 = vadd.f32 %v5739_v27, %v6842_v13  ;;  %v7418_v12 = vadd.f32 %v5800_v23, %v1947_v41 }
 0x2b3   : >> { %v5740_v30 = vpop.f32.mrb[28].mxu0  ;;  %v7420_v32 = vadd.f32 %v5803_v3, %v1950_v0 }
 0x2b4   : >> { %v5741_v63 = vpop.f32.mrb[29].mxu0  ;;  %v5804_v33 = vpop.f32.mrb[28].mxu1 }
 0x2b5   : >> { %v5742_v35 = vadd.f32 %v5741_v63, %v5740_v30  ;;  %v5743_v21 = vpop.f32.mrb[30].mxu0  ;;  %v5805_v36 = vpop.f32.mrb[29].mxu1 }
 0x2b6   : >> { %v5806_v25 = vadd.f32 %v5805_v36, %v5804_v33  ;;  %v5744_v38 = vpop.f32.mrb[31].mxu0  ;;  %v5807_v42 = vpop.f32.mrb[30].mxu1 }
 0x2b7   : >> { %v1955_v31 = vadd.f32 %v5742_v35, %v6842_v13  ;;  %v5745_v43 = vadd.f32 %v5744_v38, %v5743_v21  ;;  %v5808_v44 = vpop.f32.mrb[31].mxu1 }
 0x2b8   : >> { %v5809_v45 = vadd.f32 %v5808_v44, %v5807_v42 }
 0x2b9   : >> { %v1958_v28 = vadd.f32 %v5745_v43, %v6842_v13  ;;  %v2052_v1 = vadd.f32 %v5806_v25, %v1955_v31 }
 0x2bb   : >> { %v6278_v15 = vpop.f32.mrb[32].mxu0  ;;  %v2055_v5 = vadd.f32 %v5809_v45, %v1958_v28 }
 0x2bc   : >> { %v2101_v6 = vadd.f32 %v6278_v15, %v7394_v9  ;;  %v2092_v8 = vpop.f32.mrb[33].mxu0  ;;  %v6286_v7 = vpop.f32.mrb[32].mxu1 }
 0x2bd   : >> { %v2093_v14 = vadd.f32 %v2092_v8, %v7388_v20  ;;  %v2133_v16 = vadd.f32 %v6286_v7, %v2036_v10  ;;  %v6279_v18 = vpop.f32.mrb[34].mxu0  ;;  %v2124_v19 = vpop.f32.mrb[33].mxu1 }
 0x2be   : >> { %v2157_v40 = vmul.f32 0.05, %v2101_v6  ;;  %v2104_v23 = vadd.f32 %v6279_v18, %v7396_v34  ;;  %v2125_v26 = vadd.f32 %v2124_v19, %v2028_v29  ;;  %v2095_v2 = vpop.f32.mrb[35].mxu0  ;;  %v6287_v41 = vpop.f32.mrb[34].mxu1 }
 0x2bf   : >> { %v2155_v27 = vmul.f32 0.05, %v2093_v14  ;;  %v2165_v4 = vmul.f32 0.05, %v2133_v16  ;;  %v2096_v3 = vadd.f32 %v2095_v2, %v7390_v22  ;;  %v2136_v0 = vadd.f32 %v6287_v41, %v2039_v11  ;;  %v2127_v9 = vpop.f32.mrb[35].mxu1 }
 0x2c0   : >> { %v2173_v30 = vmax.f32 %v2101_v6, %v2157_v40  ;;  %v2158_v63 = vmul.f32 0.05, %v2104_v23  ;;  %v2163_v33 = vmul.f32 0.05, %v2125_v26  ;;  %v2128_v20 = vadd.f32 %v2127_v9, %v7412_v37 }
 0x2c1   : >> { %v2171_v10 = vmax.f32 %v2093_v14, %v2155_v27  ;;  %v2181_v35 = vmax.f32 %v2133_v16, %v2165_v4  ;;  %v2156_v21 = vmul.f32 0.05, %v2096_v3  ;;  %v2166_v36 = vmul.f32 0.05, %v2136_v0 }
 0x2c2   : >> { %5379 = vst [vmem:[%s7430_s16 + $0x28] sm:$0xff] %v2173_v30  ;;  %v2174_v22 = vmax.f32 %v2104_v23, %v2158_v63  ;;  %v2179_v34 = vmax.f32 %v2125_v26, %v2163_v33  ;;  %v2164_v29 = vmul.f32 0.05, %v2128_v20 }
 0x2c3   : >> { %5377 = vst [vmem:[%s7430_s16 + $0x18] sm:$0xff] %v2171_v10  ;;  %5387 = vst [vmem:[%s7430_s16 + $0x68] sm:$0xff] %v2181_v35  ;;  %v2172_v37 = vmax.f32 %v2096_v3, %v2156_v21  ;;  %v2182_v11 = vmax.f32 %v2136_v0, %v2166_v36  ;;  %v6282_v25 = vpop.f32.mrb[36].mxu0 }
 0x2c4   : >> { %5380 = vst [vmem:[%s7430_s16 + $0x30] sm:$0xff] %v2174_v22  ;;  %5385 = vst [vmem:[%s7430_s16 + $0x58] sm:$0xff] %v2179_v34  ;;  %v2180_v38 = vmax.f32 %v2128_v20, %v2164_v29  ;;  %v2117_v42 = vadd.f32 %v6282_v25, %v7406_v24  ;;  %v2108_v31 = vpop.f32.mrb[37].mxu0  ;;  %v6290_v43 = vpop.f32.mrb[36].mxu1 }
 0x2c5   : >> { %5378 = vst [vmem:[%s7430_s16 + $0x20] sm:$0xff] %v2172_v37  ;;  %5388 = vst [vmem:[%s7430_s16 + $0x70] sm:$0xff] %v2182_v11  ;;  %v2109_v44 = vadd.f32 %v2108_v31, %v7400_v62  ;;  %v2149_v45 = vadd.f32 %v6290_v43, %v2052_v1  ;;  %v6283_v28 = vpop.f32.mrb[38].mxu0  ;;  %v2140_v15 = vpop.f32.mrb[37].mxu1 }
 0x2c6   : >> { %5386 = vst [vmem:[%s7430_s16 + $0x60] sm:$0xff] %v2180_v38  ;;  %v2161_v6 = vmul.f32 0.05, %v2117_v42  ;;  %v2120_v8 = vadd.f32 %v6283_v28, %v7408_v39  ;;  %v2141_v7 = vadd.f32 %v2140_v15, %v7418_v12  ;;  %v2111_v14 = vpop.f32.mrb[39].mxu0  ;;  %v6291_v16 = vpop.f32.mrb[38].mxu1 }
 0x2c7   : >> { %v2159_v18 = vmul.f32 0.05, %v2109_v44  ;;  %v2169_v24 = vmul.f32 0.05, %v2149_v45  ;;  %v2112_v19 = vadd.f32 %v2111_v14, %v7402_v17  ;;  %v2152_v40 = vadd.f32 %v6291_v16, %v2055_v5  ;;  %v2143_v62 = vpop.f32.mrb[39].mxu1 }
 0x2c8   : >> { %v2177_v1 = vmax.f32 %v2117_v42, %v2161_v6  ;;  %v2162_v23 = vmul.f32 0.05, %v2120_v8  ;;  %v2167_v26 = vmul.f32 0.05, %v2141_v7  ;;  %v2144_v39 = vadd.f32 %v2143_v62, %v7420_v32  ;;  %872 = sbr.rel (!%p870_p7) target bundleno = 279 (0x117), region = 133 }
 0x2c9   : >> { %v2175_v12 = vmax.f32 %v2109_v44, %v2159_v18  ;;  %v2185_v2 = vmax.f32 %v2149_v45, %v2169_v24  ;;  %v2160_v41 = vmul.f32 0.05, %v2112_v19  ;;  %v2170_v27 = vmul.f32 0.05, %v2152_v40  ;;  %v7460_v32 = vld [vmem:[%s8742_s6] ss:$0 sm:$0xff] (%p870_p7) }
 0x2ca   : >> { %5383 = vst [vmem:[%s7430_s16 + $0x48] sm:$0xff] %v2177_v1  ;;  %v2178_v4 = vmax.f32 %v2120_v8, %v2162_v23  ;;  %v2183_v17 = vmax.f32 %v2141_v7, %v2167_v26  ;;  %v2168_v3 = vmul.f32 0.05, %v2144_v39 }
 0x2cb   : >> { %5381 = vst [vmem:[%s7430_s16 + $0x38] sm:$0xff] %v2175_v12  ;;  %5391 = vst [vmem:[%s7430_s16 + $0x88] sm:$0xff] %v2185_v2  ;;  %v2176_v5 = vmax.f32 %v2112_v19, %v2160_v41  ;;  %v2186_v0 = vmax.f32 %v2152_v40, %v2170_v27 }
 0x2cc   : >> { %5384 = vst [vmem:[%s7430_s16 + $0x50] sm:$0xff] %v2178_v4  ;;  %5389 = vst [vmem:[%s7430_s16 + $0x78] sm:$0xff] %v2183_v17  ;;  %v2184_v9 = vmax.f32 %v2144_v39, %v2168_v3 }
 0x2cd   : >> { %5382 = vst [vmem:[%s7430_s16 + $0x40] sm:$0xff] %v2176_v5  ;;  %5392 = vst [vmem:[%s7430_s16 + $0x90] sm:$0xff] %v2186_v0 }
 0x2ce   : >> { %5390 = vst [vmem:[%s7430_s16 + $0x80] sm:$0xff] %v2184_v9 }
 0x2cf LB: >> { %v6500_v30 = vld [vmem:[%s8741_s5 + $0x40] sm:$0xff]   ;;  %v6504_v20 = vld [vmem:[%s8741_s5 + $0x48] sm:$0xff]   ;;  %v6508_v36 = vld [vmem:[%s8741_s5 + $0x50] sm:$0xff]   ;;  %s5393_s20 = sshll.u32 %s6646_s19, 7  ;;  %vm6655_vm15 = vmmov 1   ;;  %vm8906_vm3 = vnez %v8785_v46  ;;  %vm8909_vm11 = vnez %v8801_v54  ;;  %vm8912_vm4 = vnez %v8787_v47  ;;  %s2211_s19 = sadd.s32 1, %s6646_s19   ;;  %s6646_s19 = sphi %s7462_s19, %s2211_s19  }
 0x2d0   : >> { %v6501_v63 = vld [vmem:[%s8741_s5 + $0xc0] sm:$0xff]   ;;  %5826 = vmatprep.subr.bf16.mxu0 %v6500_v30  ;;  %v6505_v10 = vld [vmem:[%s8741_s5 + $0xc8] sm:$0xff]   ;;  %v6509_v22 = vld [vmem:[%s8741_s5 + $0xd0] sm:$0xff]   ;;  %p2213_p8 = scmp.lt.s32.totalorder %s5393_s20, 128  ;;  %vm8915_vm12 = vnez %v8803_v55  ;;  %vm8918_vm5 = vnez %v8789_v48  ;;  %vm8921_vm13 = vnez %v8805_v56  ;;  %vm8924_vm6 = vnez %v8791_v49  ;;  %p2208_p9 = scmp.ge.s32.totalorder %s2211_s19, 2  }
 0x2d1   : >> { %v6502_v13 = vld [vmem:[%s8741_s5] sm:$0xff]   ;;  %5890 = vmatprep.subr.bf16.mxu1 %v6501_v63  ;;  %v6506_v35 = vld [vmem:[%s8741_s5 + $0x8] sm:$0xff]   ;;  %v6510_v34 = vld [vmem:[%s8741_s5 + $0x10] sm:$0xff]   ;;  %vm8927_vm14 = vnez %v8807_v57  ;;  %s8173_s14 = smov (%p2208_p9), 0  }
 0x2d2   : >> { %v6503_v33 = vld [vmem:[%s8741_s5 + $0x80] sm:$0xff]   ;;  %5827 = vmatpush3.bf16.msra.mxu0 %v6502_v13  ;;  %v6507_v21 = vld [vmem:[%s8741_s5 + $0x88] sm:$0xff]   ;;  %v6511_v29 = vld [vmem:[%s8741_s5 + $0x90] sm:$0xff]   ;;  %s9086_s20 = smov (!%p2213_p8, %s5393_s20), 128 }
 0x2d3   : >> { %5891 = vmatpush3.bf16.msra.mxu1 %v6503_v33  ;;  %5828 = vmatprep.subr.bf16.mxu0 %v6504_v20  ;;  %v6512_v37 = vld [vmem:[%s8741_s5 + $0x58] sm:$0xff]   ;;  %v6516_v42 = vld [vmem:[%s8741_s5 + $0x60] sm:$0xff]   ;;  %v6520_v45 = vld [vmem:[%s8741_s5 + $0x68] sm:$0xff]   ;;  %s7567_s10 = scalar_lea.vmem [#allocation3], %s9086_s20  ;;  %s8125_s29 = scalar_lea.vmem [#allocation4], %s9086_s20 }
 0x2d4   : >> { %5892 = vmatprep.subr.bf16.mxu1 %v6505_v10  ;;  %v6513_v11 = vld [vmem:[%s8741_s5 + $0xd8] sm:$0xff]   ;;  %v6517_v31 = vld [vmem:[%s8741_s5 + $0xe0] sm:$0xff]   ;;  %v6521_v28 = vld [vmem:[%s8741_s5 + $0xe8] sm:$0xff]  }
 0x2d5   : >> { %v6514_v25 = vld [vmem:[%s8741_s5 + $0x18] sm:$0xff]   ;;  %v6518_v43 = vld [vmem:[%s8741_s5 + $0x20] sm:$0xff]   ;;  %v6522_v15 = vld [vmem:[%s8741_s5 + $0x28] sm:$0xff]  }
 0x2d6   : >> { %5829 = vmatpush3.bf16.msra.mxu0 %v6506_v35  ;;  %v6515_v38 = vld [vmem:[%s8741_s5 + $0x98] sm:$0xff]   ;;  %v6519_v44 = vld [vmem:[%s8741_s5 + $0xa0] sm:$0xff]   ;;  %v6523_v6 = vld [vmem:[%s8741_s5 + $0xa8] sm:$0xff]  }
 0x2d7   : >> { %5893 = vmatpush3.bf16.msra.mxu1 %v6507_v21  ;;  %5830 = vmatprep.subr.bf16.mxu0 %v6508_v36  ;;  %v6524_v8 = vld [vmem:[%s8741_s5 + $0x70] sm:$0xff]   ;;  %v6528_v18 = vld [vmem:[%s8741_s5 + $0x78] sm:$0xff]   ;;  %v2217_v62 = vld [vmem:[%s7567_s10 + $0x8] sm:$0xff] }
 0x2d8   : >> { %5894 = vmatprep.subr.bf16.mxu1 %v6509_v22  ;;  %v6525_v7 = vld [vmem:[%s8741_s5 + $0xf0] sm:$0xff]   ;;  %v6529_v24 = vld [vmem:[%s8741_s5 + $0xf8] sm:$0xff]   ;;  %2239 = vst [vmem:[#allocation5 + $0x8] sm:$0xff] %v2217_v62  ;;  %v2220_v39 = vld [vmem:[%s7567_s10 + $0x20] sm:$0xff] }
 0x2d9   : >> { %v6526_v14 = vld [vmem:[%s8741_s5 + $0x30] sm:$0xff]   ;;  %v6530_v19 = vld [vmem:[%s8741_s5 + $0x38] sm:$0xff]   ;;  %v2216_v12 = vld [vmem:[%s7567_s10] sm:$0xff]  ;;  %2242 = vst [vmem:[#allocation5 + $0x20] sm:$0xff] %v2220_v39 }
 0x2da   : >> { %5831 = vmatpush3.bf16.msra.mxu0 %v6510_v34  ;;  %v6527_v16 = vld [vmem:[%s8741_s5 + $0xb0] sm:$0xff]   ;;  %v6531_v40 = vld [vmem:[%s8741_s5 + $0xb8] sm:$0xff]   ;;  %2238 = vst [vmem:[#allocation5] sm:$0xff] %v2216_v12  ;;  %v6532_v2 = vld [vmem:[%s8741_s5 + $0x140] sm:$0xff]  }
 0x2db   : >> { %5895 = vmatpush3.bf16.msra.mxu1 %v6511_v29  ;;  %5832 = vmatprep.subr.bf16.mxu0 %v6512_v37  ;;  %v2218_v1 = vld [vmem:[%s7567_s10 + $0x10] sm:$0xff]  ;;  %v2219_v23 = vld [vmem:[%s7567_s10 + $0x18] sm:$0xff]  ;;  %v6533_v41 = vld [vmem:[%s8741_s5 + $0x1c0] sm:$0xff]  }
 0x2dc   : >> { %5896 = vmatprep.subr.bf16.mxu1 %v6513_v11  ;;  %2240 = vst [vmem:[#allocation5 + $0x10] sm:$0xff] %v2218_v1  ;;  %v2356_v26 = vpack.c.bf16 %v2218_v1, %v2217_v62  ;;  %2241 = vst [vmem:[#allocation5 + $0x18] sm:$0xff] %v2219_v23  ;;  %v2221_v17 = vld [vmem:[%s7567_s10 + $0x28] sm:$0xff]  ;;  %v2222_v3 = vld [vmem:[%s7567_s10 + $0x30] sm:$0xff]  ;;  %v7602_v36 = vpack.c.bf16 %v2220_v39, %v2219_v23 }
 0x2dd   : >> { %vm7583_vm2 = vmpackc.low %vm6655_vm15, %vm8906_vm3  ;;  %v6534_v5 = vld [vmem:[%s8741_s5 + $0x100] sm:$0xff]   ;;  %2243 = vst [vmem:[#allocation5 + $0x28] sm:$0xff] %v2221_v17  ;;  %v6536_v34 = vld [vmem:[%s8741_s5 + $0x148] sm:$0xff]  }
 0x2de   : >> { %5833 = vmatpush3.bf16.msra.mxu0 %v6514_v25  ;;  %3394 = vmatprep.mubr.bf16.mxu0 %v2356_v26  ;;  %vm7590_vm8 = vmpackc.low %vm8909_vm11, %vm6655_vm15  ;;  %2244 = vst [vmem:[#allocation5 + $0x30] sm:$0xff] %v2222_v3  ;;  %v6535_v21 = vld [vmem:[%s8741_s5 + $0x180] sm:$0xff]   ;;  %v6537_v29 = vld [vmem:[%s8741_s5 + $0x1c8] sm:$0xff]  }
 0x2df   : >> { %5897 = vmatpush3.bf16.msra.mxu1 %v6515_v38  ;;  %5834 = vmatprep.subr.bf16.mxu0 %v6516_v42  ;;  %vm7607_vm7 = vmpackc.low %vm6655_vm15, %vm8912_vm4  ;;  %v6538_v11 = vld [vmem:[%s8741_s5 + $0x108] sm:$0xff]   ;;  %v6544_v62 = vld [vmem:[%s8741_s5 + $0x158] sm:$0xff]   ;;  %vm8942_vm4 = vnez %v8797_v52 }
 0x2e0   : >> { %5898 = vmatprep.subr.bf16.mxu1 %v6517_v31  ;;  %v6539_v25 = vld [vmem:[%s8741_s5 + $0x188] sm:$0xff]   ;;  %vm7637_vm9 = vmpackc.low %vm8915_vm12, %vm6655_vm15  ;;  %vm8936_vm12 = vnez %v8795_v51  ;;  %v6567_v27 = vld [vmem:[%s8741_s5 + $0x218] sm:$0xff]  }
 0x2e1   : >> { %v2260_v13 = vld [vmem:[#allocation5 + $0x7] sm:$0xff]  ;;  %vm7670_vm10 = vmpackc.low %vm6655_vm15, %vm8918_vm5  ;;  %vm8930_vm5 = vnez %v8793_v50  ;;  %v6569_v22 = vld [vmem:[%s8741_s5 + $0x228] sm:$0xff]  }
 0x2e2   : >> { %5835 = vmatpush3.bf16.msra.mxu0 %v6518_v43  ;;  %vm7683_vm1 = vmpackc.low %vm8921_vm13, %vm6655_vm15 }
 0x2e3   : >> { %5899 = vmatpush3.bf16.msra.mxu1 %v6519_v44  ;;  %5836 = vmatprep.subr.bf16.mxu0 %v6520_v45  ;;  %v2452_v0 = vld [vmem:[#allocation5 + $0x17] sm:$0xff]  ;;  %v2261_v9 = vld [vmem:[#allocation5 + $0xf] sm:$0xff]  ;;  %v2453_v63 = vld [vmem:[#allocation5 + $0x1f] sm:$0xff] }
 0x2e4   : >> { %5900 = vmatprep.subr.bf16.mxu1 %v6521_v28  ;;  %v2372_v30 = vld [vmem:[#allocation5 + $0x9] sm:$0xff]  ;;  %v2373_v33 = vld [vmem:[#allocation5 + $0x11] sm:$0xff]  ;;  %v5554_v20 = vpack.c.bf16 %v2453_v63, %v2452_v0  ;;  %v5530_v10 = vpack.c.bf16 %v2261_v9, %v2260_v13  ;;  %v2374_v37 = vld [vmem:[#allocation5 + $0x19] sm:$0xff] }
 0x2e5   : >> { %v5557_v35 = vpack.c.bf16 %v2373_v33, %v2372_v30  ;;  %v2454_v38 = vld [vmem:[#allocation5 + $0x27] sm:$0xff]  ;;  %v2455_v42 = vld [vmem:[#allocation5 + $0x2f] sm:$0xff]  ;;  %vm7711_vm0 = vmpackc.low %vm6655_vm15, %vm8924_vm6 }
 0x2e6   : >> { %5837 = vmatpush3.bf16.msra.mxu0 %v6522_v15  ;;  %5555 = vmatprep.mubr.msk.bf16.mxu1 %vm7583_vm2, %v5554_v20  ;;  %v2375_v31 = vld [vmem:[#allocation5 + $0x21] sm:$0xff]  ;;  %v7630_v43 = vpack.c.bf16 %v2455_v42, %v2454_v38  ;;  %v2224_v45 = vld [vmem:[%s7567_s10 + $0x40] sm:$0xff]  ;;  %vm7743_vm6 = vmpackc.low %vm8927_vm14, %vm6655_vm15 }
 0x2e7   : >> { %5901 = vmatpush3.bf16.msra.mxu1 %v6523_v6  ;;  %5838 = vmatprep.subr.bf16.mxu0 %v6524_v8  ;;  %v2223_v44 = vld [vmem:[%s7567_s10 + $0x38] sm:$0xff]  ;;  %2246 = vst [vmem:[#allocation5 + $0x40] sm:$0xff] %v2224_v45  ;;  %v7644_v15 = vpack.c.bf16 %v2375_v31, %v2374_v37  ;;  %v7646_v6 = vpack.c.bf16 %v2222_v3, %v2221_v17  ;;  %v6540_v8 = vld [vmem:[%s8741_s5 + $0x150] sm:$0xff]   ;;  %v2228_v9 = vld [vmem:[%s7567_s10 + $0x60] sm:$0xff] }
 0x2e8   : >> { %5902 = vmatprep.subr.bf16.mxu1 %v6525_v7  ;;  %2245 = vst [vmem:[#allocation5 + $0x38] sm:$0xff] %v2223_v44  ;;  %v6541_v7 = vld [vmem:[%s8741_s5 + $0x1d0] sm:$0xff]   ;;  %v6545_v17 = vld [vmem:[%s8741_s5 + $0x1d8] sm:$0xff]   ;;  %2250 = vst [vmem:[#allocation5 + $0x60] sm:$0xff] %v2228_v9 }
 0x2e9   : >> { %v6546_v3 = vld [vmem:[%s8741_s5 + $0x118] sm:$0xff]   ;;  %v2229_v38 = vld [vmem:[%s7567_s10 + $0x68] sm:$0xff]  ;;  %v2230_v42 = vld [vmem:[%s7567_s10 + $0x70] sm:$0xff] }
 0x2ea   : >> { %5839 = vmatpush3.bf16.msra.mxu0 %v6526_v14  ;;  %v6542_v14 = vld [vmem:[%s8741_s5 + $0x110] sm:$0xff]   ;;  %v2227_v0 = vld [vmem:[%s7567_s10 + $0x58] sm:$0xff]  ;;  %vm7752_vm13 = vmpackc.low %vm6655_vm15, %vm8930_vm5  ;;  %2251 = vst [vmem:[#allocation5 + $0x68] sm:$0xff] %v2229_v38  ;;  %vm8933_vm5 = vnez %v8809_v58 }
 0x2eb   : >> { %5903 = vmatpush3.bf16.msra.mxu1 %v6527_v16  ;;  %5840 = vmatprep.subr.bf16.mxu0 %v6528_v18  ;;  %v6543_v16 = vld [vmem:[%s8741_s5 + $0x190] sm:$0xff]   ;;  %v2225_v18 = vld [vmem:[%s7567_s10 + $0x48] sm:$0xff]  ;;  %2249 = vst [vmem:[#allocation5 + $0x58] sm:$0xff] %v2227_v0  ;;  %2252 = vst [vmem:[#allocation5 + $0x70] sm:$0xff] %v2230_v42 }
 0x2ec   : >> { %5904 = vmatprep.subr.bf16.mxu1 %v6529_v24  ;;  %2247 = vst [vmem:[#allocation5 + $0x48] sm:$0xff] %v2225_v18  ;;  %vm7789_vm14 = vmpackc.low %vm8933_vm5, %vm6655_vm15 }
 0x2ed   : >> { %vm7796_vm11 = vmpackc.low %vm6655_vm15, %vm8936_vm12  ;;  %vm8939_vm12 = vnez %v8811_v59 }
 0x2ee   : >> { %5841 = vmatpush3.bf16.msra.mxu0 %v6530_v19  ;;  %v2226_v19 = vld [vmem:[%s7567_s10 + $0x50] sm:$0xff]  ;;  %vm7829_vm5 = vmpackc.low %vm8939_vm12, %vm6655_vm15 }
 0x2ef   : >> { %5905 = vmatpush3.bf16.msra.mxu1 %v6531_v40  ;;  %5954 = vmatprep.subr.bf16.mxu0 %v6532_v2  ;;  %v2376_v40 = vld [vmem:[#allocation5 + $0x29] sm:$0xff]  ;;  %2248 = vst [vmem:[#allocation5 + $0x50] sm:$0xff] %v2226_v19  ;;  %v2456_v1 = vld [vmem:[#allocation5 + $0x37] sm:$0xff]  ;;  %v2457_v23 = vld [vmem:[#allocation5 + $0x3f] sm:$0xff]  ;;  %v7735_v37 = vpack.c.bf16 %v2226_v19, %v2225_v18 }
 0x2f0   : >> { %6018 = vmatprep.subr.bf16.mxu1 %v6533_v41  ;;  %v2377_v26 = vld [vmem:[#allocation5 + $0x31] sm:$0xff]  ;;  %v7678_v39 = vpack.c.bf16 %v2457_v23, %v2456_v1  ;;  %v7689_v41 = vpack.c.bf16 %v2224_v45, %v2223_v44  ;;  %v2378_v33 = vld [vmem:[#allocation5 + $0x39] sm:$0xff]  ;;  %v7783_v23 = vpack.c.bf16 %v2228_v9, %v2227_v0  ;;  %v8937_v0 = vmov 0  ;;  %vm7842_vm3 = vmpackc.low %vm6655_vm15, %vm8942_vm4 }
 0x2f1   : >> { %5531 = vmatmul.mubr.msk.bf16.vlgmr.msra.gmra.mrb[0].mxu0 %vm7583_vm2, %v5530_v10  ;;  %v7687_v2 = vpack.c.bf16 %v2377_v26, %v2376_v40  ;;  %v6553_v18 = vld [vmem:[%s8741_s5 + $0x1e8] sm:$0xff]   ;;  %v2232_v26 = vld [vmem:[%s7567_s10 + $0x80] sm:$0xff]  ;;  %v8938_v0 = vsel %vm7796_vm11, 4294967295, %v8937_v0  ;;  %vm8945_vm4 = vnez %v8813_v60 }
 0x2f2   : >> { %5558 = vmatmul.mubr.msk.bf16.vlgmr.msra.gmra.mrb[0].mxu1 %vm7590_vm8, %v5557_v35  ;;  %5955 = vmatpush3.bf16.msra.mxu0 %v6534_v5  ;;  %v6547_v5 = vld [vmem:[%s8741_s5 + $0x198] sm:$0xff]   ;;  %v6548_v35 = vld [vmem:[%s8741_s5 + $0x160] sm:$0xff]   ;;  %v2461_v44 = vld [vmem:[#allocation5 + $0x5f] sm:$0xff]  ;;  %2254 = vst [vmem:[#allocation5 + $0x80] sm:$0xff] %v2232_v26 }
 0x2f3   : >> { %6019 = vmatpush3.bf16.msra.mxu1 %v6535_v21  ;;  %3402 = vmatprep.mubr.bf16.mxu0 %v7602_v36  ;;  %v2458_v30 = vld [vmem:[#allocation5 + $0x47] sm:$0xff]  ;;  %v6549_v21 = vld [vmem:[%s8741_s5 + $0x1e0] sm:$0xff]   ;;  %v6554_v19 = vld [vmem:[%s8741_s5 + $0x128] sm:$0xff]  }
 0x2f4   : >> { %5956 = vmatprep.subr.bf16.mxu0 %v6536_v34  ;;  %6020 = vmatprep.subr.bf16.mxu1 %v6537_v29  ;;  %v6550_v34 = vld [vmem:[%s8741_s5 + $0x120] sm:$0xff]   ;;  %v6555_v40 = vld [vmem:[%s8741_s5 + $0x1a8] sm:$0xff]   ;;  %vm7880_vm12 = vmpackc.low %vm8945_vm4, %vm6655_vm15 }
 0x2f5   : >> { %5561 = vmatprep.mubr.msk.bf16.mxu1 %vm7607_vm7, %v7630_v43 }
 0x2f6   : >> { %5957 = vmatpush3.bf16.msra.mxu0 %v6538_v11  ;;  %v2459_v13 = vld [vmem:[#allocation5 + $0x4f] sm:$0xff]  ;;  %v2460_v31 = vld [vmem:[#allocation5 + $0x57] sm:$0xff] }
 0x2f7   : >> { %6021 = vmatpush3.bf16.msra.mxu1 %v6539_v25  ;;  %5958 = vmatprep.subr.bf16.mxu0 %v6540_v8  ;;  %v7719_v10 = vpack.c.bf16 %v2459_v13, %v2458_v30  ;;  %v6551_v11 = vld [vmem:[%s8741_s5 + $0x1a0] sm:$0xff]   ;;  %v7759_v8 = vpack.c.bf16 %v2461_v44, %v2460_v31  ;;  %v2382_v30 = vld [vmem:[#allocation5 + $0x59] sm:$0xff]  ;;  %v2383_v13 = vld [vmem:[#allocation5 + $0x61] sm:$0xff]  ;;  %v8940_v31 = vmov 0 }
 0x2f8   : >> { %6022 = vmatprep.subr.bf16.mxu1 %v6541_v7  ;;  %v2380_v7 = vld [vmem:[#allocation5 + $0x49] sm:$0xff]  ;;  %v8941_v31 = vsel %vm7829_vm5, 4294967295, %v8940_v31 }
 0x2f9   : >> { %5534 = vmatmul.mubr.msk.bf16.gmra.mrb[4].mxu0 %vm7607_vm7, %v5554_v20  ;;  %v2379_v20 = vld [vmem:[#allocation5 + $0x41] sm:$0xff] }
 0x2fa   : >> { %5564 = vmatmul.mubr.msk.bf16.gmra.mrb[4].mxu1 %vm7637_vm9, %v7644_v15  ;;  %3410 = vmatprep.mubr.bf16.mxu0 %v7646_v6  ;;  %v7733_v29 = vpack.c.bf16 %v2379_v20, %v2378_v33  ;;  %v6556_v33 = vld [vmem:[%s8741_s5 + $0x170] sm:$0xff]  }
 0x2fb   : >> { %5959 = vmatpush3.bf16.msra.mxu0 %v6542_v14  ;;  %6023 = vmatpush3.bf16.msra.mxu1 %v6543_v16  ;;  %v2381_v14 = vld [vmem:[#allocation5 + $0x51] sm:$0xff]  ;;  %v6557_v20 = vld [vmem:[%s8741_s5 + $0x1f0] sm:$0xff]  }
 0x2fc   : >> { %5960 = vmatprep.subr.bf16.mxu0 %v6544_v62  ;;  %5567 = vmatprep.mubr.msk.bf16.mxu1 %vm7670_vm10, %v7678_v39  ;;  %v6552_v16 = vld [vmem:[%s8741_s5 + $0x168] sm:$0xff]   ;;  %v2231_v62 = vld [vmem:[%s7567_s10 + $0x78] sm:$0xff]  ;;  %v7781_v1 = vpack.c.bf16 %v2381_v14, %v2380_v7  ;;  %v7835_v14 = vpack.c.bf16 %v2383_v13, %v2382_v30 }
 0x2fd   : >> { %6024 = vmatprep.subr.bf16.mxu1 %v6545_v17  ;;  %2253 = vst [vmem:[#allocation5 + $0x78] sm:$0xff] %v2231_v62  ;;  %v6562_v30 = vld [vmem:[%s8741_s5 + $0x138] sm:$0xff]  }
 0x2fe   : >> { %v6563_v13 = vld [vmem:[%s8741_s5 + $0x1b8] sm:$0xff]  }
 0x2ff   : >> { %5961 = vmatpush3.bf16.msra.mxu0 %v6546_v3  ;;  %6025 = vmatpush3.bf16.msra.mxu1 %v6547_v5  ;;  %v2462_v3 = vld [vmem:[#allocation5 + $0x67] sm:$0xff]  ;;  %v2463_v5 = vld [vmem:[#allocation5 + $0x6f] sm:$0xff] }
 0x300   : >> { %5962 = vmatprep.subr.bf16.mxu0 %v6548_v35  ;;  %6026 = vmatprep.subr.bf16.mxu1 %v6549_v21  ;;  %v7800_v9 = vpack.c.bf16 %v2463_v5, %v2462_v3  ;;  %v6558_v35 = vld [vmem:[%s8741_s5 + $0x130] sm:$0xff]   ;;  %v6560_v3 = vld [vmem:[%s8741_s5 + $0x178] sm:$0xff]  }
 0x301   : >> { %5537 = vmatmul.mubr.msk.bf16.gmra.mrb[8].mxu0 %vm7670_vm10, %v7630_v43  ;;  %v6559_v21 = vld [vmem:[%s8741_s5 + $0x1b0] sm:$0xff]  }
 0x302   : >> { %5570 = vmatmul.mubr.msk.bf16.gmra.mrb[8].mxu1 %vm7683_vm1, %v7687_v2  ;;  %3418 = vmatprep.mubr.bf16.mxu0 %v7689_v41 }
 0x303   : >> { %5573 = vmatprep.mubr.msk.bf16.mxu1 %vm7711_vm0, %v7719_v10  ;;  %5963 = vmatpush3.bf16.msra.mxu0 %v6550_v34  ;;  %v2233_v34 = vld [vmem:[%s7567_s10 + $0x88] sm:$0xff] }
 0x304   : >> { %6027 = vmatpush3.bf16.msra.mxu1 %v6551_v11  ;;  %5964 = vmatprep.subr.bf16.mxu0 %v6552_v16  ;;  %v2234_v11 = vld [vmem:[%s7567_s10 + $0x90] sm:$0xff]  ;;  %v2464_v44 = vld [vmem:[#allocation5 + $0x77] sm:$0xff]  ;;  %2255 = vst [vmem:[#allocation5 + $0x88] sm:$0xff] %v2233_v34  ;;  %v7837_v16 = vpack.c.bf16 %v2230_v42, %v2229_v38  ;;  %v6561_v38 = vld [vmem:[%s8741_s5 + $0x1f8] sm:$0xff]  }
 0x305   : >> { %6028 = vmatprep.subr.bf16.mxu1 %v6553_v18  ;;  %2256 = vst [vmem:[#allocation5 + $0x90] sm:$0xff] %v2234_v11  ;;  %v7833_v7 = vpack.c.bf16 %v2234_v11, %v2233_v34  ;;  %v2465_v18 = vld [vmem:[#allocation5 + $0x7f] sm:$0xff]  ;;  %v2384_v42 = vld [vmem:[#allocation5 + $0x69] sm:$0xff]  ;;  %v2385_v5 = vld [vmem:[#allocation5 + $0x71] sm:$0xff]  ;;  %v7875_v34 = vpack.c.bf16 %v2232_v26, %v2231_v62 }
 0x306   : >> { %v2386_v62 = vld [vmem:[#allocation5 + $0x79] sm:$0xff] }
 0x307   : >> { %5965 = vmatpush3.bf16.msra.mxu0 %v6554_v19 }
 0x308   : >> { %6029 = vmatpush3.bf16.msra.mxu1 %v6555_v40  ;;  %5966 = vmatprep.subr.bf16.mxu0 %v6556_v33  ;;  %v7846_v40 = vpack.c.bf16 %v2465_v18, %v2464_v44  ;;  %v6564_v33 = vld [vmem:[%s8741_s5 + $0x200] sm:$0xff]  }
 0x309   : >> { %5540 = vmatmul.mubr.msk.bf16.gmra.mrb[12].mxu0 %vm7711_vm0, %v7678_v39  ;;  %6030 = vmatprep.subr.bf16.mxu1 %v6557_v20 }
 0x30a   : >> { %5576 = vmatmul.mubr.msk.bf16.gmra.mrb[12].mxu1 %vm7743_vm6, %v7733_v29  ;;  %3426 = vmatprep.mubr.bf16.mxu0 %v7735_v37 }
 0x30b   : >> { %5579 = vmatprep.mubr.msk.bf16.mxu1 %vm7752_vm13, %v7759_v8  ;;  %5967 = vmatpush3.bf16.msra.mxu0 %v6558_v35  ;;  %v2466_v20 = vld [vmem:[#allocation5 + $0x87] sm:$0xff] }
 0x30c   : >> { %6031 = vmatpush3.bf16.msra.mxu1 %v6559_v21  ;;  %5968 = vmatprep.subr.bf16.mxu0 %v6560_v3  ;;  %v2467_v35 = vld [vmem:[#allocation5 + $0x8f] sm:$0xff]  ;;  %v7873_v21 = vpack.c.bf16 %v2385_v5, %v2384_v42  ;;  %v2387_v26 = vld [vmem:[#allocation5 + $0x81] sm:$0xff]  ;;  %v2237_v42 = vld [vmem:[%s7567_s10 + $0xa8] sm:$0xff] }
 0x30d   : >> { %6032 = vmatprep.subr.bf16.mxu1 %v6561_v38  ;;  %v7884_v44 = vpack.c.bf16 %v2467_v35, %v2466_v20  ;;  %v7904_v3 = vld [vmem:[%s7567_s10 + $0x98] sm:$0xff]  ;;  %v7907_v38 = vld [vmem:[%s7567_s10 + $0xa0] sm:$0xff]  ;;  %v7912_v5 = vpack.c.bf16 %v2387_v26, %v2386_v62  ;;  %2259 = vst [vmem:[#allocation5 + $0xa8] sm:$0xff] %v2237_v42 }
 0x30e   : >> { %2257 = vst [vmem:[#allocation5 + $0x98] sm:$0xff] %v7904_v3  ;;  %2258 = vst [vmem:[#allocation5 + $0xa0] sm:$0xff] %v7907_v38  ;;  %v2546_v24 = vld [vmem:[#allocation5 + $0x89] sm:$0xff]  ;;  %v2651_v63 = vpack.c.bf16 %v7907_v38, %v7904_v3 }
 0x30f   : >> { %5969 = vmatpush3.bf16.msra.mxu0 %v6562_v30 }
 0x310   : >> { %6033 = vmatpush3.bf16.msra.mxu1 %v6563_v13  ;;  %6292 = vmatprep.subr.bf16.mxu0 %v6564_v33  ;;  %v6565_v13 = vld [vmem:[%s8741_s5 + $0x208] sm:$0xff]  }
 0x311   : >> { %5543 = vmatmul.mubr.msk.bf16.gmra.mrb[16].mxu0 %vm7752_vm13, %v7719_v10  ;;  %6374 = vmatprep.subr.bf16.mxu1 %v6564_v33 }
 0x312   : >> { %5582 = vmatmul.mubr.msk.bf16.gmra.mrb[16].mxu1 %vm7789_vm14, %v7781_v1  ;;  %3434 = vmatprep.mubr.bf16.mxu0 %v7783_v23 }
 0x313   : >> { %5585 = vmatprep.mubr.msk.bf16.mxu1 %vm7796_vm11, %v7800_v9 }
 0x315   : >> { %v2674_v4 = vld [vmem:[#allocation5 + $0x99] sm:$0xff] }
 0x319   : >> { %5546 = vmatmul.mubr.msk.bf16.gmra.mrb[20].mxu0 %vm7796_vm11, %v7759_v8  ;;  %vm8948_vm11 = vnez %v8799_v53 }
 0x31a   : >> { %5588 = vmatmul.mubr.msk.bf16.gmra.mrb[20].mxu1 %vm7829_vm5, %v7835_v14  ;;  %3442 = vmatprep.mubr.bf16.mxu0 %v7837_v16  ;;  %vm7889_vm5 = vmpackc.low %vm6655_vm15, %vm8948_vm11  ;;  %vm8951_vm11 = vnez %v8815_v61 }
 0x31b   : >> { %5591 = vmatprep.mubr.msk.bf16.mxu1 %vm7842_vm3, %v7846_v40  ;;  %vm7917_vm4 = vmpackc.low %vm8951_vm11, %vm6655_vm15  ;;  %vm8954_vm15 = vnez %v8941_v31 }
 0x321   : >> { %5549 = vmatmul.mubr.msk.bf16.gmra.mrb[24].mxu0 %vm7842_vm3, %v7800_v9 }
 0x322   : >> { %5594 = vmatmul.mubr.msk.bf16.gmra.mrb[24].mxu1 %vm7880_vm12, %v7873_v21  ;;  %3450 = vmatprep.mubr.bf16.mxu0 %v7875_v34 }
 0x323   : >> { %5597 = vmatprep.mubr.msk.bf16.mxu1 %vm7889_vm5, %v7884_v44 }
 0x329   : >> { %5552 = vmatmul.mubr.msk.bf16.gmra.mrb[28].mxu0 %vm7889_vm5, %v7846_v40 }
 0x32a   : >> { %5600 = vmatmul.mubr.msk.bf16.gmra.mrb[28].mxu1 %vm7917_vm4, %v7912_v5  ;;  %5603 = vmatprep.mubr.msk.bf16.mxu0 %vm7590_vm8, %v7644_v15  ;;  %v6566_v15 = vld [vmem:[%s8741_s5 + $0x210] sm:$0xff]  }
 0x32b   : >> { %3685 = vmatprep.mubr.bf16.mxu1 %v7646_v6 }
 0x331   : >> { %3589 = vmatmul.mubr.bf16.vlgmr.msra.gmra.mrb[32].mxu0 %v7602_v36  ;;  %v6568_v36 = vld [vmem:[%s8741_s5 + $0x220] sm:$0xff]  }
 0x332   : >> { %5627 = vmatmul.mubr.msk.bf16.vlgmr.msra.gmra.mrb[32].mxu1 %vm7583_vm2, %v7630_v43  ;;  %6293 = vmatpush3.bf16.msra.mxu0 %v6564_v33  ;;  %v6570_v43 = vld [vmem:[%s8741_s5 + $0x230] sm:$0xff]   ;;  %vm8955_vm2 = vnez %v8938_v0 }
 0x333   : >> { %6382 = vmatpush3.bf16.msra.mxu1 %v6564_v33  ;;  %5606 = vmatprep.mubr.msk.bf16.mxu0 %vm7637_vm9, %v7687_v2 }
 0x334   : >> { %3693 = vmatprep.mubr.bf16.mxu1 %v7689_v41  ;;  %6294 = vmatprep.subr.bf16.mxu0 %v6565_v13 }
 0x335   : >> { %6375 = vmatprep.subr.bf16.mxu1 %v6565_v13 }
 0x336   : >> { %6295 = vmatpush3.bf16.msra.mxu0 %v6565_v13 }
 0x337   : >> { %6383 = vmatpush3.bf16.msra.mxu1 %v6565_v13  ;;  %6296 = vmatprep.subr.bf16.mxu0 %v6566_v15 }
 0x338   : >> { %6376 = vmatprep.subr.bf16.mxu1 %v6566_v15 }
 0x339   : >> { %3597 = vmatmul.mubr.bf16.gmra.mrb[36].mxu0 %v7646_v6  ;;  %v6571_v6 = vld [vmem:[%s8741_s5 + $0x238] sm:$0xff]  }
 0x33a   : >> { %5630 = vmatmul.mubr.msk.bf16.gmra.mrb[36].mxu1 %vm7607_vm7, %v7678_v39  ;;  %5609 = vmatprep.mubr.msk.bf16.mxu0 %vm7683_vm1, %v7733_v29  ;;  %v2547_v39 = vld [vmem:[#allocation5 + $0x91] sm:$0xff] }
 0x33b   : >> { %3701 = vmatprep.mubr.bf16.mxu1 %v7735_v37  ;;  %6297 = vmatpush3.bf16.msra.mxu0 %v6566_v15 }
 0x33c   : >> { %6384 = vmatpush3.bf16.msra.mxu1 %v6566_v15  ;;  %6298 = vmatprep.subr.bf16.mxu0 %v6567_v27 }
 0x33d   : >> { %6377 = vmatprep.subr.bf16.mxu1 %v6567_v27 }
 0x33f   : >> { %6299 = vmatpush3.bf16.msra.mxu0 %v6567_v27 }
 0x340   : >> { %6385 = vmatpush3.bf16.msra.mxu1 %v6567_v27  ;;  %6300 = vmatprep.subr.bf16.mxu0 %v6568_v36 }
 0x341   : >> { %3605 = vmatmul.mubr.bf16.gmra.mrb[40].mxu0 %v7689_v41  ;;  %6378 = vmatprep.subr.bf16.mxu1 %v6568_v36  ;;  %v5623_v41 = vpack.c.bf16 %v2547_v39, %v2546_v24 }
 0x342   : >> { %5633 = vmatmul.mubr.msk.bf16.gmra.mrb[40].mxu1 %vm7670_vm10, %v7719_v10  ;;  %5612 = vmatprep.mubr.msk.bf16.mxu0 %vm7743_vm6, %v7781_v1  ;;  %v2594_v10 = vld [vmem:[#allocation5 + $0x97] sm:$0xff] }
 0x343   : >> { %3709 = vmatprep.mubr.bf16.mxu1 %v7783_v23  ;;  %6301 = vmatpush3.bf16.msra.mxu0 %v6568_v36 }
 0x344   : >> { %6386 = vmatpush3.bf16.msra.mxu1 %v6568_v36  ;;  %6302 = vmatprep.subr.bf16.mxu0 %v6569_v22 }
 0x345   : >> { %6379 = vmatprep.subr.bf16.mxu1 %v6569_v22 }
 0x347   : >> { %6303 = vmatpush3.bf16.msra.mxu0 %v6569_v22 }
 0x348   : >> { %6387 = vmatpush3.bf16.msra.mxu1 %v6569_v22  ;;  %6304 = vmatprep.subr.bf16.mxu0 %v6570_v43 }
 0x349   : >> { %3613 = vmatmul.mubr.bf16.gmra.mrb[44].mxu0 %v7735_v37  ;;  %6380 = vmatprep.subr.bf16.mxu1 %v6570_v43  ;;  %v2595_v37 = vld [vmem:[#allocation5 + $0x9f] sm:$0xff] }
 0x34a   : >> { %5636 = vmatmul.mubr.msk.bf16.gmra.mrb[44].mxu1 %vm7711_vm0, %v7759_v8  ;;  %5615 = vmatprep.mubr.msk.bf16.mxu0 %vm7789_vm14, %v7835_v14  ;;  %v5647_v45 = vpack.c.bf16 %v2595_v37, %v2594_v10 }
 0x34b   : >> { %3717 = vmatprep.mubr.bf16.mxu1 %v7837_v16  ;;  %6305 = vmatpush3.bf16.msra.mxu0 %v6570_v43 }
 0x34c   : >> { %6388 = vmatpush3.bf16.msra.mxu1 %v6570_v43  ;;  %6306 = vmatprep.subr.bf16.mxu0 %v6571_v6 }
 0x34d   : >> { %6381 = vmatprep.subr.bf16.mxu1 %v6571_v6 }
 0x34f   : >> { %6307 = vmatpush3.bf16.msra.mxu0 %v6571_v6 }
 0x350   : >> { %6389 = vmatpush3.bf16.msra.mxu1 %v6571_v6 }
 0x351   : >> { %3621 = vmatmul.mubr.bf16.gmra.mrb[48].mxu0 %v7783_v23 }
 0x352   : >> { %5639 = vmatmul.mubr.msk.bf16.gmra.mrb[48].mxu1 %vm7752_vm13, %v7800_v9  ;;  %5618 = vmatprep.mubr.msk.bf16.mxu0 %vm8954_vm15, %v7873_v21 }
 0x353   : >> { %3725 = vmatprep.mubr.bf16.mxu1 %v7875_v34 }
 0x359   : >> { %3629 = vmatmul.mubr.bf16.gmra.mrb[52].mxu0 %v7837_v16 }
 0x35a   : >> { %5642 = vmatmul.mubr.msk.bf16.gmra.mrb[52].mxu1 %vm8955_vm2, %v7846_v40  ;;  %5621 = vmatprep.mubr.msk.bf16.mxu0 %vm7880_vm12, %v7912_v5 }
 0x35b   : >> { %3733 = vmatprep.mubr.bf16.mxu1 %v7833_v7 }
 0x361   : >> { %3637 = vmatmul.mubr.bf16.gmra.mrb[56].mxu0 %v7875_v34 }
 0x362   : >> { %5645 = vmatmul.mubr.msk.bf16.gmra.mrb[56].mxu1 %vm7842_vm3, %v7884_v44  ;;  %5624 = vmatprep.mubr.msk.bf16.mxu0 %vm7917_vm4, %v5623_v41  ;;  %vm8956_vm3 = vcmask 523264  }
 0x363   : >> { %3741 = vmatprep.mubr.bf16.mxu1 %v2651_v63  ;;  %vm8958_vm13 = vmmov %vm8956_vm3 }
 0x364   : >> { %vm8961_vm7 = vmmov %vm8956_vm3 }
 0x365   : >> { %vm8963_vm10 = vmmov %vm8956_vm3 }
 0x369   : >> { %3645 = vmatmul.mubr.bf16.gmra.mrb[60].mxu0 %v7833_v7 }
 0x36a   : >> { %5648 = vmatmul.mubr.msk.bf16.gmra.mrb[60].mxu1 %vm7889_vm5, %v5647_v45  ;;  %6308 = vmatprep.mubr.msk.bf16.mxu0 %vm7590_vm8, %v7687_v2  ;;  %v2675_v2 = vld [vmem:[#allocation5 + $0xa1] sm:$0xff]  ;;  %vm8960_vm8 = vmmov %vm8956_vm3 }
 0x36b   : >> { %6316 = vmatprep.mubr.msk.bf16.mxu1 %vm7789_vm14, %v7873_v21  ;;  %v5671_v8 = vpack.c.bf16 %v2675_v2, %v2674_v4  ;;  %vm8959_vm14 = vmmov %vm8956_vm3 }
 0x371   : >> { %6309 = vmatmul.mubr.msk.bf16.vlgmr.msra.gmra.mrb[64].mxu0 %vm7637_vm9, %v7733_v29  ;;  %vm8962_vm9 = vmmov %vm8956_vm3 }
 0x372   : >> { %6317 = vmatmul.mubr.msk.bf16.vlgmr.msra.gmra.mrb[64].mxu1 %vm8954_vm15, %v7912_v5  ;;  %6312 = vmatprep.mubr.msk.bf16.mxu0 %vm7683_vm1, %v7781_v1  ;;  %vm8964_vm1 = vmmov %vm8956_vm3 }
 0x373   : >> { %6320 = vmatprep.mubr.msk.bf16.mxu1 %vm7880_vm12, %v5623_v41  ;;  %vm8965_vm0 = vmmov %vm8964_vm1 }
 0x374   : >> { %vm8966_vm5 = vmmov %vm8965_vm0 }
 0x375   : >> { %vm8967_vm12 = vmmov %vm8965_vm0 }
 0x376   : >> { %vm8968_vm11 = vmmov %vm8965_vm0 }
 0x377   : >> { %vm8970_vm15 = vmmov %vm8965_vm0 }
 0x378   : >> { %vm8971_vm2 = vmmov %vm8965_vm0 }
 0x379   : >> { %6313 = vmatmul.mubr.msk.bf16.gmra.mrb[68].mxu0 %vm7743_vm6, %v7835_v14  ;;  %vm8957_vm6 = vmmov %vm8956_vm3 }
 0x37a   : >> { %6321 = vmatmul.mubr.msk.bf16.gmra.mrb[68].mxu1 %vm7917_vm4, %v5671_v8  ;;  %vm8969_vm4 = vmmov %vm8965_vm0 }
 0x3c4   : >> { %v5842_v28 = vpop.f32.mrb[0].mxu0 }
 0x3c5   : >> { %v5906_v29 = vpop.f32.mrb[0].mxu1  ;;  %v5843_v23 = vpop.f32.mrb[1].mxu0 }
 0x3c6   : >> { %v5844_v17 = vadd.f32 %v5843_v23, %v5842_v28  ;;  %v5907_v0 = vpop.f32.mrb[1].mxu1  ;;  %v5845_v12 = vpop.f32.mrb[2].mxu0 }
 0x3c7   : >> { %v5908_v1 = vadd.f32 %v5907_v0, %v5906_v29  ;;  %v5909_v9 = vpop.f32.mrb[2].mxu1  ;;  %v5846_v31 = vpop.f32.mrb[3].mxu0 }
 0x3c8   : >> { %v3397_v7 = vadd.f32 %v5844_v17, %v7460_v32  ;;  %v5847_v16 = vadd.f32 %v5846_v31, %v5845_v12  ;;  %v5910_v19 = vpop.f32.mrb[3].mxu1 }
 0x3c9   : >> { %v5911_v40 = vadd.f32 %v5910_v19, %v5909_v9 }
 0x3ca   : >> { %v8034_v33 = vadd.f32 %v5908_v1, %v3397_v7  ;;  %v3400_v25 = vadd.f32 %v5847_v16, %v7460_v32 }
 0x3cc   : >> { %v8037_v14 = vadd.f32 %v5911_v40, %v3400_v25  ;;  %v5848_v20 = vpop.f32.mrb[4].mxu0 }
 0x3cd   : >> { %v5912_v35 = vpop.f32.mrb[4].mxu1  ;;  %v5849_v21 = vpop.f32.mrb[5].mxu0 }
 0x3ce   : >> { %v5850_v34 = vadd.f32 %v5849_v21, %v5848_v20  ;;  %v5913_v11 = vpop.f32.mrb[5].mxu1  ;;  %v5851_v44 = vpop.f32.mrb[6].mxu0 }
 0x3cf   : >> { %v5914_v18 = vadd.f32 %v5913_v11, %v5912_v35  ;;  %v5915_v62 = vpop.f32.mrb[6].mxu1  ;;  %v5852_v26 = vpop.f32.mrb[7].mxu0 }
 0x3d0   : >> { %v3405_v3 = vadd.f32 %v5850_v34, %v7460_v32  ;;  %v5853_v38 = vadd.f32 %v5852_v26, %v5851_v44  ;;  %v5916_v42 = vpop.f32.mrb[7].mxu1 }
 0x3d1   : >> { %v5917_v5 = vadd.f32 %v5916_v42, %v5915_v62 }
 0x3d2   : >> { %v8040_v30 = vadd.f32 %v5914_v18, %v3405_v3  ;;  %v3408_v13 = vadd.f32 %v5853_v38, %v7460_v32 }
 0x3d4   : >> { %v8043_v15 = vadd.f32 %v5917_v5, %v3408_v13  ;;  %v5854_v27 = vpop.f32.mrb[8].mxu0 }
 0x3d5   : >> { %v5918_v36 = vpop.f32.mrb[8].mxu1  ;;  %v5855_v22 = vpop.f32.mrb[9].mxu0 }
 0x3d6   : >> { %v5856_v43 = vadd.f32 %v5855_v22, %v5854_v27  ;;  %v5919_v6 = vpop.f32.mrb[9].mxu1  ;;  %v5857_v24 = vpop.f32.mrb[10].mxu0 }
 0x3d7   : >> { %v5920_v39 = vadd.f32 %v5919_v6, %v5918_v36  ;;  %v5921_v41 = vpop.f32.mrb[10].mxu1  ;;  %v5858_v63 = vpop.f32.mrb[11].mxu0 }
 0x3d8   : >> { %v3413_v10 = vadd.f32 %v5856_v43, %v7460_v32  ;;  %v5859_v37 = vadd.f32 %v5858_v63, %v5857_v24  ;;  %v5922_v45 = vpop.f32.mrb[11].mxu1 }
 0x3d9   : >> { %v5923_v4 = vadd.f32 %v5922_v45, %v5921_v41 }
 0x3da   : >> { %v8046_v2 = vadd.f32 %v5920_v39, %v3413_v10  ;;  %v3416_v8 = vadd.f32 %v5859_v37, %v7460_v32 }
 0x3dc   : >> { %v8049_v28 = vadd.f32 %v5923_v4, %v3416_v8  ;;  %v5860_v29 = vpop.f32.mrb[12].mxu0 }
 0x3dd   : >> { %v5924_v23 = vpop.f32.mrb[12].mxu1  ;;  %v5861_v17 = vpop.f32.mrb[13].mxu0 }
 0x3de   : >> { %v5862_v0 = vadd.f32 %v5861_v17, %v5860_v29  ;;  %v5925_v12 = vpop.f32.mrb[13].mxu1  ;;  %v5863_v1 = vpop.f32.mrb[14].mxu0 }
 0x3df   : >> { %v5926_v9 = vadd.f32 %v5925_v12, %v5924_v23  ;;  %v5927_v31 = vpop.f32.mrb[14].mxu1  ;;  %v5864_v7 = vpop.f32.mrb[15].mxu0 }
 0x3e0   : >> { %v3421_v16 = vadd.f32 %v5862_v0, %v7460_v32  ;;  %v5865_v19 = vadd.f32 %v5864_v7, %v5863_v1  ;;  %v5928_v40 = vpop.f32.mrb[15].mxu1 }
 0x3e1   : >> { %v5929_v25 = vadd.f32 %v5928_v40, %v5927_v31 }
 0x3e2   : >> { %v8052_v20 = vadd.f32 %v5926_v9, %v3421_v16  ;;  %v3424_v35 = vadd.f32 %v5865_v19, %v7460_v32 }
 0x3e4   : >> { %v8055_v21 = vadd.f32 %v5929_v25, %v3424_v35  ;;  %v5866_v34 = vpop.f32.mrb[16].mxu0 }
 0x3e5   : >> { %v5930_v11 = vpop.f32.mrb[16].mxu1  ;;  %v5867_v44 = vpop.f32.mrb[17].mxu0 }
 0x3e6   : >> { %v5868_v18 = vadd.f32 %v5867_v44, %v5866_v34  ;;  %v5931_v62 = vpop.f32.mrb[17].mxu1  ;;  %v5869_v26 = vpop.f32.mrb[18].mxu0 }
 0x3e7   : >> { %v5932_v3 = vadd.f32 %v5931_v62, %v5930_v11  ;;  %v5933_v38 = vpop.f32.mrb[18].mxu1  ;;  %v5870_v42 = vpop.f32.mrb[19].mxu0 }
 0x3e8   : >> { %v3429_v5 = vadd.f32 %v5868_v18, %v7460_v32  ;;  %v5871_v13 = vadd.f32 %v5870_v42, %v5869_v26  ;;  %v5934_v27 = vpop.f32.mrb[19].mxu1 }
 0x3e9   : >> { %v5935_v36 = vadd.f32 %v5934_v27, %v5933_v38 }
 0x3ea   : >> { %v8058_v22 = vadd.f32 %v5932_v3, %v3429_v5  ;;  %v3432_v43 = vadd.f32 %v5871_v13, %v7460_v32 }
 0x3ec   : >> { %v8061_v6 = vadd.f32 %v5935_v36, %v3432_v43  ;;  %v5872_v24 = vpop.f32.mrb[20].mxu0 }
 0x3ed   : >> { %v5936_v39 = vpop.f32.mrb[20].mxu1  ;;  %v5873_v41 = vpop.f32.mrb[21].mxu0 }
 0x3ee   : >> { %v5874_v63 = vadd.f32 %v5873_v41, %v5872_v24  ;;  %v5937_v10 = vpop.f32.mrb[21].mxu1  ;;  %v5875_v37 = vpop.f32.mrb[22].mxu0 }
 0x3ef   : >> { %v5938_v45 = vadd.f32 %v5937_v10, %v5936_v39  ;;  %v5939_v4 = vpop.f32.mrb[22].mxu1  ;;  %v5876_v8 = vpop.f32.mrb[23].mxu0 }
 0x3f0   : >> { %v3437_v29 = vadd.f32 %v5874_v63, %v7460_v32  ;;  %v5877_v23 = vadd.f32 %v5876_v8, %v5875_v37  ;;  %v5940_v17 = vpop.f32.mrb[23].mxu1 }
 0x3f1   : >> { %v5941_v0 = vadd.f32 %v5940_v17, %v5939_v4 }
 0x3f2   : >> { %v8064_v12 = vadd.f32 %v5938_v45, %v3437_v29  ;;  %v3440_v1 = vadd.f32 %v5877_v23, %v7460_v32 }
 0x3f4   : >> { %v8067_v9 = vadd.f32 %v5941_v0, %v3440_v1  ;;  %v5878_v31 = vpop.f32.mrb[24].mxu0 }
 0x3f5   : >> { %v5942_v7 = vpop.f32.mrb[24].mxu1  ;;  %v5879_v16 = vpop.f32.mrb[25].mxu0 }
 0x3f6   : >> { %v5880_v19 = vadd.f32 %v5879_v16, %v5878_v31  ;;  %v5943_v40 = vpop.f32.mrb[25].mxu1  ;;  %v5881_v25 = vpop.f32.mrb[26].mxu0 }
 0x3f7   : >> { %v5944_v35 = vadd.f32 %v5943_v40, %v5942_v7  ;;  %v5945_v34 = vpop.f32.mrb[26].mxu1  ;;  %v5882_v11 = vpop.f32.mrb[27].mxu0 }
 0x3f8   : >> { %v3445_v44 = vadd.f32 %v5880_v19, %v7460_v32  ;;  %v5883_v18 = vadd.f32 %v5882_v11, %v5881_v25  ;;  %v5946_v62 = vpop.f32.mrb[27].mxu1 }
 0x3f9   : >> { %v5947_v26 = vadd.f32 %v5946_v62, %v5945_v34 }
 0x3fa   : >> { %v8070_v3 = vadd.f32 %v5944_v35, %v3445_v44  ;;  %v3448_v38 = vadd.f32 %v5883_v18, %v7460_v32 }
 0x3fc   : >> { %v8073_v42 = vadd.f32 %v5947_v26, %v3448_v38  ;;  %v5884_v5 = vpop.f32.mrb[28].mxu0 }
 0x3fd   : >> { %v5948_v13 = vpop.f32.mrb[28].mxu1  ;;  %v5885_v27 = vpop.f32.mrb[29].mxu0 }
 0x3fe   : >> { %v5886_v36 = vadd.f32 %v5885_v27, %v5884_v5  ;;  %v5949_v43 = vpop.f32.mrb[29].mxu1  ;;  %v5887_v24 = vpop.f32.mrb[30].mxu0 }
 0x3ff   : >> { %v5950_v39 = vadd.f32 %v5949_v43, %v5948_v13  ;;  %v5951_v41 = vpop.f32.mrb[30].mxu1  ;;  %v5888_v63 = vpop.f32.mrb[31].mxu0 }
 0x400   : >> { %v3453_v10 = vadd.f32 %v5886_v36, %v7460_v32  ;;  %v5889_v37 = vadd.f32 %v5888_v63, %v5887_v24  ;;  %v5952_v45 = vpop.f32.mrb[31].mxu1 }
 0x401   : >> { %v5953_v4 = vadd.f32 %v5952_v45, %v5951_v41 }
 0x402   : >> { %v8076_v8 = vadd.f32 %v5950_v39, %v3453_v10  ;;  %v3456_v29 = vadd.f32 %v5889_v37, %v7460_v32 }
 0x404   : >> { %v8079_v23 = vadd.f32 %v5953_v4, %v3456_v29  ;;  %v5970_v17 = vpop.f32.mrb[32].mxu0 }
 0x405   : >> { %v6034_v0 = vpop.f32.mrb[32].mxu1  ;;  %v5971_v1 = vpop.f32.mrb[33].mxu0 }
 0x406   : >> { %v5972_v31 = vadd.f32 %v5971_v1, %v5970_v17  ;;  %v6035_v7 = vpop.f32.mrb[33].mxu1  ;;  %v5973_v16 = vpop.f32.mrb[34].mxu0 }
 0x407   : >> { %v6036_v19 = vadd.f32 %v6035_v7, %v6034_v0  ;;  %v6037_v40 = vpop.f32.mrb[34].mxu1  ;;  %v5974_v25 = vpop.f32.mrb[35].mxu0 }
 0x408   : >> { %v3591_v35 = vadd.f32 %v5972_v31, %v8034_v33  ;;  %v5975_v34 = vadd.f32 %v5974_v25, %v5973_v16  ;;  %v6038_v11 = vpop.f32.mrb[35].mxu1 }
 0x409   : >> { %v6039_v44 = vadd.f32 %v6038_v11, %v6037_v40 }
 0x40a   : >> { %v3594_v18 = vadd.f32 %v5975_v34, %v8037_v14  ;;  %v8083_v62 = vadd.f32 %v6036_v19, %v3591_v35 }
 0x40c   : >> { %v5976_v26 = vpop.f32.mrb[36].mxu0  ;;  %v8085_v38 = vadd.f32 %v6039_v44, %v3594_v18 }
 0x40d   : >> { %v6040_v5 = vpop.f32.mrb[36].mxu1  ;;  %v5977_v13 = vpop.f32.mrb[37].mxu0 }
 0x40e   : >> { %v5978_v27 = vadd.f32 %v5977_v13, %v5976_v26  ;;  %v6041_v36 = vpop.f32.mrb[37].mxu1  ;;  %v5979_v43 = vpop.f32.mrb[38].mxu0 }
 0x40f   : >> { %v6042_v24 = vadd.f32 %v6041_v36, %v6040_v5  ;;  %v6043_v39 = vpop.f32.mrb[38].mxu1  ;;  %v5980_v41 = vpop.f32.mrb[39].mxu0 }
 0x410   : >> { %v3599_v33 = vadd.f32 %v5978_v27, %v8040_v30  ;;  %v5981_v63 = vadd.f32 %v5980_v41, %v5979_v43  ;;  %v6044_v10 = vpop.f32.mrb[39].mxu1 }
 0x411   : >> { %v6045_v37 = vadd.f32 %v6044_v10, %v6043_v39 }
 0x412   : >> { %v3602_v14 = vadd.f32 %v5981_v63, %v8043_v15  ;;  %v8089_v45 = vadd.f32 %v6042_v24, %v3599_v33 }
 0x414   : >> { %v5982_v4 = vpop.f32.mrb[40].mxu0  ;;  %v8091_v29 = vadd.f32 %v6045_v37, %v3602_v14 }
 0x415   : >> { %v6046_v17 = vpop.f32.mrb[40].mxu1  ;;  %v5983_v0 = vpop.f32.mrb[41].mxu0 }
 0x416   : >> { %v5984_v1 = vadd.f32 %v5983_v0, %v5982_v4  ;;  %v6047_v31 = vpop.f32.mrb[41].mxu1  ;;  %v5985_v7 = vpop.f32.mrb[42].mxu0 }
 0x417   : >> { %v6048_v16 = vadd.f32 %v6047_v31, %v6046_v17  ;;  %v6049_v19 = vpop.f32.mrb[42].mxu1  ;;  %v5986_v40 = vpop.f32.mrb[43].mxu0 }
 0x418   : >> { %v3607_v30 = vadd.f32 %v5984_v1, %v8046_v2  ;;  %v5987_v25 = vadd.f32 %v5986_v40, %v5985_v7  ;;  %v6050_v35 = vpop.f32.mrb[43].mxu1 }
 0x419   : >> { %v6051_v34 = vadd.f32 %v6050_v35, %v6049_v19 }
 0x41a   : >> { %v3610_v15 = vadd.f32 %v5987_v25, %v8049_v28  ;;  %v8095_v11 = vadd.f32 %v6048_v16, %v3607_v30 }
 0x41c   : >> { %v5988_v44 = vpop.f32.mrb[44].mxu0  ;;  %v8097_v18 = vadd.f32 %v6051_v34, %v3610_v15 }
 0x41d   : >> { %v6052_v26 = vpop.f32.mrb[44].mxu1  ;;  %v5989_v5 = vpop.f32.mrb[45].mxu0 }
 0x41e   : >> { %v5990_v13 = vadd.f32 %v5989_v5, %v5988_v44  ;;  %v6053_v27 = vpop.f32.mrb[45].mxu1  ;;  %v5991_v36 = vpop.f32.mrb[46].mxu0 }
 0x41f   : >> { %v6054_v43 = vadd.f32 %v6053_v27, %v6052_v26  ;;  %v6055_v24 = vpop.f32.mrb[46].mxu1  ;;  %v5992_v39 = vpop.f32.mrb[47].mxu0 }
 0x420   : >> { %v3615_v2 = vadd.f32 %v5990_v13, %v8052_v20  ;;  %v5993_v41 = vadd.f32 %v5992_v39, %v5991_v36  ;;  %v6056_v33 = vpop.f32.mrb[47].mxu1 }
 0x421   : >> { %v6057_v63 = vadd.f32 %v6056_v33, %v6055_v24 }
 0x422   : >> { %v3618_v28 = vadd.f32 %v5993_v41, %v8055_v21  ;;  %v8101_v10 = vadd.f32 %v6054_v43, %v3615_v2 }
 0x424   : >> { %v5994_v37 = vpop.f32.mrb[48].mxu0  ;;  %v8103_v14 = vadd.f32 %v6057_v63, %v3618_v28 }
 0x425   : >> { %v6058_v4 = vpop.f32.mrb[48].mxu1  ;;  %v5995_v17 = vpop.f32.mrb[49].mxu0 }
 0x426   : >> { %v5996_v0 = vadd.f32 %v5995_v17, %v5994_v37  ;;  %v6059_v1 = vpop.f32.mrb[49].mxu1  ;;  %v5997_v31 = vpop.f32.mrb[50].mxu0 }
 0x427   : >> { %v6060_v7 = vadd.f32 %v6059_v1, %v6058_v4  ;;  %v6061_v16 = vpop.f32.mrb[50].mxu1  ;;  %v5998_v19 = vpop.f32.mrb[51].mxu0 }
 0x428   : >> { %v3623_v20 = vadd.f32 %v5996_v0, %v8058_v22  ;;  %v5999_v40 = vadd.f32 %v5998_v19, %v5997_v31  ;;  %v6062_v30 = vpop.f32.mrb[51].mxu1 }
 0x429   : >> { %v6063_v25 = vadd.f32 %v6062_v30, %v6061_v16 }
 0x42a   : >> { %v3626_v21 = vadd.f32 %v5999_v40, %v8061_v6  ;;  %v3720_v35 = vadd.f32 %v6060_v7, %v3623_v20 }
 0x42c   : >> { %v6000_v34 = vpop.f32.mrb[52].mxu0  ;;  %v8107_v15 = vadd.f32 %v6063_v25, %v3626_v21 }
 0x42d   : >> { %v6064_v44 = vpop.f32.mrb[52].mxu1  ;;  %v6001_v26 = vpop.f32.mrb[53].mxu0 }
 0x42e   : >> { %v6002_v5 = vadd.f32 %v6001_v26, %v6000_v34  ;;  %v6065_v13 = vpop.f32.mrb[53].mxu1  ;;  %v6003_v27 = vpop.f32.mrb[54].mxu0 }
 0x42f   : >> { %v6066_v36 = vadd.f32 %v6065_v13, %v6064_v44  ;;  %v6067_v43 = vpop.f32.mrb[54].mxu1  ;;  %v6004_v24 = vpop.f32.mrb[55].mxu0 }
 0x430   : >> { %v3631_v39 = vadd.f32 %v6002_v5, %v8064_v12  ;;  %v6005_v22 = vadd.f32 %v6004_v24, %v6003_v27  ;;  %v6068_v2 = vpop.f32.mrb[55].mxu1 }
 0x431   : >> { %v6069_v41 = vadd.f32 %v6068_v2, %v6067_v43 }
 0x432   : >> { %v3634_v33 = vadd.f32 %v6005_v22, %v8067_v9  ;;  %v3728_v6 = vadd.f32 %v6066_v36, %v3631_v39 }
 0x434   : >> { %v6006_v63 = vpop.f32.mrb[56].mxu0  ;;  %v3731_v28 = vadd.f32 %v6069_v41, %v3634_v33 }
 0x435   : >> { %v6070_v37 = vpop.f32.mrb[56].mxu1  ;;  %v6007_v4 = vpop.f32.mrb[57].mxu0 }
 0x436   : >> { %v6008_v17 = vadd.f32 %v6007_v4, %v6006_v63  ;;  %v6071_v0 = vpop.f32.mrb[57].mxu1  ;;  %v6009_v1 = vpop.f32.mrb[58].mxu0 }
 0x437   : >> { %v6072_v31 = vadd.f32 %v6071_v0, %v6070_v37  ;;  %v6073_v7 = vpop.f32.mrb[58].mxu1  ;;  %v6010_v16 = vpop.f32.mrb[59].mxu0 }
 0x438   : >> { %v3639_v19 = vadd.f32 %v6008_v17, %v8070_v3  ;;  %v6011_v20 = vadd.f32 %v6010_v16, %v6009_v1  ;;  %v6074_v12 = vpop.f32.mrb[59].mxu1 }
 0x439   : >> { %v6075_v40 = vadd.f32 %v6074_v12, %v6073_v7 }
 0x43a   : >> { %v3642_v30 = vadd.f32 %v6011_v20, %v8073_v42  ;;  %v8113_v25 = vadd.f32 %v6072_v31, %v3639_v19 }
 0x43c   : >> { %v6012_v9 = vpop.f32.mrb[60].mxu0  ;;  %v8115_v21 = vadd.f32 %v6075_v40, %v3642_v30 }
 0x43d   : >> { %v6076_v34 = vpop.f32.mrb[60].mxu1  ;;  %v6013_v44 = vpop.f32.mrb[61].mxu0 }
 0x43e   : >> { %v6014_v26 = vadd.f32 %v6013_v44, %v6012_v9  ;;  %v6077_v5 = vpop.f32.mrb[61].mxu1  ;;  %v6015_v13 = vpop.f32.mrb[62].mxu0 }
 0x43f   : >> { %v6078_v27 = vadd.f32 %v6077_v5, %v6076_v34  ;;  %v6079_v36 = vpop.f32.mrb[62].mxu1  ;;  %v6016_v43 = vpop.f32.mrb[63].mxu0 }
 0x440   : >> { %v3647_v3 = vadd.f32 %v6014_v26, %v8076_v8  ;;  %v6017_v24 = vadd.f32 %v6016_v43, %v6015_v13  ;;  %v6080_v39 = vpop.f32.mrb[63].mxu1 }
 0x441   : >> { %v6081_v22 = vadd.f32 %v6080_v39, %v6079_v36 }
 0x442   : >> { %v3650_v42 = vadd.f32 %v6017_v24, %v8079_v23  ;;  %v3744_v2 = vadd.f32 %v6078_v27, %v3647_v3 }
 0x444   : >> { %v6310_v41 = vpop.f32.mrb[64].mxu0  ;;  %v3747_v33 = vadd.f32 %v6081_v22, %v3650_v42 }
 0x445   : >> { %v3793_v63 = vadd.f32 %v6310_v41, %v8089_v45  ;;  %v6318_v37 = vpop.f32.mrb[64].mxu1  ;;  %v3784_v4 = vpop.f32.mrb[65].mxu0 }
 0x446   : >> { %v3825_v17 = vadd.f32 %v6318_v37, %v3728_v6  ;;  %v3785_v0 = vadd.f32 %v3784_v4, %v8083_v62  ;;  %v3816_v1 = vpop.f32.mrb[65].mxu1  ;;  %v6311_v31 = vpop.f32.mrb[66].mxu0 }
 0x447   : >> { %v3849_v7 = vmul.f32 0.05, %v3793_v63  ;;  %v3817_v16 = vadd.f32 %v3816_v1, %v3720_v35  ;;  %v3796_v8 = vadd.f32 %v6311_v31, %v8091_v29  ;;  %v6319_v19 = vpop.f32.mrb[66].mxu1  ;;  %v3787_v20 = vpop.f32.mrb[67].mxu0 }
 0x448   : >> { %v3857_v23 = vmul.f32 0.05, %v3825_v17  ;;  %v3847_v12 = vmul.f32 0.05, %v3785_v0  ;;  %v3828_v40 = vadd.f32 %v6319_v19, %v3731_v28  ;;  %v3788_v30 = vadd.f32 %v3787_v20, %v8085_v38  ;;  %v3819_v45 = vpop.f32.mrb[67].mxu1 }
 0x449   : >> { %v3865_v9 = vmax.f32 %v3793_v63, %v3849_v7  ;;  %v3855_v34 = vmul.f32 0.05, %v3817_v16  ;;  %v3850_v6 = vmul.f32 0.05, %v3796_v8  ;;  %v3820_v62 = vadd.f32 %v3819_v45, %v8107_v15  ;;  %v8171_v45 = vld [vmem:[%s8744_s8] ss:$0 sm:$0xff] (%p2208_p9) }
 0x44a   : >> { %v3873_v44 = vmax.f32 %v3825_v17, %v3857_v23  ;;  %v3863_v26 = vmax.f32 %v3785_v0, %v3847_v12  ;;  %v3858_v5 = vmul.f32 0.05, %v3828_v40  ;;  %v3848_v35 = vmul.f32 0.05, %v3788_v30 }
 0x44b   : >> { %5469 = vst.msk [vmem:[%s8125_s29 + $0x28] sm:$0xff] %vm8956_vm3, %v3865_v9  ;;  %v3871_v38 = vmax.f32 %v3817_v16, %v3855_v34  ;;  %v3866_v29 = vmax.f32 %v3796_v8, %v3850_v6  ;;  %v3856_v28 = vmul.f32 0.05, %v3820_v62 }
 0x44c   : >> { %5477 = vst.msk [vmem:[%s8125_s29 + $0x68] sm:$0xff] %vm8957_vm6, %v3873_v44  ;;  %v3874_v15 = vmax.f32 %v3828_v40, %v3858_v5  ;;  %v3864_v13 = vmax.f32 %v3788_v30, %v3848_v35  ;;  %v6314_v27 = vpop.f32.mrb[68].mxu0 }
 0x44d   : >> { %5467 = vst.msk [vmem:[%s8125_s29 + $0x18] sm:$0xff] %vm8958_vm13, %v3863_v26  ;;  %v3872_v36 = vmax.f32 %v3820_v62, %v3856_v28  ;;  %v3809_v43 = vadd.f32 %v6314_v27, %v8101_v10  ;;  %v6322_v3 = vpop.f32.mrb[68].mxu1  ;;  %v3800_v24 = vpop.f32.mrb[69].mxu0 }
 0x44e   : >> { %5475 = vst.msk [vmem:[%s8125_s29 + $0x58] sm:$0xff] %vm8959_vm14, %v3871_v38  ;;  %v3841_v39 = vadd.f32 %v6322_v3, %v3744_v2  ;;  %v3801_v22 = vadd.f32 %v3800_v24, %v8095_v11  ;;  %v3832_v42 = vpop.f32.mrb[69].mxu1  ;;  %v6315_v41 = vpop.f32.mrb[70].mxu0 }
 0x44f   : >> { %5470 = vst.msk [vmem:[%s8125_s29 + $0x30] sm:$0xff] %vm8960_vm8, %v3866_v29  ;;  %v3853_v63 = vmul.f32 0.05, %v3809_v43  ;;  %v3833_v37 = vadd.f32 %v3832_v42, %v8113_v25  ;;  %v3812_v4 = vadd.f32 %v6315_v41, %v8103_v14  ;;  %v6323_v10 = vpop.f32.mrb[70].mxu1  ;;  %v3803_v17 = vpop.f32.mrb[71].mxu0 }
 0x450   : >> { %5478 = vst.msk [vmem:[%s8125_s29 + $0x70] sm:$0xff] %vm8961_vm7, %v3874_v15  ;;  %v3861_v0 = vmul.f32 0.05, %v3841_v39  ;;  %v3851_v1 = vmul.f32 0.05, %v3801_v22  ;;  %v3844_v31 = vadd.f32 %v6323_v10, %v3747_v33  ;;  %v3804_v2 = vadd.f32 %v3803_v17, %v8097_v18  ;;  %v3835_v11 = vpop.f32.mrb[71].mxu1 }
 0x451   : >> { %5468 = vst.msk [vmem:[%s8125_s29 + $0x20] sm:$0xff] %vm8962_vm9, %v3864_v13  ;;  %v3869_v7 = vmax.f32 %v3809_v43, %v3853_v63  ;;  %v3859_v16 = vmul.f32 0.05, %v3833_v37  ;;  %v3854_v8 = vmul.f32 0.05, %v3812_v4  ;;  %v3836_v25 = vadd.f32 %v3835_v11, %v8115_v21 }
 0x452   : >> { %5476 = vst.msk [vmem:[%s8125_s29 + $0x60] sm:$0xff] %vm8963_vm10, %v3872_v36  ;;  %v3877_v14 = vmax.f32 %v3841_v39, %v3861_v0  ;;  %v3867_v19 = vmax.f32 %v3801_v22, %v3851_v1  ;;  %v3862_v20 = vmul.f32 0.05, %v3844_v31  ;;  %v3852_v23 = vmul.f32 0.05, %v3804_v2 }
 0x453   : >> { %5473 = vst.msk [vmem:[%s8125_s29 + $0x48] sm:$0xff] %vm8964_vm1, %v3869_v7  ;;  %v3875_v33 = vmax.f32 %v3833_v37, %v3859_v16  ;;  %v3870_v12 = vmax.f32 %v3812_v4, %v3854_v8  ;;  %v3860_v18 = vmul.f32 0.05, %v3836_v25 }
 0x454   : >> { %5481 = vst.msk [vmem:[%s8125_s29 + $0x88] sm:$0xff] %vm8965_vm0, %v3877_v14  ;;  %v3878_v40 = vmax.f32 %v3844_v31, %v3862_v20  ;;  %v3868_v30 = vmax.f32 %v3804_v2, %v3852_v23  ;;  %2210 = sbr.rel (!%p2208_p9) target bundleno = 719 (0x2cf), region = 144 }
 0x455   : >> { %5471 = vst.msk [vmem:[%s8125_s29 + $0x38] sm:$0xff] %vm8966_vm5, %v3867_v19  ;;  %v3876_v21 = vmax.f32 %v3836_v25, %v3860_v18 }
 0x456   : >> { %5479 = vst.msk [vmem:[%s8125_s29 + $0x78] sm:$0xff] %vm8967_vm12, %v3875_v33 }
 0x457   : >> { %5474 = vst.msk [vmem:[%s8125_s29 + $0x50] sm:$0xff] %vm8968_vm11, %v3870_v12 }
 0x458   : >> { %5482 = vst.msk [vmem:[%s8125_s29 + $0x90] sm:$0xff] %vm8969_vm4, %v3878_v40 }
 0x459   : >> { %5472 = vst.msk [vmem:[%s8125_s29 + $0x40] sm:$0xff] %vm8970_vm15, %v3868_v30 }
 0x45a   : >> { %5480 = vst.msk [vmem:[%s8125_s29 + $0x80] sm:$0xff] %vm8971_vm2, %v3876_v21 }
 0x45b LB: >> { %v6572_v9 = vld [vmem:[%s8743_s7 + $0x40] sm:$0xff]   ;;  %s5483_s18 = sshll.u32 %s6650_s14, 7  ;;  %v6575_v6 = vld [vmem:[%s8743_s7 + $0x48] sm:$0xff]   ;;  %v6579_v5 = vld [vmem:[%s8743_s7 + $0x50] sm:$0xff]   ;;  %vm8972_vm3 = vcmask 523264   ;;  %s6656_s17 = smov 64   ;;  %s6650_s14 = sphi %s8173_s14, %s3903_s14  }
 0x45c   : >> { %v6573_v32 = vld [vmem:[%s8743_s7] sm:$0xff]   ;;  %6098 = vmatprep.subr.bf16.mxu0 %v6572_v9  ;;  %p3905_p10 = scmp.lt.s32.totalorder %s5483_s18, 128  ;;  %v6577_v44 = vld [vmem:[%s8743_s7 + $0x8] sm:$0xff]   ;;  %vm8973_vm6 = vmmov %vm8972_vm3  ;;  %s3903_s14 = sadd.s32 1, %s6650_s14  }
 0x45d   : >> { %v6574_v34 = vld [vmem:[%s8743_s7 + $0xc0] sm:$0xff]   ;;  %6099 = vmatpush3.bf16.msra.mxu0 %v6573_v32  ;;  %v6578_v26 = vld [vmem:[%s8743_s7 + $0xc8] sm:$0xff]   ;;  %vm8974_vm13 = vmmov %vm8972_vm3  ;;  %p3900_p11 = scmp.ge.s32.totalorder %s3903_s14, 2  }
 0x45e   : >> { %6162 = vmatprep.subr.bf16.mxu1 %v6574_v34  ;;  %v6576_v62 = vld [vmem:[%s8743_s7 + $0x80] sm:$0xff]   ;;  %s9088_s18 = smov (!%p3905_p10, %s5483_s18), 128  ;;  %6100 = vmatprep.subr.bf16.mxu0 %v6575_v6  ;;  %vm8975_vm14 = vmmov %vm8972_vm3  ;;  %v6580_v0 = vld [vmem:[%s8743_s7 + $0x88] sm:$0xff]  }
 0x45f   : >> { %6163 = vmatpush3.bf16.msra.mxu1 %v6576_v62  ;;  %s8206_s13 = scalar_lea.vmem [#allocation4], %s9088_s18  ;;  %vm8976_vm8 = vmmov %vm8972_vm3  ;;  %s8687_s19 = scalar_lea.vmem %s6762_s21, %s9088_s18 }
 0x460   : >> { %6164 = vmatprep.subr.bf16.mxu1 %v6578_v26  ;;  %vm8977_vm7 = vmmov %vm8972_vm3 }
 0x461   : >> { %6101 = vmatpush3.bf16.msra.mxu0 %v6577_v44  ;;  %v3910_v35 = vld [vmem:[%s8206_s13 + $0x10] sm:$0xff]  ;;  %v3911_v38 = vld [vmem:[%s8206_s13 + $0x18] sm:$0xff]  ;;  %v3912_v29 = vld [vmem:[%s8206_s13 + $0x20] sm:$0xff] }
 0x462   : >> { %3932 = vst.msk [vmem:[#allocation5 + $0x10] sm:$0xff] %vm8972_vm3, %v3910_v35  ;;  %v3909_v28 = vld [vmem:[%s8206_s13 + $0x8] sm:$0xff]  ;;  %v3914_v13 = vld [vmem:[%s8206_s13 + $0x30] sm:$0xff]  ;;  %6102 = vmatprep.subr.bf16.mxu0 %v6579_v5  ;;  %v3915_v27 = vld [vmem:[%s8206_s13 + $0x38] sm:$0xff] }
 0x463   : >> { %3933 = vst.msk [vmem:[#allocation5 + $0x18] sm:$0xff] %vm8973_vm6, %v3911_v38  ;;  %v3913_v15 = vld [vmem:[%s8206_s13 + $0x28] sm:$0xff]  ;;  %v3916_v36 = vld [vmem:[%s8206_s13 + $0x40] sm:$0xff]  ;;  %vm8978_vm9 = vmmov %vm8972_vm3  ;;  %6165 = vmatpush3.bf16.msra.mxu1 %v6580_v0 }
 0x464   : >> { %3934 = vst.msk [vmem:[#allocation5 + $0x20] sm:$0xff] %vm8974_vm13, %v3912_v29  ;;  %v3917_v43 = vld [vmem:[%s8206_s13 + $0x48] sm:$0xff]  ;;  %vm8979_vm10 = vmmov %vm8972_vm3  ;;  %v3918_v3 = vld [vmem:[%s8206_s13 + $0x50] sm:$0xff] }
 0x465   : >> { %3931 = vst.msk [vmem:[#allocation5 + $0x8] sm:$0xff] %vm8975_vm14, %v3909_v28  ;;  %vm8980_vm1 = vmmov %vm8972_vm3  ;;  %v3919_v24 = vld [vmem:[%s8206_s13 + $0x58] sm:$0xff]  ;;  %v3920_v39 = vld [vmem:[%s8206_s13 + $0x60] sm:$0xff] }
 0x466   : >> { %3935 = vst.msk [vmem:[#allocation5 + $0x28] sm:$0xff] %vm8976_vm8, %v3913_v15  ;;  %vm8981_vm0 = vmmov %vm8980_vm1  ;;  %v3921_v22 = vld [vmem:[%s8206_s13 + $0x68] sm:$0xff]  ;;  %v3922_v42 = vld [vmem:[%s8206_s13 + $0x70] sm:$0xff]  ;;  %vm8992_vm8 = vnez %v8785_v46 }
 0x467   : >> { %3936 = vst.msk [vmem:[#allocation5 + $0x30] sm:$0xff] %vm8977_vm7, %v3914_v13  ;;  %vm8982_vm5 = vmmov %vm8981_vm0  ;;  %v3923_v41 = vld [vmem:[%s8206_s13 + $0x78] sm:$0xff]  ;;  %v3924_v63 = vld [vmem:[%s8206_s13 + $0x80] sm:$0xff]  ;;  %vm8993_vm7 = vnez %v8787_v47 }
 0x468   : >> { %3937 = vst.msk [vmem:[#allocation5 + $0x38] sm:$0xff] %vm8978_vm9, %v3915_v27  ;;  %vm8983_vm12 = vmmov %vm8981_vm0  ;;  %v3925_v37 = vld [vmem:[%s8206_s13 + $0x88] sm:$0xff]  ;;  %v3926_v4 = vld [vmem:[%s8206_s13 + $0x90] sm:$0xff]  ;;  %vm8994_vm9 = vnez %v8801_v54 }
 0x469   : >> { %3938 = vst.msk [vmem:[#allocation5 + $0x40] sm:$0xff] %vm8979_vm10, %v3916_v36  ;;  %vm8984_vm11 = vmmov %vm8981_vm0  ;;  %v3927_v10 = vld [vmem:[%s8206_s13 + $0x98] sm:$0xff]  ;;  %v3928_v17 = vld [vmem:[%s8206_s13 + $0xa0] sm:$0xff]  ;;  %vm8995_vm10 = vnez %v8803_v55 }
 0x46a   : >> { %3939 = vst.msk [vmem:[#allocation5 + $0x48] sm:$0xff] %vm8980_vm1, %v3917_v43  ;;  %vm8985_vm4 = vmmov %vm8981_vm0  ;;  %v4176_v1 = vld [vmem:[#allocation5 + $0x17] sm:$0xff] }
 0x46b   : >> { %3940 = vst.msk [vmem:[#allocation5 + $0x50] sm:$0xff] %vm8981_vm0, %v3918_v3  ;;  %vm8986_vm15 = vmmov %vm8981_vm0  ;;  %v4177_v31 = vld [vmem:[#allocation5 + $0x1f] sm:$0xff]  ;;  %v4033_v2 = vld [vmem:[#allocation5 + $0x10] sm:$0xff]  ;;  %v4192_v11 = vsel %vm8992_vm8, %v4176_v1, 0.0  ;;  %v4002_v25 = vsel %vm8993_vm7, %v4176_v1, 0.0 }
 0x46c   : >> { %3941 = vst.msk [vmem:[#allocation5 + $0x58] sm:$0xff] %vm8982_vm5, %v3919_v24  ;;  %vm8987_vm2 = vmmov %vm8981_vm0  ;;  %v4032_v7 = vld [vmem:[#allocation5 + $0x8] sm:$0xff]  ;;  %v4208_v14 = vpack.c.bf16 %v4177_v31, %v4192_v11  ;;  %v4288_v23 = vld [vmem:[#allocation5 + $0x19] sm:$0xff]  ;;  %v4017_v18 = vpack.c.bf16 %v4177_v31, %v4002_v25 }
 0x46d   : >> { %3942 = vst.msk [vmem:[#allocation5 + $0x60] sm:$0xff] %vm8983_vm12, %v3920_v39  ;;  %vm8988_vm3 = vmmov %vm8981_vm0  ;;  %v4416_v16 = vld [vmem:[#allocation5 + $0x28] sm:$0xff]  ;;  %v4048_v19 = vpack.c.bf16 %v4033_v2, %v4032_v7  ;;  %v4034_v62 = vld [vmem:[#allocation5 + $0x18] sm:$0xff] }
 0x46e   : >> { %3943 = vst.msk [vmem:[#allocation5 + $0x68] sm:$0xff] %vm8984_vm11, %v3921_v22  ;;  %vm8989_vm6 = vmmov %vm8981_vm0  ;;  %v4417_v8 = vld [vmem:[#allocation5 + $0x30] sm:$0xff]  ;;  %v4289_v33 = vld [vmem:[#allocation5 + $0x21] sm:$0xff]  ;;  %4224 = vrot.lane.b32.xlu0 %v4208_v14, %s6656_s17 }
 0x46f   : >> { %3944 = vst.msk [vmem:[#allocation5 + $0x70] sm:$0xff] %vm8985_vm4, %v3922_v42  ;;  %vm8990_vm13 = vmmov %vm8981_vm0  ;;  %v8255_v20 = vpack.c.bf16 %v4417_v8, %v4416_v16  ;;  %v8257_v12 = vld [vmem:[#allocation5 + $0x27] sm:$0xff]  ;;  %v4305_v40 = vsel %vm8994_vm9, %v4289_v33, 0.0  ;;  %v4418_v30 = vld [vmem:[#allocation5 + $0x38] sm:$0xff]  ;;  %4064 = vrot.lane.b32.xlu1 %v4048_v19, %s6656_s17  ;;  %v4147_v26 = vsel %vm8995_vm10, %v4289_v33, 0.0 }
 0x470   : >> { %3945 = vst.msk [vmem:[#allocation5 + $0x78] sm:$0xff] %vm8986_vm15, %v3923_v41  ;;  %vm8991_vm14 = vmmov %vm8981_vm0  ;;  %v4419_v21 = vld [vmem:[#allocation5 + $0x40] sm:$0xff]  ;;  %v4384_v9 = vsel %vm8992_vm8, %v8257_v12, 0.0  ;;  %v4320_v32 = vpack.c.bf16 %v4305_v40, %v4288_v23  ;;  %v4179_v34 = vld [vmem:[#allocation5 + $0x2f] sm:$0xff]  ;;  %v4194_v5 = vsel %vm8993_vm7, %v8257_v12, 0.0  ;;  %v4161_v15 = vpack.c.bf16 %v4147_v26, %v4288_v23 }
 0x471   : >> { %3946 = vst.msk [vmem:[#allocation5 + $0x80] sm:$0xff] %vm8987_vm2, %v3924_v63  ;;  %v8266_v6 = vpack.c.bf16 %v4419_v21, %v4418_v30  ;;  %v4035_v44 = vld [vmem:[#allocation5 + $0x20] sm:$0xff]  ;;  %vm8996_vm1 = vmmov %vm8981_vm0  ;;  %v4291_v38 = vld [vmem:[#allocation5 + $0x31] sm:$0xff]  ;;  %v4400_v28 = vpack.c.bf16 %v4179_v34, %v4384_v9  ;;  %v4209_v39 = vpack.c.bf16 %v4179_v34, %v4194_v5  ;;  %vm9001_vm15 = vnez %v8805_v56 }
 0x472   : >> { %3947 = vst.msk [vmem:[#allocation5 + $0x88] sm:$0xff] %vm8988_vm3, %v3925_v37  ;;  %v4049_v35 = vpack.c.bf16 %v4035_v44, %v4034_v62  ;;  %v8276_v29 = vld [vmem:[#allocation5 + $0x37] sm:$0xff]  ;;  %v8278_v13 = vld [vmem:[#allocation5 + $0x3f] sm:$0xff]  ;;  %v4420_v27 = vld [vmem:[#allocation5 + $0x48] sm:$0xff]  ;;  %4448 = vrot.lane.b32.xlu0 %v8255_v20, %s6656_s17  ;;  %v4149_v63 = vsel %vm9001_vm15, %v4291_v38, 0.0  ;;  %v4307_v37 = vsel %vm8995_vm10, %v4291_v38, 0.0 }
 0x473   : >> { %3948 = vst.msk [vmem:[#allocation5 + $0x90] sm:$0xff] %vm8989_vm6, %v3926_v4  ;;  %v4421_v36 = vld [vmem:[#allocation5 + $0x50] sm:$0xff]  ;;  %v4386_v43 = vsel %vm8993_vm7, %v8276_v29, 0.0  ;;  %vm8997_vm5 = vmmov %vm8981_vm0  ;;  %4336 = vrot.lane.b32.xlu1 %v4320_v32, %s6656_s17  ;;  %v4422_v42 = vld [vmem:[#allocation5 + $0x58] sm:$0xff]  ;;  %vm9004_vm6 = vnez %v8789_v48 }
 0x474   : >> { %3949 = vst.msk [vmem:[#allocation5 + $0x98] sm:$0xff] %vm8990_vm13, %v3927_v10  ;;  %v8285_v3 = vpack.c.bf16 %v4421_v36, %v4420_v27  ;;  %vm8998_vm12 = vmmov %vm8981_vm0  ;;  %v4401_v24 = vpack.c.bf16 %v8278_v13, %v4386_v43  ;;  %v4290_v22 = vld [vmem:[#allocation5 + $0x29] sm:$0xff]  ;;  %v4423_v41 = vld [vmem:[#allocation5 + $0x60] sm:$0xff]  ;;  %v4004_v14 = vsel %vm9004_vm6, %v8257_v12, 0.0  ;;  %v4196_v19 = vsel %vm9004_vm6, %v8276_v29, 0.0 }
 0x475   : >> { %3950 = vst.msk [vmem:[#allocation5 + $0xa0] sm:$0xff] %vm8991_vm14, %v3928_v17  ;;  %vm8999_vm11 = vmmov %vm8981_vm0  ;;  %v8298_v4 = vld [vmem:[#allocation5 + $0x47] sm:$0xff]  ;;  %v8300_v10 = vpack.c.bf16 %v4423_v41, %v4422_v42  ;;  %v4162_v17 = vpack.c.bf16 %v4149_v63, %v4290_v22  ;;  %v8305_v0 = vld [vmem:[#allocation5 + $0x4f] sm:$0xff]  ;;  %v4321_v16 = vpack.c.bf16 %v4307_v37, %v4290_v22 }
 0x476   : >> { %4025 = vst.msk [vmem:[#allocation8 + $0x28] sm:$0xff] %vm8996_vm1, %v4017_v18  ;;  %vm9000_vm4 = vmmov %vm8981_vm0  ;;  %v4424_v1 = vld [vmem:[#allocation5 + $0x68] sm:$0xff]  ;;  %v4425_v31 = vld [vmem:[#allocation5 + $0x70] sm:$0xff]  ;;  %v4388_v2 = vsel %vm9004_vm6, %v8298_v4, 0.0  ;;  %4226 = vrot.lane.b32.xlu0 %v4209_v39, %s6656_s17  ;;  %v4018_v18 = vpack.c.bf16 %v4179_v34, %v4004_v14  ;;  %v4210_v34 = vpack.c.bf16 %v8278_v13, %v4196_v19  ;;  %vm9016_vm6 = vnez %v8809_v58 }
 0x477   : >> { %4281 = vst.msk [vmem:[#allocation8 + $0x38] sm:$0xff] %vm8981_vm0, %v8255_v20  ;;  %vm9002_vm2 = vmmov %vm8981_vm0  ;;  %v8310_v11 = vpack.c.bf16 %v4425_v31, %v4424_v1  ;;  %v4402_v7 = vpack.c.bf16 %v8305_v0, %v4388_v2  ;;  %4450 = vrot.lane.b32.xlu1 %v8266_v6, %s6656_s17  ;;  %v4426_v8 = vld [vmem:[#allocation5 + $0x78] sm:$0xff]  ;;  %v4293_v23 = vld [vmem:[#allocation5 + $0x41] sm:$0xff] }
 0x478   : >> { %4282 = vst.msk [vmem:[#allocation8 + $0x60] sm:$0xff] %vm8997_vm5, %v8266_v6  ;;  %vm9003_vm3 = vmmov %vm8981_vm0  ;;  %v4427_v25 = vld [vmem:[#allocation5 + $0x80] sm:$0xff]  ;;  %v8332_v12 = vld [vmem:[#allocation5 + $0x57] sm:$0xff]  ;;  %v4309_v5 = vsel %vm9001_vm15, %v4293_v23, 0.0 }
 0x479   : >> { %4408 = vst.msk [vmem:[#allocation8 + $0x18] sm:$0xff] %vm8998_vm12, %v4400_v28  ;;  %vm9005_vm13 = vmmov %vm8981_vm0  ;;  %v8325_v33 = vpack.c.bf16 %v4427_v25, %v4426_v8  ;;  %v4292_v40 = vld [vmem:[#allocation5 + $0x39] sm:$0xff]  ;;  %v4428_v30 = vld [vmem:[#allocation5 + $0x88] sm:$0xff] }
 0x47a   : >> { %4280 = vst.msk [vmem:[#allocation8 + $0x10] sm:$0xff] %vm8999_vm11, %v4049_v35  ;;  %vm9006_vm14 = vmmov %vm8981_vm0  ;;  %v4429_v21 = vld [vmem:[#allocation5 + $0x90] sm:$0xff]  ;;  %4066 = vrot.lane.b32.xlu0 %v4049_v35, %s6656_s17  ;;  %v8342_v44 = vld [vmem:[#allocation5 + $0x5f] sm:$0xff]  ;;  %vm9012_vm11 = vnez %v8791_v49  ;;  %v4322_v22 = vpack.c.bf16 %v4309_v5, %v4292_v40 }
 0x47b   : >> { %4169 = vst.msk [vmem:[#allocation8 + $0x30] sm:$0xff] %vm9000_vm4, %v4161_v15  ;;  %vm9007_vm7 = vmmov %vm8981_vm0  ;;  %v8334_v32 = vpack.c.bf16 %v4429_v21, %v4428_v30  ;;  %4338 = vrot.lane.b32.xlu1 %v4321_v16, %s6656_s17  ;;  %v4390_v26 = vsel %vm9012_vm11, %v8332_v12, 0.0  ;;  %v4295_v38 = vld [vmem:[#allocation5 + $0x51] sm:$0xff]  ;;  %v6581_v28 = vld [vmem:[%s8743_s7 + $0x10] sm:$0xff]   ;;  %v4198_v15 = vsel %vm9012_vm11, %v8298_v4, 0.0  ;;  %v4006_v39 = vsel %vm9012_vm11, %v8276_v29, 0.0 }
 0x47c   : >> { %4409 = vst.msk [vmem:[#allocation8 + $0x40] sm:$0xff] %vm9002_vm2, %v4401_v24  ;;  %vm9008_vm1 = vmmov %vm8981_vm0  ;;  %vm9009_vm0 = vnez %v8807_v57  ;;  %v4403_v35 = vpack.c.bf16 %v8342_v44, %v4390_v26  ;;  %v4294_v27 = vld [vmem:[#allocation5 + $0x49] sm:$0xff]  ;;  %v6582_v43 = vld [vmem:[%s8743_s7 + $0xd0] sm:$0xff]   ;;  %6103 = vmatpush3.bf16.msra.mxu0 %v6581_v28  ;;  %v4019_v41 = vpack.c.bf16 %v8278_v13, %v4006_v39  ;;  %v4153_v63 = vsel %vm9016_vm6, %v4295_v38, 0.0 }
 0x47d   : >> { %4283 = vst.msk [vmem:[#allocation8 + $0x88] sm:$0xff] %vm9003_vm3, %v8285_v3  ;;  %v4151_v9 = vsel %vm9009_vm0, %v4293_v23, 0.0  ;;  %vm9010_vm5 = vmmov %vm9008_vm1  ;;  %v8359_v36 = vld [vmem:[#allocation5 + $0x67] sm:$0xff]  ;;  %v8374_v42 = vld [vmem:[#allocation5 + $0x6f] sm:$0xff]  ;;  %6166 = vmatprep.subr.bf16.mxu1 %v6582_v43  ;;  %v4211_v16 = vpack.c.bf16 %v8305_v0, %v4198_v15  ;;  %v4311_v8 = vsel %vm9009_vm0, %v4295_v38, 0.0  ;;  %vm9022_vm11 = vnez %v8811_v59 }
 0x47e   : >> { %4170 = vst.msk [vmem:[#allocation8 + $0x58] sm:$0xff] %vm9005_vm13, %v4162_v17  ;;  %v4163_v62 = vpack.c.bf16 %v4151_v9, %v4292_v40  ;;  %vm9011_vm12 = vmmov %vm9008_vm1  ;;  %v6583_v24 = vld [vmem:[%s8743_s7 + $0x58] sm:$0xff]   ;;  %4228 = vrot.lane.b32.xlu0 %v4210_v34, %s6656_s17  ;;  %v6584_v37 = vld [vmem:[%s8743_s7 + $0x90] sm:$0xff]   ;;  %v4164_v17 = vpack.c.bf16 %v4153_v63, %v4294_v27  ;;  %vm9017_vm13 = vnez %v8793_v50  ;;  %v4323_v9 = vpack.c.bf16 %v4311_v8, %v4294_v27 }
 0x47f   : >> { %4284 = vst.msk [vmem:[#allocation8 + $0xb0] sm:$0xff] %vm9006_vm14, %v8300_v10  ;;  %vm9013_vm4 = vmmov %vm9008_vm1  ;;  %4452 = vrot.lane.b32.xlu1 %v8285_v3, %s6656_s17  ;;  %6104 = vmatprep.subr.bf16.mxu0 %v6583_v24  ;;  %v4096_v29 = vld [vmem:[#allocation5 + $0x9] sm:$0xff]  ;;  %v4392_v1 = vsel %vm9017_vm13, %v8359_v36, 0.0  ;;  %v4097_v14 = vld [vmem:[#allocation5 + $0x11] sm:$0xff]  ;;  %v4200_v38 = vsel %vm9017_vm13, %v8332_v12, 0.0 }
 0x480   : >> { %4410 = vst.msk [vmem:[#allocation8 + $0x68] sm:$0xff] %vm9007_vm7, %v4402_v7  ;;  %vm9014_vm2 = vmmov %vm9008_vm1  ;;  %v6585_v31 = vld [vmem:[%s8743_s7 + $0x18] sm:$0xff]   ;;  %v4404_v13 = vpack.c.bf16 %v8374_v42, %v4392_v1  ;;  %6167 = vmatpush3.bf16.msra.mxu1 %v6584_v37  ;;  %v4008_v7 = vsel %vm9017_vm13, %v8298_v4, 0.0  ;;  %v6587_v25 = vld [vmem:[%s8743_s7 + $0x60] sm:$0xff]   ;;  %v4212_v39 = vpack.c.bf16 %v8342_v44, %v4200_v38 }
 0x481   : >> { %4285 = vst.msk [vmem:[#allocation8 + $0xd8] sm:$0xff] %vm9008_vm1, %v8310_v11  ;;  %vm9015_vm3 = vmmov %vm9008_vm1  ;;  %v6586_v2 = vld [vmem:[%s8743_s7 + $0xd8] sm:$0xff]   ;;  %v4020_v19 = vpack.c.bf16 %v8305_v0, %v4008_v7  ;;  %v8408_v23 = vld [vmem:[#allocation5 + $0x77] sm:$0xff]  ;;  %6105 = vmatpush3.bf16.msra.mxu0 %v6585_v31 }
 0x482   : >> { %4026 = vst.msk [vmem:[#allocation8 + $0x50] sm:$0xff] %vm9010_vm5, %v4018_v18  ;;  %vm9018_vm14 = vmmov %vm9008_vm1  ;;  %4068 = vrot.lane.b32.xlu0 %v8255_v20, %s6656_s17  ;;  %v4297_v4 = vld [vmem:[#allocation5 + $0x61] sm:$0xff]  ;;  %6168 = vmatprep.subr.bf16.mxu1 %v6586_v2  ;;  %v4145_v18 = vsel %vm8994_vm9, %v4097_v14, 0.0  ;;  %v4296_v40 = vld [vmem:[#allocation5 + $0x59] sm:$0xff] }
 0x483   : >> { %4286 = vst.msk [vmem:[#allocation8 + $0x100] sm:$0xff] %vm9011_vm12, %v8325_v33  ;;  %vm9019_vm7 = vmmov %vm9008_vm1  ;;  %4340 = vrot.lane.b32.xlu1 %v4322_v22, %s6656_s17  ;;  %v6588_v20 = vld [vmem:[%s8743_s7 + $0x98] sm:$0xff]   ;;  %6106 = vmatprep.subr.bf16.mxu0 %v6587_v25  ;;  %v6589_v30 = vld [vmem:[%s8743_s7 + $0x20] sm:$0xff]   ;;  %v4160_v21 = vpack.c.bf16 %v4145_v18, %v4096_v29  ;;  %v4155_v26 = vsel %vm9022_vm11, %v4297_v4, 0.0  ;;  %v4313_v63 = vsel %vm9016_vm6, %v4297_v4, 0.0 }
 0x484   : >> { %4171 = vst.msk [vmem:[#allocation8 + $0x80] sm:$0xff] %vm9013_vm4, %v4163_v62  ;;  %vm9020_vm5 = vmmov %vm9008_vm1  ;;  %6169 = vmatpush3.bf16.msra.mxu1 %v6588_v20  ;;  %v6590_v0 = vld [vmem:[%s8743_s7 + $0xe0] sm:$0xff]   ;;  %v8425_v62 = vld [vmem:[#allocation5 + $0x7f] sm:$0xff]  ;;  %vm9023_vm4 = vnez %v8795_v51  ;;  %v4324_v1 = vpack.c.bf16 %v4313_v63, %v4296_v40 }
 0x485   : >> { %4287 = vst.msk [vmem:[#allocation8 + $0x128] sm:$0xff] %vm9014_vm2, %v8334_v32  ;;  %v6591_v34 = vld [vmem:[%s8743_s7 + $0x68] sm:$0xff]   ;;  %vm9021_vm12 = vmmov %vm9008_vm1  ;;  %v4394_v5 = vsel %vm9023_vm4, %v8408_v23, 0.0  ;;  %6107 = vmatpush3.bf16.msra.mxu0 %v6589_v30  ;;  %6170 = vmatprep.subr.bf16.mxu1 %v6590_v0  ;;  %v6592_v28 = vld [vmem:[%s8743_s7 + $0xa0] sm:$0xff]   ;;  %v4010_v24 = vsel %vm9023_vm4, %v8332_v12, 0.0 }
 0x486   : >> { %4411 = vst.msk [vmem:[#allocation8 + $0x90] sm:$0xff] %vm9015_vm3, %v4403_v35  ;;  %4230 = vrot.lane.b32.xlu0 %v4211_v16, %s6656_s17  ;;  %v4165_v35 = vpack.c.bf16 %v4155_v26, %v4296_v40  ;;  %v4405_v15 = vpack.c.bf16 %v8425_v62, %v4394_v5  ;;  %6108 = vmatprep.subr.bf16.mxu0 %v6591_v34  ;;  %v6593_v27 = vld [vmem:[%s8743_s7 + $0x28] sm:$0xff]   ;;  %vm9024_vm2 = vmmov %vm9008_vm1  ;;  %v3908_v22 = vld [vmem:[%s8206_s13] sm:$0xff]  ;;  %v4202_v16 = vsel %vm9023_vm4, %v8359_v36, 0.0 }
 0x487   : >> { %4027 = vst.msk [vmem:[#allocation8 + $0x78] sm:$0xff] %vm9018_vm14, %v4019_v41  ;;  %4454 = vrot.lane.b32.xlu1 %v8300_v10, %s6656_s17  ;;  %v6594_v43 = vld [vmem:[%s8743_s7 + $0xe8] sm:$0xff]   ;;  %vm9025_vm3 = vmmov %vm9008_vm1  ;;  %v4021_v41 = vpack.c.bf16 %v8342_v44, %v4010_v24  ;;  %v8462_v29 = vld [vmem:[#allocation5 + $0x87] sm:$0xff]  ;;  %v4213_v40 = vpack.c.bf16 %v8374_v42, %v4202_v16 }
 0x488   : >> { %4172 = vst.msk [vmem:[#allocation8 + $0xa8] sm:$0xff] %vm9019_vm7, %v4164_v17  ;;  %6171 = vmatpush3.bf16.msra.mxu1 %v6592_v28  ;;  %v4299_v37 = vld [vmem:[#allocation5 + $0x71] sm:$0xff]  ;;  %vm9026_vm13 = vmmov %vm9008_vm1  ;;  %v4298_v12 = vld [vmem:[#allocation5 + $0x69] sm:$0xff]  ;;  %vm9028_vm7 = vnez %v8813_v60 }
 0x489   : >> { %4412 = vst.msk [vmem:[#allocation8 + $0xb8] sm:$0xff] %vm9008_vm1, %v4404_v13  ;;  %6109 = vmatpush3.bf16.msra.mxu0 %v6593_v27  ;;  %6172 = vmatprep.subr.bf16.mxu1 %v6594_v43  ;;  %v6596_v17 = vld [vmem:[%s8743_s7 + $0xa8] sm:$0xff]   ;;  %vm9027_vm14 = vmmov %vm9008_vm1  ;;  %v6597_v44 = vld [vmem:[%s8743_s7 + $0x30] sm:$0xff]   ;;  %v4157_v2 = vsel %vm9028_vm7, %v4299_v37, 0.0  ;;  %vm9029_vm1 = vnez %v8797_v52  ;;  %v4315_v30 = vsel %vm9022_vm11, %v4299_v37, 0.0 }
 0x48a   : >> { %4028 = vst.msk [vmem:[#allocation8 + $0xa0] sm:$0xff] %vm9020_vm5, %v4020_v19  ;;  %4070 = vrot.lane.b32.xlu0 %v8266_v6, %s6656_s17  ;;  %v6595_v6 = vld [vmem:[%s8743_s7 + $0x70] sm:$0xff]   ;;  %v8478_v31 = vld [vmem:[#allocation5 + $0x8f] sm:$0xff]  ;;  %v4396_v7 = vsel %vm9029_vm1, %v8462_v29, 0.0  ;;  %v4166_v14 = vpack.c.bf16 %v4157_v2, %v4298_v12  ;;  %vm9030_vm5 = vmmov %vm9024_vm2  ;;  %v4012_v18 = vsel %vm9029_vm1, %v8359_v36, 0.0  ;;  %v4325_v5 = vpack.c.bf16 %v4315_v30, %v4298_v12 }
 0x48b   : >> { %4168 = vst.msk [vmem:[#allocation8 + $0x8] sm:$0xff] %vm9021_vm12, %v4160_v21  ;;  %4342 = vrot.lane.b32.xlu1 %v4323_v9, %s6656_s17  ;;  %6110 = vmatprep.subr.bf16.mxu0 %v6595_v6  ;;  %v6598_v13 = vld [vmem:[%s8743_s7 + $0xf0] sm:$0xff]   ;;  %v3953_v8 = vld [vmem:[#allocation5 + $0xf] sm:$0xff]  ;;  %v4406_v19 = vpack.c.bf16 %v8478_v31, %v4396_v7  ;;  %vm9031_vm12 = vmmov %vm9024_vm2  ;;  %v4022_v0 = vpack.c.bf16 %v8374_v42, %v4012_v18 }
 0x48c   : >> { %4173 = vst.msk [vmem:[#allocation8 + $0xd0] sm:$0xff] %vm9024_vm2, %v4165_v35  ;;  %6173 = vmatpush3.bf16.msra.mxu1 %v6596_v17  ;;  %v6599_v25 = vld [vmem:[%s8743_s7 + $0x78] sm:$0xff]   ;;  %v6600_v4 = vld [vmem:[%s8743_s7 + $0xb0] sm:$0xff]   ;;  %vm9032_vm4 = vmmov %vm9024_vm2 }
 0x48d   : >> { %4413 = vst.msk [vmem:[#allocation8 + $0xe0] sm:$0xff] %vm9025_vm3, %v4405_v15  ;;  %6111 = vmatpush3.bf16.msra.mxu0 %v6597_v44  ;;  %6174 = vmatprep.subr.bf16.mxu1 %v6598_v13  ;;  %v6601_v20 = vld [vmem:[%s8743_s7 + $0x38] sm:$0xff]   ;;  %v8525_v42 = vld [vmem:[%s8743_s7 + $0x100] sm:$0xff]   ;;  %v4300_v38 = vld [vmem:[#allocation5 + $0x79] sm:$0xff]  ;;  %v4204_v15 = vsel %vm9029_vm1, %v8408_v23, 0.0  ;;  %vm9035_vm3 = vnez %v8799_v53 }
 0x48e   : >> { %3930 = vst.msk [vmem:[#allocation5] sm:$0xff] %vm9026_vm13, %v3908_v22  ;;  %4232 = vrot.lane.b32.xlu0 %v4212_v39, %s6656_s17  ;;  %6112 = vmatprep.subr.bf16.mxu0 %v6599_v25  ;;  %v4301_v9 = vld [vmem:[#allocation5 + $0x81] sm:$0xff]  ;;  %v4382_v35 = vld [vmem:[#allocation5 + $0x97] sm:$0xff]  ;;  %vm9036_vm13 = vmmov %vm9032_vm4  ;;  %v4014_v24 = vsel %vm9035_vm3, %v8408_v23, 0.0  ;;  %v4214_v39 = vpack.c.bf16 %v8425_v62, %v4204_v15  ;;  %v4206_v23 = vsel %vm9035_vm3, %v8462_v29, 0.0 }
 0x48f   : >> { %4029 = vst.msk [vmem:[#allocation8 + $0xc8] sm:$0xff] %vm9027_vm14, %v4021_v41  ;;  %4456 = vrot.lane.b32.xlu1 %v8310_v11, %s6656_s17  ;;  %v6603_v26 = vld [vmem:[%s8743_s7 + $0xb8] sm:$0xff]   ;;  %v4398_v43 = vsel %vm9035_vm3, %v4382_v35, 0.0  ;;  %v4317_v22 = vsel %vm9028_vm7, %v4301_v9, 0.0  ;;  %v4383_v41 = vld [vmem:[#allocation5 + $0x9f] sm:$0xff]  ;;  %v4023_v63 = vpack.c.bf16 %v8425_v62, %v4014_v24  ;;  %vm9037_vm14 = vmmov %vm9032_vm4  ;;  %v4215_v62 = vpack.c.bf16 %v8478_v31, %v4206_v23 }
 0x490   : >> { %4174 = vst.msk [vmem:[#allocation8 + $0xf8] sm:$0xff] %vm9030_vm5, %v4166_v14  ;;  %6175 = vmatpush3.bf16.msra.mxu1 %v6600_v4  ;;  %v4407_v37 = vpack.c.bf16 %v4383_v41, %v4398_v43  ;;  %vm9038_vm1 = vmmov %vm9032_vm4  ;;  %v4430_v6 = vld [vmem:[#allocation5 + $0x98] sm:$0xff]  ;;  %v4431_v12 = vld [vmem:[#allocation5 + $0xa0] sm:$0xff] }
 0x491   : >> { %4414 = vst.msk [vmem:[#allocation8 + $0x108] sm:$0xff] %vm9031_vm12, %v4406_v19  ;;  %6113 = vmatpush3.bf16.msra.mxu0 %v6601_v20  ;;  %v4303_v17 = vld [vmem:[#allocation5 + $0x91] sm:$0xff]  ;;  %v4483_v2 = vld [vmem:[#allocation5 + $0x41] sm:$0xff]  ;;  %v4482_v16 = vld [vmem:[#allocation5 + $0x39] sm:$0xff] }
 0x492   : >> { %4072 = vrot.lane.b32.xlu0 %v8285_v3, %s6656_s17  ;;  %v6602_v3 = vld [vmem:[%s8743_s7 + $0xf8] sm:$0xff]   ;;  %4030 = vst.msk [vmem:[#allocation8 + $0xf0] sm:$0xff] %vm9032_vm4, %v4022_v0  ;;  %6324 = vmatprep.subr.bf16.mxu0 %v8525_v42  ;;  %v4481_v44 = vld [vmem:[#allocation5 + $0x31] sm:$0xff]  ;;  %vm9041_vm5 = vmmov %vm9038_vm1 }
 0x493   : >> { %4344 = vrot.lane.b32.xlu1 %v4324_v1, %s6656_s17  ;;  %6176 = vmatprep.subr.bf16.mxu1 %v6602_v3  ;;  %4031 = vst.msk [vmem:[#allocation8 + $0x118] sm:$0xff] %vm9037_vm14, %v4023_v63  ;;  %v4480_v1 = vld [vmem:[#allocation5 + $0x29] sm:$0xff]  ;;  %v4497_v13 = vsel %vm8994_vm9, %v4481_v44, 0.0  ;;  %v4489_v7 = vld [vmem:[#allocation5 + $0x71] sm:$0xff]  ;;  %v4491_v14 = vld [vmem:[#allocation5 + $0x81] sm:$0xff] }
 0x494   : >> { %6177 = vmatpush3.bf16.msra.mxu1 %v6603_v26  ;;  %4415 = vst.msk [vmem:[#allocation8 + $0x130] sm:$0xff] %vm9038_vm1, %v4407_v37  ;;  %v4512_v29 = vpack.c.bf16 %v4497_v13, %v4480_v1  ;;  %v4488_v25 = vld [vmem:[#allocation5 + $0x69] sm:$0xff]  ;;  %v4505_v31 = vsel %vm9016_vm6, %v4489_v7, 0.0  ;;  %v3929_v30 = vld [vmem:[%s8206_s13 + $0xa8] sm:$0xff]  ;;  %vm9039_vm9 = vmmov %vm9038_vm1 }
 0x495   : >> { %v3952_v21 = vld [vmem:[#allocation5 + $0x7] sm:$0xff]  ;;  %6390 = vmatprep.subr.bf16.mxu1 %v8525_v42  ;;  %v4516_v18 = vpack.c.bf16 %v4505_v31, %v4488_v25  ;;  %vm9042_vm6 = vmmov %vm9038_vm1  ;;  %v4493_v26 = vld [vmem:[#allocation5 + $0x91] sm:$0xff] }
 0x496   : >> { %v4000_v34 = vsel %vm8992_vm8, %v3952_v21, 0.0  ;;  %4234 = vrot.lane.b32.xlu0 %v4213_v40, %s6656_s17  ;;  %vm9033_vm8 = vmmov %vm9024_vm2  ;;  %vm9034_vm2 = vnez %v8815_v61  ;;  %v4302_v19 = vld [vmem:[#allocation5 + $0x89] sm:$0xff]  ;;  %v4507_v40 = vsel %vm9022_vm11, %v4491_v14, 0.0  ;;  %4520 = vst.msk [vmem:[#allocation8 + $0x20] sm:$0xff] %vm9039_vm9, %v4512_v29  ;;  %v4509_v15 = vsel %vm9028_vm7, %v4493_v26, 0.0  ;;  %v4494_v24 = vld [vmem:[#allocation5 + $0x99] sm:$0xff] }
 0x497   : >> { %v4016_v36 = vpack.c.bf16 %v3953_v8, %v4000_v34  ;;  %4458 = vrot.lane.b32.xlu1 %v8325_v33, %s6656_s17  ;;  %v4159_v28 = vsel %vm9034_vm2, %v4301_v9, 0.0  ;;  %v4499_v8 = vsel %vm8995_vm10, %v4483_v2, 0.0  ;;  %v4319_v4 = vsel %vm9034_vm2, %v4303_v17, 0.0  ;;  %vm9040_vm10 = vmmov %vm9038_vm1  ;;  %4524 = vst.msk [vmem:[#allocation8 + $0xc0] sm:$0xff] %vm9042_vm6, %v4516_v18  ;;  %v4485_v9 = vld [vmem:[#allocation5 + $0x51] sm:$0xff]  ;;  %v4484_v34 = vld [vmem:[#allocation5 + $0x49] sm:$0xff] }
 0x498   : >> { %v4167_v27 = vpack.c.bf16 %v4159_v28, %v4300_v38  ;;  %v4513_v20 = vpack.c.bf16 %v4499_v8, %v4482_v16  ;;  %3951 = vst.msk [vmem:[#allocation5 + $0xa8] sm:$0xff] %vm9040_vm10, %v3929_v30  ;;  %v4327_v0 = vpack.c.bf16 %v4319_v4, %v4302_v19  ;;  %vm9043_vm12 = vmmov %vm9038_vm1  ;;  %v4501_v3 = vsel %vm9001_vm15, %v4485_v9, 0.0  ;;  %v4492_v35 = vld [vmem:[#allocation5 + $0x89] sm:$0xff]  ;;  %v6605_v44 = vld [vmem:[%s8743_s7 + $0x108] sm:$0xff]  }
 0x499   : >> { %4024 = vst.msk [vmem:[#allocation8] sm:$0xff] %vm9033_vm8, %v4016_v36  ;;  %v4487_v36 = vld [vmem:[#allocation5 + $0x61] sm:$0xff]  ;;  %v4518_v43 = vpack.c.bf16 %v4509_v15, %v4492_v35  ;;  %vm9044_vm15 = vmmov %vm9038_vm1  ;;  %v6608_v4 = vld [vmem:[%s8743_s7 + $0x120] sm:$0xff]  }
 0x49a   : >> { %4175 = vst.msk [vmem:[#allocation8 + $0x120] sm:$0xff] %vm9036_vm13, %v4167_v27  ;;  %4074 = vrot.lane.b32.xlu0 %v8300_v10, %s6656_s17  ;;  %v4326_v10 = vpack.c.bf16 %v4317_v22, %v4300_v38  ;;  %v4486_v38 = vld [vmem:[#allocation5 + $0x59] sm:$0xff]  ;;  %v4503_v28 = vsel %vm9009_vm0, %v4487_v36, 0.0  ;;  %vm9045_vm11 = vmmov %vm9038_vm1  ;;  %vm9048_vm0 = vcmask 1048064   ;;  %v6607_v25 = vld [vmem:[%s8743_s7 + $0x118] sm:$0xff]  }
 0x49b   : >> { %4346 = vrot.lane.b32.xlu1 %v4325_v5, %s6656_s17  ;;  %4521 = vst.msk [vmem:[#allocation8 + $0x48] sm:$0xff] %vm9041_vm5, %v4513_v20  ;;  %v4514_v5 = vpack.c.bf16 %v4501_v3, %v4484_v34  ;;  %v4515_v27 = vpack.c.bf16 %v4503_v28, %v4486_v38  ;;  %vm9046_vm4 = vmmov %vm9038_vm1  ;;  %v6606_v7 = vld [vmem:[%s8743_s7 + $0x110] sm:$0xff]   ;;  %v6609_v30 = vld [vmem:[%s8743_s7 + $0x128] sm:$0xff]  }
 0x49c   : >> { %4526 = vst.msk [vmem:[#allocation8 + $0x110] sm:$0xff] %vm9046_vm4, %v4518_v43  ;;  %vm9047_vm8 = vmmov %vm9038_vm1  ;;  %v6610_v3 = vld [vmem:[%s8743_s7 + $0x130] sm:$0xff]   ;;  %v6611_v28 = vld [vmem:[%s8743_s7 + $0x138] sm:$0xff]  }
 0x49d   : >> { %4522 = vst.msk [vmem:[#allocation8 + $0x70] sm:$0xff] %vm9044_vm15, %v4514_v5  ;;  %vm9049_vm7 = vmmov %vm9048_vm0 }
 0x49e   : >> { %4236 = vrot.lane.b32.xlu0 %v4214_v39, %s6656_s17  ;;  %4523 = vst.msk [vmem:[#allocation8 + $0x98] sm:$0xff] %vm9045_vm11, %v4515_v27  ;;  %vm9050_vm3 = vmmov %vm9048_vm0 }
 0x49f   : >> { %4460 = vrot.lane.b32.xlu1 %v8334_v32, %s6656_s17  ;;  %v4439_v32 = vpack.c.bf16 %v4431_v12, %v4430_v6  ;;  %v4495_v39 = vld [vmem:[#allocation5 + $0xa1] sm:$0xff]  ;;  %vm9051_vm13 = vmmov %vm9048_vm0 }
 0x4a0   : >> { %vm9053_vm14 = vmmov %vm9048_vm0 }
 0x4a1   : >> { %vm9054_vm1 = vmmov %vm9048_vm0 }
 0x4a2   : >> { %4076 = vrot.lane.b32.xlu0 %v8310_v11, %s6656_s17  ;;  %v4490_v11 = vld [vmem:[#allocation5 + $0x79] sm:$0xff]  ;;  %vm9055_vm9 = vmmov %vm9048_vm0 }
 0x4a3   : >> { %4348 = vrot.lane.b32.xlu1 %v4326_v10, %s6656_s17  ;;  %v4517_v21 = vpack.c.bf16 %v4507_v40, %v4490_v11  ;;  %vm9056_vm10 = vmmov %vm9048_vm0 }
 0x4a4   : >> { %vm9057_vm5 = vmmov %vm9048_vm0 }
 0x4a5   : >> { %4525 = vst.msk [vmem:[#allocation8 + $0xe8] sm:$0xff] %vm9043_vm12, %v4517_v21  ;;  %vm9058_vm6 = vmmov %vm9048_vm0 }
 0x4a6   : >> { %4238 = vrot.lane.b32.xlu0 %v4215_v62, %s6656_s17  ;;  %vm9059_vm12 = vmmov %vm9048_vm0 }
 0x4a7   : >> { %4462 = vrot.lane.b32.xlu1 %v4439_v32, %s6656_s17  ;;  %vm9060_vm15 = vmmov %vm9048_vm0 }
 0x4a8   : >> { %vm9061_vm11 = vmmov %vm9048_vm0 }
 0x4a9   : >> { %vm9062_vm4 = vmmov %vm9048_vm0 }
 0x4aa   : >> { %4078 = vrot.lane.b32.xlu0 %v8325_v33, %s6656_s17  ;;  %v4511_v33 = vsel %vm9034_vm2, %v4495_v39, 0.0  ;;  %vm9052_vm2 = vmmov %vm9048_vm0 }
 0x4ab   : >> { %4350 = vrot.lane.b32.xlu1 %v4327_v0, %s6656_s17  ;;  %v4519_v22 = vpack.c.bf16 %v4511_v33, %v4494_v24 }
 0x4ad   : >> { %4527 = vst.msk [vmem:[#allocation8 + $0x138] sm:$0xff] %vm9047_vm8, %v4519_v22  ;;  %vm9063_vm8 = vmmov %vm9048_vm0 }
 0x4e0   : >> { %v4225_v41 = vpop.permute.xlu0 %4224 }
 0x4e1   : >> { %v4065_v63 = vpop.permute.xlu1 %4064  ;;  %4248 = vst.msk [vmem:[#allocation8 + $0x8] sm:$0xff] %vm9048_vm0, %v4225_v41 }
 0x4e2   : >> { %4088 = vst.msk [vmem:[#allocation8] sm:$0xff] %vm9049_vm7, %v4065_v63  ;;  %vm9064_vm7 = vmmov %vm9048_vm0 }
 0x4e4   : >> { %v4449_v37 = vpop.permute.xlu0 %4448 }
 0x4e5   : >> { %v4337_v10 = vpop.permute.xlu1 %4336  ;;  %4472 = vst.msk [vmem:[#allocation8 + $0x18] sm:$0xff] %vm9050_vm3, %v4449_v37  ;;  %vm9065_vm3 = vmmov %vm9048_vm0 }
 0x4e6   : >> { %4360 = vst.msk [vmem:[#allocation8 + $0x10] sm:$0xff] %vm9051_vm13, %v4337_v10  ;;  %vm9066_vm13 = vmmov %vm9048_vm0 }
 0x4e8   : >> { %v4227_v23 = vpop.permute.xlu0 %4226  ;;  %v4529_v6 = vld [vmem:[#allocation8 + $0x8] sm:$0xff] }
 0x4e9   : >> { %v4451_v12 = vpop.permute.xlu1 %4450  ;;  %v4528_v17 = vld [vmem:[#allocation8] sm:$0xff]  ;;  %4249 = vst.msk [vmem:[#allocation8 + $0x30] sm:$0xff] %vm9052_vm2, %v4227_v23  ;;  %4926 = vmatprep.mubr.bf16.mxu0 %v4529_v6  ;;  %vm9067_vm2 = vmmov %vm9048_vm0 }
 0x4ea   : >> { %4473 = vst.msk [vmem:[#allocation8 + $0x40] sm:$0xff] %vm9053_vm14, %v4451_v12  ;;  %4927 = vmatmul.mubr.bf16.vlgmr.msra.gmra.mrb[0].mxu0 %v4528_v17  ;;  %vm9068_vm14 = vmmov %vm9048_vm0 }
 0x4eb   : >> { %6325 = vmatpush3.bf16.msra.mxu0 %v8525_v42 }
 0x4ec   : >> { %v4067_v62 = vpop.permute.xlu0 %4066  ;;  %v4531_v1 = vld [vmem:[#allocation8 + $0x18] sm:$0xff]  ;;  %6326 = vmatprep.subr.bf16.mxu0 %v6605_v44 }
 0x4ed   : >> { %v4339_v13 = vpop.permute.xlu1 %4338  ;;  %v4530_v2 = vld [vmem:[#allocation8 + $0x10] sm:$0xff]  ;;  %4089 = vst.msk [vmem:[#allocation8 + $0x28] sm:$0xff] %vm9054_vm1, %v4067_v62  ;;  %5023 = vmatprep.mubr.bf16.mxu1 %v4531_v1  ;;  %vm9069_vm1 = vmmov %vm9048_vm0 }
 0x4ee   : >> { %4361 = vst.msk [vmem:[#allocation8 + $0x38] sm:$0xff] %vm9055_vm9, %v4339_v13  ;;  %5024 = vmatmul.mubr.bf16.vlgmr.msra.gmra.mrb[0].mxu1 %v4530_v2  ;;  %vm9070_vm9 = vmmov %vm9048_vm0 }
 0x4ef   : >> { %6398 = vmatpush3.bf16.msra.mxu1 %v8525_v42  ;;  %6327 = vmatpush3.bf16.msra.mxu0 %v6605_v44 }
 0x4f0   : >> { %v4229_v32 = vpop.permute.xlu0 %4228  ;;  %v4534_v16 = vld [vmem:[#allocation8 + $0x30] sm:$0xff]  ;;  %6391 = vmatprep.subr.bf16.mxu1 %v6605_v44  ;;  %6328 = vmatprep.subr.bf16.mxu0 %v6606_v7 }
 0x4f1   : >> { %v4453_v29 = vpop.permute.xlu1 %4452  ;;  %v4536_v8 = vld [vmem:[#allocation8 + $0x40] sm:$0xff]  ;;  %4250 = vst.msk [vmem:[#allocation8 + $0x58] sm:$0xff] %vm9056_vm10, %v4229_v32  ;;  %4934 = vmatprep.mubr.bf16.mxu0 %v4534_v16  ;;  %vm9071_vm10 = vmmov %vm9048_vm0 }
 0x4f2   : >> { %4474 = vst.msk [vmem:[#allocation8 + $0x68] sm:$0xff] %vm9057_vm5, %v4453_v29  ;;  %5031 = vmatprep.mubr.bf16.mxu1 %v4536_v8  ;;  %vm9072_vm5 = vmmov %vm9048_vm0 }
 0x4f3   : >> { %6399 = vmatpush3.bf16.msra.mxu1 %v6605_v44  ;;  %6329 = vmatpush3.bf16.msra.mxu0 %v6606_v7 }
 0x4f4   : >> { %v4069_v42 = vpop.permute.xlu0 %4068  ;;  %v4533_v14 = vld [vmem:[#allocation8 + $0x28] sm:$0xff]  ;;  %6392 = vmatprep.subr.bf16.mxu1 %v6606_v7  ;;  %6330 = vmatprep.subr.bf16.mxu0 %v6607_v25 }
 0x4f5   : >> { %v4341_v31 = vpop.permute.xlu1 %4340  ;;  %v4535_v19 = vld [vmem:[#allocation8 + $0x38] sm:$0xff]  ;;  %4090 = vst.msk [vmem:[#allocation8 + $0x50] sm:$0xff] %vm9058_vm6, %v4069_v42  ;;  %4935 = vmatmul.mubr.bf16.gmra.mrb[4].mxu0 %v4533_v14  ;;  %vm9073_vm6 = vmmov %vm9048_vm0 }
 0x4f6   : >> { %4362 = vst.msk [vmem:[#allocation8 + $0x60] sm:$0xff] %vm9059_vm12, %v4341_v31  ;;  %5032 = vmatmul.mubr.bf16.gmra.mrb[4].mxu1 %v4535_v19  ;;  %vm9074_vm12 = vmmov %vm9048_vm0  ;;  %v4532_v19 = vld [vmem:[#allocation8 + $0x20] sm:$0xff] }
 0x4f7   : >> { %6400 = vmatpush3.bf16.msra.mxu1 %v6606_v7  ;;  %6331 = vmatpush3.bf16.msra.mxu0 %v6607_v25 }
 0x4f8   : >> { %v4231_v20 = vpop.permute.xlu0 %4230  ;;  %v4539_v11 = vld [vmem:[#allocation8 + $0x58] sm:$0xff]  ;;  %6393 = vmatprep.subr.bf16.mxu1 %v6607_v25  ;;  %6332 = vmatprep.subr.bf16.mxu0 %v6608_v4 }
 0x4f9   : >> { %v4455_v18 = vpop.permute.xlu1 %4454  ;;  %v4541_v40 = vld [vmem:[#allocation8 + $0x68] sm:$0xff]  ;;  %4251 = vst.msk [vmem:[#allocation8 + $0x80] sm:$0xff] %vm9060_vm15, %v4231_v20  ;;  %4942 = vmatprep.mubr.bf16.mxu0 %v4539_v11  ;;  %vm9075_vm15 = vmmov %vm9048_vm0 }
 0x4fa   : >> { %4475 = vst.msk [vmem:[#allocation8 + $0x90] sm:$0xff] %vm9061_vm11, %v4455_v18  ;;  %5039 = vmatprep.mubr.bf16.mxu1 %v4541_v40  ;;  %vm9076_vm11 = vmmov %vm9048_vm0  ;;  %v4552_v18 = vld [vmem:[#allocation8 + $0xc0] sm:$0xff]  ;;  %v4537_v11 = vld [vmem:[#allocation8 + $0x48] sm:$0xff] }
 0x4fb   : >> { %6401 = vmatpush3.bf16.msra.mxu1 %v6607_v25  ;;  %6333 = vmatpush3.bf16.msra.mxu0 %v6608_v4  ;;  %v4557_v40 = vld [vmem:[#allocation8 + $0xe8] sm:$0xff] }
 0x4fc   : >> { %v4071_v21 = vpop.permute.xlu0 %4070  ;;  %v4538_v9 = vld [vmem:[#allocation8 + $0x50] sm:$0xff]  ;;  %6394 = vmatprep.subr.bf16.mxu1 %v6608_v4  ;;  %6334 = vmatprep.subr.bf16.mxu0 %v6609_v30 }
 0x4fd   : >> { %v4343_v0 = vpop.permute.xlu1 %4342  ;;  %v4540_v34 = vld [vmem:[#allocation8 + $0x60] sm:$0xff]  ;;  %4091 = vst.msk [vmem:[#allocation8 + $0x78] sm:$0xff] %vm9062_vm4, %v4071_v21  ;;  %4943 = vmatmul.mubr.bf16.gmra.mrb[8].mxu0 %v4538_v9  ;;  %vm9077_vm4 = vmmov %vm9048_vm0  ;;  %v4562_v21 = vld [vmem:[#allocation8 + $0x110] sm:$0xff] }
 0x4fe   : >> { %4363 = vst.msk [vmem:[#allocation8 + $0x88] sm:$0xff] %vm9063_vm8, %v4343_v0  ;;  %5040 = vmatmul.mubr.bf16.gmra.mrb[8].mxu1 %v4540_v34  ;;  %vm9078_vm8 = vmmov %vm9048_vm0  ;;  %v4547_v0 = vld [vmem:[#allocation8 + $0x98] sm:$0xff] }
 0x4ff   : >> { %6402 = vmatpush3.bf16.msra.mxu1 %v6608_v4  ;;  %6335 = vmatpush3.bf16.msra.mxu0 %v6609_v30  ;;  %v4567_v9 = vld [vmem:[#allocation8 + $0x138] sm:$0xff] }
 0x500   : >> { %v4233_v36 = vpop.permute.xlu0 %4232  ;;  %v4544_v5 = vld [vmem:[#allocation8 + $0x80] sm:$0xff]  ;;  %6395 = vmatprep.subr.bf16.mxu1 %v6609_v30  ;;  %6336 = vmatprep.subr.bf16.mxu0 %v6610_v3 }
 0x501   : >> { %v4457_v26 = vpop.permute.xlu1 %4456  ;;  %v4546_v38 = vld [vmem:[#allocation8 + $0x90] sm:$0xff]  ;;  %4252 = vst.msk [vmem:[#allocation8 + $0xa8] sm:$0xff] %vm9048_vm0, %v4233_v36  ;;  %4950 = vmatprep.mubr.bf16.mxu0 %v4544_v5  ;;  %vm5186_vm0 = vcmask 64512  }
 0x502   : >> { %4476 = vst.msk [vmem:[#allocation8 + $0xb8] sm:$0xff] %vm9064_vm7, %v4457_v26  ;;  %5047 = vmatprep.mubr.bf16.mxu1 %v4546_v38 }
 0x503   : >> { %6403 = vmatpush3.bf16.msra.mxu1 %v6609_v30  ;;  %6337 = vmatpush3.bf16.msra.mxu0 %v6610_v3  ;;  %v4542_v30 = vld [vmem:[#allocation8 + $0x70] sm:$0xff] }
 0x504   : >> { %v4073_v35 = vpop.permute.xlu0 %4072  ;;  %v4543_v27 = vld [vmem:[#allocation8 + $0x78] sm:$0xff]  ;;  %6396 = vmatprep.subr.bf16.mxu1 %v6610_v3  ;;  %6338 = vmatprep.subr.bf16.mxu0 %v6611_v28 }
 0x505   : >> { %v4345_v15 = vpop.permute.xlu1 %4344  ;;  %v4545_v43 = vld [vmem:[#allocation8 + $0x88] sm:$0xff]  ;;  %4092 = vst.msk [vmem:[#allocation8 + $0xa0] sm:$0xff] %vm9065_vm3, %v4073_v35  ;;  %4951 = vmatmul.mubr.bf16.gmra.mrb[12].mxu0 %v4543_v27 }
 0x506   : >> { %4364 = vst.msk [vmem:[#allocation8 + $0xb0] sm:$0xff] %vm9066_vm13, %v4345_v15  ;;  %5048 = vmatmul.mubr.bf16.gmra.mrb[12].mxu1 %v4545_v43 }
 0x507   : >> { %6404 = vmatpush3.bf16.msra.mxu1 %v6610_v3  ;;  %6339 = vmatpush3.bf16.msra.mxu0 %v6611_v28 }
 0x508   : >> { %v4235_v24 = vpop.permute.xlu0 %4234  ;;  %v4549_v33 = vld [vmem:[#allocation8 + $0xa8] sm:$0xff]  ;;  %6397 = vmatprep.subr.bf16.mxu1 %v6611_v28 }
 0x509   : >> { %v4459_v39 = vpop.permute.xlu1 %4458  ;;  %v4551_v22 = vld [vmem:[#allocation8 + $0xb8] sm:$0xff]  ;;  %4253 = vst.msk [vmem:[#allocation8 + $0xd0] sm:$0xff] %vm9067_vm2, %v4235_v24  ;;  %4958 = vmatprep.mubr.bf16.mxu0 %v4549_v33 }
 0x50a   : >> { %4477 = vst.msk [vmem:[#allocation8 + $0xe0] sm:$0xff] %vm9068_vm14, %v4459_v39  ;;  %5055 = vmatprep.mubr.bf16.mxu1 %v4551_v22 }
 0x50b   : >> { %6405 = vmatpush3.bf16.msra.mxu1 %v6611_v28 }
 0x50c   : >> { %v4075_v41 = vpop.permute.xlu0 %4074  ;;  %v4548_v37 = vld [vmem:[#allocation8 + $0xa0] sm:$0xff] }
 0x50d   : >> { %v4347_v63 = vpop.permute.xlu1 %4346  ;;  %v4550_v10 = vld [vmem:[#allocation8 + $0xb0] sm:$0xff]  ;;  %4093 = vst.msk [vmem:[#allocation8 + $0xc8] sm:$0xff] %vm9069_vm1, %v4075_v41  ;;  %4959 = vmatmul.mubr.bf16.gmra.mrb[16].mxu0 %v4548_v37 }
 0x50e   : >> { %4365 = vst.msk [vmem:[#allocation8 + $0xd8] sm:$0xff] %vm9070_vm9, %v4347_v63  ;;  %5056 = vmatmul.mubr.bf16.gmra.mrb[16].mxu1 %v4550_v10 }
 0x510   : >> { %v4237_v23 = vpop.permute.xlu0 %4236  ;;  %v4554_v12 = vld [vmem:[#allocation8 + $0xd0] sm:$0xff] }
 0x511   : >> { %v4461_v6 = vpop.permute.xlu1 %4460  ;;  %v4556_v17 = vld [vmem:[#allocation8 + $0xe0] sm:$0xff]  ;;  %4254 = vst.msk [vmem:[#allocation8 + $0xf8] sm:$0xff] %vm9071_vm10, %v4237_v23  ;;  %4966 = vmatprep.mubr.bf16.mxu0 %v4554_v12 }
 0x512   : >> { %4478 = vst.msk [vmem:[#allocation8 + $0x108] sm:$0xff] %vm9072_vm5, %v4461_v6  ;;  %5063 = vmatprep.mubr.bf16.mxu1 %v4556_v17 }
 0x514   : >> { %v4077_v44 = vpop.permute.xlu0 %4076  ;;  %v4553_v1 = vld [vmem:[#allocation8 + $0xc8] sm:$0xff] }
 0x515   : >> { %v4349_v62 = vpop.permute.xlu1 %4348  ;;  %v4555_v13 = vld [vmem:[#allocation8 + $0xd8] sm:$0xff]  ;;  %4094 = vst.msk [vmem:[#allocation8 + $0xf0] sm:$0xff] %vm9073_vm6, %v4077_v44  ;;  %4967 = vmatmul.mubr.bf16.gmra.mrb[20].mxu0 %v4553_v1 }
 0x516   : >> { %4366 = vst.msk [vmem:[#allocation8 + $0x100] sm:$0xff] %vm9074_vm12, %v4349_v62  ;;  %5064 = vmatmul.mubr.bf16.gmra.mrb[20].mxu1 %v4555_v13 }
 0x518   : >> { %v4239_v2 = vpop.permute.xlu0 %4238  ;;  %v4559_v32 = vld [vmem:[#allocation8 + $0xf8] sm:$0xff] }
 0x519   : >> { %v4463_v7 = vpop.permute.xlu1 %4462  ;;  %v4561_v29 = vld [vmem:[#allocation8 + $0x108] sm:$0xff]  ;;  %4255 = vst.msk [vmem:[#allocation8 + $0x120] sm:$0xff] %vm9075_vm15, %v4239_v2  ;;  %4974 = vmatprep.mubr.bf16.mxu0 %v4559_v32 }
 0x51a   : >> { %4479 = vst.msk [vmem:[#allocation8 + $0x130] sm:$0xff] %vm9076_vm11, %v4463_v7  ;;  %5071 = vmatprep.mubr.bf16.mxu1 %v4561_v29 }
 0x51c   : >> { %v4079_v16 = vpop.permute.xlu0 %4078  ;;  %v4558_v25 = vld [vmem:[#allocation8 + $0xf0] sm:$0xff] }
 0x51d   : >> { %v4351_v8 = vpop.permute.xlu1 %4350  ;;  %v4560_v42 = vld [vmem:[#allocation8 + $0x100] sm:$0xff]  ;;  %4095 = vst.msk [vmem:[#allocation8 + $0x118] sm:$0xff] %vm9077_vm4, %v4079_v16  ;;  %4975 = vmatmul.mubr.bf16.gmra.mrb[24].mxu0 %v4558_v25 }
 0x51e   : >> { %4367 = vst.msk [vmem:[#allocation8 + $0x128] sm:$0xff] %vm9078_vm8, %v4351_v8  ;;  %5072 = vmatmul.mubr.bf16.gmra.mrb[24].mxu1 %v4560_v42 }
 0x520   : >> { %v4564_v31 = vld [vmem:[#allocation8 + $0x120] sm:$0xff] }
 0x521   : >> { %v4566_v14 = vld [vmem:[#allocation8 + $0x130] sm:$0xff]  ;;  %4982 = vmatprep.mubr.bf16.mxu0 %v4564_v31 }
 0x522   : >> { %5079 = vmatprep.mubr.bf16.mxu1 %v4566_v14 }
 0x524   : >> { %v4563_v4 = vld [vmem:[#allocation8 + $0x118] sm:$0xff] }
 0x525   : >> { %v4565_v20 = vld [vmem:[#allocation8 + $0x128] sm:$0xff]  ;;  %4983 = vmatmul.mubr.bf16.gmra.mrb[28].mxu0 %v4563_v4 }
 0x526   : >> { %5080 = vmatmul.mubr.bf16.gmra.mrb[28].mxu1 %v4565_v20  ;;  %6340 = vmatprep.mubr.bf16.mxu0 %v4532_v19 }
 0x527   : >> { %6348 = vmatprep.mubr.bf16.mxu1 %v4552_v18 }
 0x52d   : >> { %6341 = vmatmul.mubr.bf16.vlgmr.msra.gmra.mrb[32].mxu0 %v4537_v11 }
 0x52e   : >> { %6349 = vmatmul.mubr.bf16.vlgmr.msra.gmra.mrb[32].mxu1 %v4557_v40  ;;  %6344 = vmatprep.mubr.bf16.mxu0 %v4542_v30 }
 0x52f   : >> { %6352 = vmatprep.mubr.bf16.mxu1 %v4562_v21 }
 0x535   : >> { %6345 = vmatmul.mubr.bf16.gmra.mrb[36].mxu0 %v4547_v0 }
 0x536   : >> { %6353 = vmatmul.mubr.bf16.gmra.mrb[36].mxu1 %v4567_v9 }
 0x5bd   : >> { %v6114_v34 = vpop.f32.mrb[0].mxu0 }
 0x5be   : >> { %v6115_v3 = vpop.f32.mrb[1].mxu0 }
 0x5bf   : >> { %v6116_v36 = vadd.f32 %v6115_v3, %v6114_v34  ;;  %v6117_v26 = vpop.f32.mrb[2].mxu0 }
 0x5c0   : >> { %v6118_v5 = vpop.f32.mrb[3].mxu0 }
 0x5c1   : >> { %v6119_v38 = vadd.f32 %v6118_v5, %v6117_v26  ;;  %v6178_v28 = vpop.f32.mrb[0].mxu1  ;;  %v4929_v15 = vadd.f32 %v6116_v36, %v8171_v45 }
 0x5c2   : >> { %v6179_v35 = vpop.f32.mrb[1].mxu1 }
 0x5c3   : >> { %v6180_v27 = vadd.f32 %v6179_v35, %v6178_v28  ;;  %v6181_v43 = vpop.f32.mrb[2].mxu1  ;;  %v4932_v39 = vadd.f32 %v6119_v38, %v8171_v45 }
 0x5c4   : >> { %v6182_v24 = vpop.f32.mrb[3].mxu1 }
 0x5c5   : >> { %v6183_v33 = vadd.f32 %v6182_v24, %v6181_v43  ;;  %v8653_v22 = vadd.f32 %v6180_v27, %v4929_v15 }
 0x5c7   : >> { %v8655_v41 = vadd.f32 %v6183_v33, %v4932_v39 }
 0x5c8   : >> { %v6120_v63 = vpop.f32.mrb[4].mxu0 }
 0x5c9   : >> { %v6121_v37 = vpop.f32.mrb[5].mxu0  ;;  %v6184_v10 = vpop.f32.mrb[4].mxu1 }
 0x5ca   : >> { %v6122_v23 = vadd.f32 %v6121_v37, %v6120_v63  ;;  %v6123_v6 = vpop.f32.mrb[6].mxu0  ;;  %v6185_v12 = vpop.f32.mrb[5].mxu1 }
 0x5cb   : >> { %v6186_v17 = vadd.f32 %v6185_v12, %v6184_v10  ;;  %v6124_v44 = vpop.f32.mrb[7].mxu0  ;;  %v6187_v62 = vpop.f32.mrb[6].mxu1 }
 0x5cc   : >> { %v4937_v1 = vadd.f32 %v6122_v23, %v8171_v45  ;;  %v6125_v13 = vadd.f32 %v6124_v44, %v6123_v6  ;;  %v6188_v2 = vpop.f32.mrb[7].mxu1 }
 0x5cd   : >> { %v6189_v7 = vadd.f32 %v6188_v2, %v6187_v62 }
 0x5ce   : >> { %v4940_v32 = vadd.f32 %v6125_v13, %v8171_v45  ;;  %v8659_v29 = vadd.f32 %v6186_v17, %v4937_v1 }
 0x5d0   : >> { %v6126_v16 = vpop.f32.mrb[8].mxu0  ;;  %v8661_v8 = vadd.f32 %v6189_v7, %v4940_v32 }
 0x5d1   : >> { %v6127_v25 = vpop.f32.mrb[9].mxu0  ;;  %v6190_v42 = vpop.f32.mrb[8].mxu1 }
 0x5d2   : >> { %v6128_v31 = vadd.f32 %v6127_v25, %v6126_v16  ;;  %v6129_v14 = vpop.f32.mrb[10].mxu0  ;;  %v6191_v19 = vpop.f32.mrb[9].mxu1 }
 0x5d3   : >> { %v6192_v4 = vadd.f32 %v6191_v19, %v6190_v42  ;;  %v6130_v20 = vpop.f32.mrb[11].mxu0  ;;  %v6193_v18 = vpop.f32.mrb[10].mxu1 }
 0x5d4   : >> { %v4945_v11 = vadd.f32 %v6128_v31, %v8171_v45  ;;  %v6131_v40 = vadd.f32 %v6130_v20, %v6129_v14  ;;  %v6194_v30 = vpop.f32.mrb[11].mxu1 }
 0x5d5   : >> { %v6195_v21 = vadd.f32 %v6194_v30, %v6193_v18 }
 0x5d6   : >> { %v4948_v0 = vadd.f32 %v6131_v40, %v8171_v45  ;;  %v8665_v9 = vadd.f32 %v6192_v4, %v4945_v11 }
 0x5d8   : >> { %v6132_v34 = vpop.f32.mrb[12].mxu0  ;;  %v8667_v3 = vadd.f32 %v6195_v21, %v4948_v0 }
 0x5d9   : >> { %v6133_v36 = vpop.f32.mrb[13].mxu0  ;;  %v6196_v26 = vpop.f32.mrb[12].mxu1 }
 0x5da   : >> { %v6134_v5 = vadd.f32 %v6133_v36, %v6132_v34  ;;  %v6135_v38 = vpop.f32.mrb[14].mxu0  ;;  %v6197_v28 = vpop.f32.mrb[13].mxu1 }
 0x5db   : >> { %v6198_v35 = vadd.f32 %v6197_v28, %v6196_v26  ;;  %v6136_v15 = vpop.f32.mrb[15].mxu0  ;;  %v6199_v27 = vpop.f32.mrb[14].mxu1 }
 0x5dc   : >> { %v4953_v43 = vadd.f32 %v6134_v5, %v8171_v45  ;;  %v6137_v24 = vadd.f32 %v6136_v15, %v6135_v38  ;;  %v6200_v39 = vpop.f32.mrb[15].mxu1 }
 0x5dd   : >> { %v6201_v33 = vadd.f32 %v6200_v39, %v6199_v27 }
 0x5de   : >> { %v4956_v63 = vadd.f32 %v6137_v24, %v8171_v45  ;;  %v8671_v37 = vadd.f32 %v6198_v35, %v4953_v43 }
 0x5e0   : >> { %v6138_v10 = vpop.f32.mrb[16].mxu0  ;;  %v8673_v23 = vadd.f32 %v6201_v33, %v4956_v63 }
 0x5e1   : >> { %v6139_v6 = vpop.f32.mrb[17].mxu0  ;;  %v6202_v12 = vpop.f32.mrb[16].mxu1 }
 0x5e2   : >> { %v6140_v17 = vadd.f32 %v6139_v6, %v6138_v10  ;;  %v6141_v44 = vpop.f32.mrb[18].mxu0  ;;  %v6203_v62 = vpop.f32.mrb[17].mxu1 }
 0x5e3   : >> { %v6204_v1 = vadd.f32 %v6203_v62, %v6202_v12  ;;  %v6142_v13 = vpop.f32.mrb[19].mxu0  ;;  %v6205_v2 = vpop.f32.mrb[18].mxu1 }
 0x5e4   : >> { %v4961_v7 = vadd.f32 %v6140_v17, %v8171_v45  ;;  %v6143_v32 = vadd.f32 %v6142_v13, %v6141_v44  ;;  %v6206_v16 = vpop.f32.mrb[19].mxu1 }
 0x5e5   : >> { %v6207_v25 = vadd.f32 %v6206_v16, %v6205_v2 }
 0x5e6   : >> { %v4964_v42 = vadd.f32 %v6143_v32, %v8171_v45  ;;  %v5058_v31 = vadd.f32 %v6204_v1, %v4961_v7 }
 0x5e8   : >> { %v6144_v14 = vpop.f32.mrb[20].mxu0  ;;  %v8677_v19 = vadd.f32 %v6207_v25, %v4964_v42 }
 0x5e9   : >> { %v6145_v4 = vpop.f32.mrb[21].mxu0  ;;  %v6208_v20 = vpop.f32.mrb[20].mxu1 }
 0x5ea   : >> { %v6146_v18 = vadd.f32 %v6145_v4, %v6144_v14  ;;  %v6147_v11 = vpop.f32.mrb[22].mxu0  ;;  %v6209_v40 = vpop.f32.mrb[21].mxu1 }
 0x5eb   : >> { %v6210_v30 = vadd.f32 %v6209_v40, %v6208_v20  ;;  %v6148_v21 = vpop.f32.mrb[23].mxu0  ;;  %v6211_v0 = vpop.f32.mrb[22].mxu1 }
 0x5ec   : >> { %v4969_v34 = vadd.f32 %v6146_v18, %v8171_v45  ;;  %v6149_v36 = vadd.f32 %v6148_v21, %v6147_v11  ;;  %v6212_v26 = vpop.f32.mrb[23].mxu1 }
 0x5ed   : >> { %v6213_v5 = vadd.f32 %v6212_v26, %v6211_v0 }
 0x5ee   : >> { %v4972_v38 = vadd.f32 %v6149_v36, %v8171_v45  ;;  %v5066_v28 = vadd.f32 %v6210_v30, %v4969_v34 }
 0x5f0   : >> { %v6150_v35 = vpop.f32.mrb[24].mxu0  ;;  %v5069_v15 = vadd.f32 %v6213_v5, %v4972_v38 }
 0x5f1   : >> { %v6151_v27 = vpop.f32.mrb[25].mxu0  ;;  %v6214_v43 = vpop.f32.mrb[24].mxu1 }
 0x5f2   : >> { %v6152_v24 = vadd.f32 %v6151_v27, %v6150_v35  ;;  %v6153_v39 = vpop.f32.mrb[26].mxu0  ;;  %v6215_v33 = vpop.f32.mrb[25].mxu1 }
 0x5f3   : >> { %v6216_v63 = vadd.f32 %v6215_v33, %v6214_v43  ;;  %v6154_v10 = vpop.f32.mrb[27].mxu0  ;;  %v6217_v6 = vpop.f32.mrb[26].mxu1 }
 0x5f4   : >> { %v4977_v12 = vadd.f32 %v6152_v24, %v8171_v45  ;;  %v6155_v17 = vadd.f32 %v6154_v10, %v6153_v39  ;;  %v6218_v44 = vpop.f32.mrb[27].mxu1 }
 0x5f5   : >> { %v6219_v62 = vadd.f32 %v6218_v44, %v6217_v6 }
 0x5f6   : >> { %v4980_v1 = vadd.f32 %v6155_v17, %v8171_v45  ;;  %v5074_v13 = vadd.f32 %v6216_v63, %v4977_v12 }
 0x5f8   : >> { %v6156_v2 = vpop.f32.mrb[28].mxu0  ;;  %v5077_v7 = vadd.f32 %v6219_v62, %v4980_v1 }
 0x5f9   : >> { %v6157_v32 = vpop.f32.mrb[29].mxu0  ;;  %v6220_v16 = vpop.f32.mrb[28].mxu1 }
 0x5fa   : >> { %v6158_v25 = vadd.f32 %v6157_v32, %v6156_v2  ;;  %v6159_v42 = vpop.f32.mrb[30].mxu0  ;;  %v6221_v14 = vpop.f32.mrb[29].mxu1 }
 0x5fb   : >> { %v6222_v4 = vadd.f32 %v6221_v14, %v6220_v16  ;;  %v6160_v20 = vpop.f32.mrb[31].mxu0  ;;  %v6223_v18 = vpop.f32.mrb[30].mxu1 }
 0x5fc   : >> { %v4985_v11 = vadd.f32 %v6158_v25, %v8171_v45  ;;  %v6161_v40 = vadd.f32 %v6160_v20, %v6159_v42  ;;  %v6224_v30 = vpop.f32.mrb[31].mxu1 }
 0x5fd   : >> { %v6225_v21 = vadd.f32 %v6224_v30, %v6223_v18 }
 0x5fe   : >> { %v4988_v0 = vadd.f32 %v6161_v40, %v8171_v45  ;;  %v5082_v34 = vadd.f32 %v6222_v4, %v4985_v11 }
 0x600   : >> { %v6342_v36 = vpop.f32.mrb[32].mxu0  ;;  %v5085_v26 = vadd.f32 %v6225_v21, %v4988_v0 }
 0x601   : >> { %v5131_v5 = vadd.f32 %v6342_v36, %v8659_v29  ;;  %v5122_v38 = vpop.f32.mrb[33].mxu0  ;;  %v6350_v35 = vpop.f32.mrb[32].mxu1 }
 0x602   : >> { %v5123_v27 = vadd.f32 %v5122_v38, %v8653_v22  ;;  %v5163_v43 = vadd.f32 %v6350_v35, %v5066_v28  ;;  %v6343_v24 = vpop.f32.mrb[34].mxu0  ;;  %v5154_v39 = vpop.f32.mrb[33].mxu1 }
 0x603   : >> { %5189 = vst.msk [vmem:[%s8687_s19 + $0x10] sm:$0xff] %vm5186_vm0, %v5131_v5  ;;  %v5134_v33 = vadd.f32 %v6343_v24, %v8661_v8  ;;  %v5155_v63 = vadd.f32 %v5154_v39, %v5058_v31  ;;  %v5125_v10 = vpop.f32.mrb[35].mxu0  ;;  %v6351_v6 = vpop.f32.mrb[34].mxu1 }
 0x604   : >> { %5187 = vst.msk [vmem:[%s8687_s19] sm:$0xff] %vm5186_vm0, %v5123_v27  ;;  %5197 = vst.msk [vmem:[%s8687_s19 + $0x50] sm:$0xff] %vm5186_vm0, %v5163_v43  ;;  %v5126_v29 = vadd.f32 %v5125_v10, %v8655_v41  ;;  %v5166_v22 = vadd.f32 %v6351_v6, %v5069_v15  ;;  %v5157_v28 = vpop.f32.mrb[35].mxu1 }
 0x605   : >> { %5190 = vst.msk [vmem:[%s8687_s19 + $0x18] sm:$0xff] %vm5186_vm0, %v5134_v33  ;;  %5195 = vst.msk [vmem:[%s8687_s19 + $0x40] sm:$0xff] %vm5186_vm0, %v5155_v63  ;;  %v5158_v12 = vadd.f32 %v5157_v28, %v8677_v19 }
 0x606   : >> { %5188 = vst.msk [vmem:[%s8687_s19 + $0x8] sm:$0xff] %vm5186_vm0, %v5126_v29  ;;  %5198 = vst.msk [vmem:[%s8687_s19 + $0x58] sm:$0xff] %vm5186_vm0, %v5166_v22 }
 0x607   : >> { %5196 = vst.msk [vmem:[%s8687_s19 + $0x48] sm:$0xff] %vm5186_vm0, %v5158_v12 }
 0x608   : >> { %v6346_v8 = vpop.f32.mrb[36].mxu0 }
 0x609   : >> { %v5147_v41 = vadd.f32 %v6346_v8, %v8671_v37  ;;  %v5138_v31 = vpop.f32.mrb[37].mxu0  ;;  %v6354_v15 = vpop.f32.mrb[36].mxu1  ;;  %3902 = sbr.rel (!%p3900_p11) target bundleno = 1115 (0x45b), region = 155 }
 0x60a   : >> { %v5139_v17 = vadd.f32 %v5138_v31, %v8665_v9  ;;  %v5179_v44 = vadd.f32 %v6354_v15, %v5082_v34  ;;  %v6347_v19 = vpop.f32.mrb[38].mxu0  ;;  %v5170_v62 = vpop.f32.mrb[37].mxu1 }
 0x60b   : >> { %5193 = vst.msk [vmem:[%s8687_s19 + $0x30] sm:$0xff] %vm5186_vm0, %v5147_v41  ;;  %v5150_v1 = vadd.f32 %v6347_v19, %v8673_v23  ;;  %v5171_v2 = vadd.f32 %v5170_v62, %v5074_v13  ;;  %v5141_v32 = vpop.f32.mrb[39].mxu0  ;;  %v6355_v16 = vpop.f32.mrb[38].mxu1 }
 0x60c   : >> { %5191 = vst.msk [vmem:[%s8687_s19 + $0x20] sm:$0xff] %vm5186_vm0, %v5139_v17  ;;  %5201 = vst.msk [vmem:[%s8687_s19 + $0x70] sm:$0xff] %vm5186_vm0, %v5179_v44  ;;  %v5142_v37 = vadd.f32 %v5141_v32, %v8667_v3  ;;  %v5182_v9 = vadd.f32 %v6355_v16, %v5085_v26  ;;  %v5173_v25 = vpop.f32.mrb[39].mxu1 }
 0x60d   : >> { %5194 = vst.msk [vmem:[%s8687_s19 + $0x38] sm:$0xff] %vm5186_vm0, %v5150_v1  ;;  %5199 = vst.msk [vmem:[%s8687_s19 + $0x60] sm:$0xff] %vm5186_vm0, %v5171_v2  ;;  %v5174_v42 = vadd.f32 %v5173_v25, %v5077_v7 }
 0x60e   : >> { %5192 = vst.msk [vmem:[%s8687_s19 + $0x28] sm:$0xff] %vm5186_vm0, %v5142_v37  ;;  %5202 = vst.msk [vmem:[%s8687_s19 + $0x78] sm:$0xff] %vm5186_vm0, %v5182_v9 }
 0x60f   : >> { %5200 = vst.msk [vmem:[%s8687_s19 + $0x68] sm:$0xff] %vm5186_vm0, %v5174_v42 }
 0x610 PF: > { %s19_s30 = sadd.s32 1, %s6634_s30  }
 0x611   : > { %p16_p12 = scmp.ge.s32.totalorder %s19_s30, 4  }
 0x613   :  { %18 = sbr.rel (!%p16_p12) target bundleno = 1 (0x1), region = 166 }

</bundles_post_ra>
